<compile_context>
chip_gen: v7x
topology: tpu7x:2x2x1
jax: 0.10.0
libtpu: 0.0.40
codegen_flags: <defaults>
</compile_context>

<pallas_src>
import functools

import jax
import jax.numpy as jnp
from jax import lax
from jax.experimental import pallas as pl
from jax.experimental.pallas import tpu as pltpu

# --- module constants (from MortyGPT/GenerativeTransformerTinyGPT.py) -------
N_EMBD = 384                        # n_embd
NUM_HEADS = 6
HEAD_SIZE = N_EMBD // NUM_HEADS     # 64
SCALE = N_EMBD ** -0.5              # note: scaled by C = n_embd, per the source
BLOCK_SIZE = 256                    # max sequence length of the module


# ---------------------------------------------------------------------------
# Fused kernel: QKV projection + 6-head causal attention + output projection.
# grid = (B, n_q_tiles); each program handles one batch element and one query
# tile (full sequence of keys/values).
# ---------------------------------------------------------------------------
def _mha_fused_kernel(x_ref, wqkv_ref, wp_ref, bp_ref, o_ref, *, q_tile):
    # x_ref    : (1, T, C)   bf16   full-sequence activations for this batch
    # wqkv_ref : (C, 3*C)    bf16   cols = [Q h0..h5 (pre-scaled) | K | V]
    # wp_ref   : (C, C)      bf16   output-projection weight, already W^T
    # bp_ref   : (1, C)      f32    output-projection bias
    # o_ref    : (1, TQ, C)  bf16   lane-dense output block for this q tile
    C = N_EMBD
    T = x_ref.shape[1]
    TQ = q_tile

    x_full = x_ref[0]                                        # (T, C) bf16

    if TQ == T:
        # Single MXU pass: (T, 384) @ (384, 1152), f32 accumulation.
        q_off = 0
        qkv = lax.dot_general(
            x_full, wqkv_ref[...],
            dimension_numbers=(((1,), (0,)), ((), ())),
            preferred_element_type=jnp.float32)              # (T, 3C) f32
        q_f = qkv[:, :C]
        k_f = qkv[:, C:2 * C]
        v_f = qkv[:, 2 * C:]
    else:
        # Query-tile split (only used when B == 1, to give both v7x
        # TensorCores work).  K/V are recomputed per tile; Q only on the tile.
        q_off = pl.multiple_of(pl.program_id(1) * TQ, TQ)
        kv = lax.dot_general(
            x_full, wqkv_ref[:, pl.ds(C, 2 * C)],
            dimension_numbers=(((1,), (0,)), ((), ())),
            preferred_element_type=jnp.float32)              # (T, 2C) f32
        k_f = kv[:, :C]
        v_f = kv[:, C:]
        x_q = x_ref[0, pl.ds(q_off, TQ), :]                  # (TQ, C) bf16
        q_f = lax.dot_general(
            x_q, wqkv_ref[:, pl.ds(0, C)],
            dimension_numbers=(((1,), (0,)), ((), ())),
            preferred_element_type=jnp.float32)              # (TQ, C) f32

    # Full-width, lane-dense bf16 casts (3 casts total instead of 18 per-head
    # half-vreg slice+casts); SCALE is already folded into the Q weights.
    q_bf = q_f.astype(jnp.bfloat16)                          # (TQ, C)
    k_bf = k_f.astype(jnp.bfloat16)                          # (T,  C)
    v_bf = v_f.astype(jnp.bfloat16)                          # (T,  C)

    # Additive causal-mask bias, computed once and reused by all heads.
    # Large finite negative (not -inf) so exp() can never produce NaN.
    row = lax.broadcasted_iota(jnp.int32, (TQ, T), 0) + q_off
    col = lax.broadcasted_iota(jnp.int32, (TQ, T), 1)
    mask_bias = jnp.where(col <= row, 0.0, -1e30).astype(jnp.float32)

    # Per-head attention; output projection accumulated per head so the six
    # 64-lane head outputs are never concatenated / kept live together.
    acc = jnp.zeros((TQ, C), jnp.float32)
    for h in range(NUM_HEADS):                               # static unroll (6)
        lo, hi = h * HEAD_SIZE, (h + 1) * HEAD_SIZE
        q_h = q_bf[:, lo:hi]                                 # (TQ, hs) bf16
        k_h = k_bf[:, lo:hi]                                 # (T,  hs) bf16
        v_h = v_bf[:, lo:hi]                                 # (T,  hs) bf16

        # scores = q_h @ k_h^T without materializing a transpose of k.
        scores = lax.dot_general(
            q_h, k_h,
            dimension_numbers=(((1,), (1,)), ((), ())),
            preferred_element_type=jnp.float32)              # (TQ, T) f32
        scores = scores + mask_bias

        # Numerically stable softmax in f32; reciprocal on the EUP slot.
        m = jnp.max(scores, axis=-1, keepdims=True)
        e = jnp.exp(scores - m)
        denom = jnp.sum(e, axis=-1, keepdims=True)
        wei = (e * pl.reciprocal(denom, approx=True)).astype(jnp.bfloat16)

        out_h = lax.dot_general(
            wei, v_h,
            dimension_numbers=(((1,), (0,)), ((), ())),
            preferred_element_type=jnp.float32)              # (TQ, hs) f32

        # Fused output projection, accumulated per head: (TQ,64) @ (64,384).
        acc = acc + lax.dot_general(
            out_h.astype(jnp.bfloat16), wp_ref[lo:hi, :],
            dimension_numbers=(((1,), (0,)), ((), ())),
            preferred_element_type=jnp.float32)              # (TQ, C) f32

    o_ref[0] = (acc + bp_ref[...]).astype(o_ref.dtype)       # bf16 writeback
    # dropout -> identity (inference)


def _mha_pallas(x_bf16, wqkv_bf16, wp_bf16, bp_f32):
    B, T, C = x_bf16.shape
    # Split the query dimension across two programs only when B == 1 so both
    # v7x TensorCores get work; otherwise keep one program per batch element
    # (no extra grid-step overhead, weights DMA'd once).
    if B == 1 and T % 2 == 0 and (T // 2) % 8 == 0 and T >= 16:
        n_q = 2
    else:
        n_q = 1
    TQ = T // n_q

    kernel = functools.partial(_mha_fused_kernel, q_tile=TQ)
    return pl.pallas_call(
        kernel,
        out_shape=jax.ShapeDtypeStruct((B, T, C), jnp.bfloat16),
        grid_spec=pltpu.PrefetchScalarGridSpec(
            num_scalar_prefetch=0,
            grid=(B, n_q),
            in_specs=[
                # Full sequence of x per program (keys/values need all rows).
                pl.BlockSpec((1, T, C), lambda b, qi: (b, 0, 0)),
                # Weight block indices constant across the grid -> fetched
                # once, not re-DMA'd per grid step.
                pl.BlockSpec((C, 3 * C), lambda b, qi: (0, 0)),
                pl.BlockSpec((C, C), lambda b, qi: (0, 0)),
                pl.BlockSpec((1, C), lambda b, qi: (0, 0)),
            ],
            out_specs=pl.BlockSpec((1, TQ, C), lambda b, qi: (b, qi, 0)),
        ),
        compiler_params=pltpu.CompilerParams(
            dimension_semantics=("parallel", "parallel")),
    )(x_bf16, wqkv_bf16, wp_bf16, bp_f32)


# ---------------------------------------------------------------------------
# Full forward: bf16 cast at the pallas_call boundary, single fused kernel.
# ---------------------------------------------------------------------------
@jax.jit
def multi_head_attention_forward(x, params):
    x_bf = x.astype(jnp.bfloat16)
    wqkv = params["wqkv"].astype(jnp.bfloat16)
    wp = params["wp_t"].astype(jnp.bfloat16)
    bp = params["bp"].astype(jnp.float32)
    return _mha_pallas(x_bf, wqkv, wp, bp)


# ---------------------------------------------------------------------------
# Pure-JAX reference (f32 math from the same bf16-rounded inputs)
# ---------------------------------------------------------------------------
def reference_forward(x, params):
    B, T, C = x.shape
    xf = x.astype(jnp.bfloat16).astype(jnp.float32)
    wq = params["wq"].astype(jnp.bfloat16).astype(jnp.float32)
    wk = params["wk"].astype(jnp.bfloat16).astype(jnp.float32)
    wv = params["wv"].astype(jnp.bfloat16).astype(jnp.float32)
    wp = params["wp_t"].astype(jnp.bfloat16).astype(jnp.float32)
    bp = params["bp"].astype(jnp.float32)

    outs = []
    mask = jnp.tril(jnp.ones((T, T), dtype=bool))
    for h in range(NUM_HEADS):
        q = xf @ wq[h]
        k = xf @ wk[h]
        v = xf @ wv[h]
        wei = (q @ jnp.swapaxes(k, -1, -2)) * SCALE
        wei = jnp.where(mask, wei, -jnp.inf)
        wei = jax.nn.softmax(wei, axis=-1)
        outs.append(wei @ v)
    y = jnp.concatenate(outs, axis=-1)
    return y @ wp + bp[0]


def init_params(key):
    k1, k2, k3, k4, k5 = jax.random.split(key, 5)
    # PyTorch Linear weight is (out, in); we store the transposed (in, out)
    # form so kernels do plain x @ W.
    scale_qkv = (1.0 / N_EMBD) ** 0.5
    wq = jax.random.normal(k1, (NUM_HEADS, N_EMBD, HEAD_SIZE), jnp.float32) * scale_qkv
    wk = jax.random.normal(k2, (NUM_HEADS, N_EMBD, HEAD_SIZE), jnp.float32) * scale_qkv
    wv = jax.random.normal(k3, (NUM_HEADS, N_EMBD, HEAD_SIZE), jnp.float32) * scale_qkv
    wp_t = jax.random.normal(k4, (N_EMBD, N_EMBD), jnp.float32) * scale_qkv
    bp = jax.random.normal(k5, (1, N_EMBD), jnp.float32) * 0.01

    # Fused QKV weight: (C, 3*C), columns [Q h0..h5 | K h0..h5 | V h0..h5].
    # SCALE (= n_embd**-0.5, per the PyTorch source) folded into the Q columns
    # so no per-call scaling multiply is needed in the kernel.
    def heads_to_cols(w):                        # (H, C, hs) -> (C, H*hs)
        return jnp.transpose(w, (1, 0, 2)).reshape(N_EMBD, NUM_HEADS * HEAD_SIZE)
    wqkv = jnp.concatenate(
        [heads_to_cols(wq) * SCALE, heads_to_cols(wk), heads_to_cols(wv)], axis=1)

    return {"wq": wq, "wk": wk, "wv": wv, "wqkv": wqkv, "wp_t": wp_t, "bp": bp}


if __name__ == "__main__":
    key = jax.random.PRNGKey(0)
    kx, kp = jax.random.split(key)
    params = init_params(kp)

    # Two configs: (B=2, T=128) exercises the single-tile path; (B=1, T=256)
    # exercises the query-tile split (two parallel programs per batch).
    for (B, T) in [(2, 128), (1, 256)]:
        x = jax.random.normal(jax.random.fold_in(kx, T), (B, T, N_EMBD),
                              jnp.float32)
        out = multi_head_attention_forward(x, params)
        out = jax.block_until_ready(out)

        ref = reference_forward(x, params)
        assert out.shape == (B, T, N_EMBD), out.shape
        assert out.dtype == jnp.bfloat16, out.dtype
        err = float(jnp.max(jnp.abs(out.astype(jnp.float32) - ref)))
        assert jnp.allclose(out.astype(jnp.float32), ref,
                            atol=5e-2, rtol=5e-2), err

    print("KERNEL_OK")
</pallas_src>

<mosaic_0001>
module attributes {stable_mosaic.version = 11 : i64} {
  func.func @_mha_fused_kernel(%arg0: i32, %arg1: i32, %arg2: memref<1x128x384xbf16, #tpu.memory_space<vmem>>, %arg3: memref<384x1152xbf16, #tpu.memory_space<vmem>>, %arg4: memref<384x384xbf16, #tpu.memory_space<vmem>>, %arg5: memref<1x384xf32, #tpu.memory_space<vmem>>, %arg6: memref<1x128x384xbf16, #tpu.memory_space<vmem>>) attributes {dimension_semantics = [#tpu.dimension_semantics<parallel>, #tpu.dimension_semantics<parallel>], iteration_bounds = array<i64: 2, 1>, scalar_prefetch = 0 : i64, scratch_operands = 0 : i64, tpu.core_type = #tpu.core_type<tc>, window_params = [{transform_indices = @transform_0, window_bounds = array<i64: 1, 128, 384>}, {pipeline_mode = #tpu.pipeline_mode<synchronous>, transform_indices = @transform_1, window_bounds = array<i64: 384, 1152>}, {pipeline_mode = #tpu.pipeline_mode<synchronous>, transform_indices = @transform_2, window_bounds = array<i64: 384, 384>}, {pipeline_mode = #tpu.pipeline_mode<synchronous>, transform_indices = @transform_3, window_bounds = array<i64: 1, 384>}, {transform_indices = @transform_4, window_bounds = array<i64: 1, 128, 384>}]} {
    %c0 = arith.constant 0 : index
    %c0_0 = arith.constant 0 : index
    %c0_1 = arith.constant 0 : index
    %0 = vector.load %arg2[%c0, %c0_0, %c0_1] : memref<1x128x384xbf16, #tpu.memory_space<vmem>>, vector<1x128x384xbf16>
    %1 = vector.shape_cast %0 : vector<1x128x384xbf16> to vector<128x384xbf16>
    %c0_2 = arith.constant 0 : index
    %c0_3 = arith.constant 0 : index
    %2 = vector.load %arg3[%c0_2, %c0_3] : memref<384x1152xbf16, #tpu.memory_space<vmem>>, vector<384x1152xbf16>
    %cst = arith.constant dense<0.000000e+00> : vector<128x1152xf32>
    %3 = tpu.matmul %1, %2, %cst {dimension_numbers = #tpu.dot_dimension_numbers<[1], [0], [0], [1], [0, 0, 1, 1], [], []>} : vector<128x384xbf16>, vector<384x1152xbf16>, vector<128x1152xf32> -> vector<128x1152xf32>
    %4 = vector.extract_strided_slice %3 {offsets = [0, 0], sizes = [128, 384], strides = [1, 1]} : vector<128x1152xf32> to vector<128x384xf32>
    %5 = vector.extract_strided_slice %3 {offsets = [0, 384], sizes = [128, 384], strides = [1, 1]} : vector<128x1152xf32> to vector<128x384xf32>
    %6 = vector.extract_strided_slice %3 {offsets = [0, 768], sizes = [128, 384], strides = [1, 1]} : vector<128x1152xf32> to vector<128x384xf32>
    %7 = arith.truncf %4 : vector<128x384xf32> to vector<128x384xbf16>
    %8 = arith.truncf %5 : vector<128x384xf32> to vector<128x384xbf16>
    %9 = arith.truncf %6 : vector<128x384xf32> to vector<128x384xbf16>
    %10 = tpu.iota {dimensions = array<i32: 0>} : vector<128x128xi32>
    %c0_i32 = arith.constant 0 : i32
    %11 = vector.broadcast %c0_i32 : i32 to vector<128x128xi32>
    %12 = arith.addi %10, %11 : vector<128x128xi32>
    %13 = tpu.iota {dimensions = array<i32: 1>} : vector<128x128xi32>
    %14 = arith.cmpi sle, %13, %12 : vector<128x128xi32>
    %cst_4 = arith.constant 0.000000e+00 : f32
    %cst_5 = arith.constant -1.000000e+30 : f32
    %15 = vector.broadcast %cst_4 : f32 to vector<128x128xf32>
    %16 = vector.broadcast %cst_5 : f32 to vector<128x128xf32>
    %17 = arith.select %14, %15, %16 : vector<128x128xi1>, vector<128x128xf32>
    %cst_6 = arith.constant 0.000000e+00 : f32
    %18 = vector.broadcast %cst_6 : f32 to vector<128x384xf32>
    %19 = vector.extract_strided_slice %7 {offsets = [0, 0], sizes = [128, 64], strides = [1, 1]} : vector<128x384xbf16> to vector<128x64xbf16>
    %20 = vector.extract_strided_slice %8 {offsets = [0, 0], sizes = [128, 64], strides = [1, 1]} : vector<128x384xbf16> to vector<128x64xbf16>
    %21 = vector.extract_strided_slice %9 {offsets = [0, 0], sizes = [128, 64], strides = [1, 1]} : vector<128x384xbf16> to vector<128x64xbf16>
    %cst_7 = arith.constant dense<0.000000e+00> : vector<128x128xf32>
    %22 = tpu.matmul %19, %20, %cst_7 {dimension_numbers = #tpu.dot_dimension_numbers<[1], [1], [0], [0], [0, 0, 1, 0], [], []>} : vector<128x64xbf16>, vector<128x64xbf16>, vector<128x128xf32> -> vector<128x128xf32>
    %23 = arith.addf %22, %17 : vector<128x128xf32>
    %cst_8 = arith.constant dense<0xFF800000> : vector<128xf32>
    %24 = vector.multi_reduction <maximumf>, %23, %cst_8 [1] : vector<128x128xf32> to vector<128xf32>
    %25 = vector.shape_cast %24 : vector<128xf32> to vector<128x1xf32>
    %26 = vector.broadcast %25 : vector<128x1xf32> to vector<128x128xf32>
    %27 = arith.subf %23, %26 : vector<128x128xf32>
    %28 = math.exp %27 : vector<128x128xf32>
    %cst_9 = arith.constant dense<0.000000e+00> : vector<128xf32>
    %29 = vector.multi_reduction <add>, %28, %cst_9 [1] : vector<128x128xf32> to vector<128xf32>
    %30 = vector.shape_cast %29 : vector<128xf32> to vector<128x1xf32>
    %31 = tpu.reciprocal %30 {approx = true} : vector<128x1xf32> -> vector<128x1xf32>
    %32 = vector.broadcast %31 : vector<128x1xf32> to vector<128x128xf32>
    %33 = arith.mulf %28, %32 : vector<128x128xf32>
    %34 = arith.truncf %33 : vector<128x128xf32> to vector<128x128xbf16>
    %cst_10 = arith.constant dense<0.000000e+00> : vector<128x64xf32>
    %35 = tpu.matmul %34, %21, %cst_10 {dimension_numbers = #tpu.dot_dimension_numbers<[1], [0], [0], [1], [0, 0, 1, 1], [], []>} : vector<128x128xbf16>, vector<128x64xbf16>, vector<128x64xf32> -> vector<128x64xf32>
    %36 = arith.truncf %35 : vector<128x64xf32> to vector<128x64xbf16>
    %c0_11 = arith.constant 0 : index
    %c0_12 = arith.constant 0 : index
    %37 = vector.load %arg4[%c0_11, %c0_12] : memref<384x384xbf16, #tpu.memory_space<vmem>>, vector<64x384xbf16>
    %cst_13 = arith.constant dense<0.000000e+00> : vector<128x384xf32>
    %38 = tpu.matmul %36, %37, %cst_13 {dimension_numbers = #tpu.dot_dimension_numbers<[1], [0], [0], [1], [0, 0, 1, 1], [], []>} : vector<128x64xbf16>, vector<64x384xbf16>, vector<128x384xf32> -> vector<128x384xf32>
    %39 = arith.addf %18, %38 : vector<128x384xf32>
    %40 = vector.extract_strided_slice %7 {offsets = [0, 64], sizes = [128, 64], strides = [1, 1]} : vector<128x384xbf16> to vector<128x64xbf16>
    %41 = vector.extract_strided_slice %8 {offsets = [0, 64], sizes = [128, 64], strides = [1, 1]} : vector<128x384xbf16> to vector<128x64xbf16>
    %42 = vector.extract_strided_slice %9 {offsets = [0, 64], sizes = [128, 64], strides = [1, 1]} : vector<128x384xbf16> to vector<128x64xbf16>
    %cst_14 = arith.constant dense<0.000000e+00> : vector<128x128xf32>
    %43 = tpu.matmul %40, %41, %cst_14 {dimension_numbers = #tpu.dot_dimension_numbers<[1], [1], [0], [0], [0, 0, 1, 0], [], []>} : vector<128x64xbf16>, vector<128x64xbf16>, vector<128x128xf32> -> vector<128x128xf32>
    %44 = arith.addf %43, %17 : vector<128x128xf32>
    %cst_15 = arith.constant dense<0xFF800000> : vector<128xf32>
    %45 = vector.multi_reduction <maximumf>, %44, %cst_15 [1] : vector<128x128xf32> to vector<128xf32>
    %46 = vector.shape_cast %45 : vector<128xf32> to vector<128x1xf32>
    %47 = vector.broadcast %46 : vector<128x1xf32> to vector<128x128xf32>
    %48 = arith.subf %44, %47 : vector<128x128xf32>
    %49 = math.exp %48 : vector<128x128xf32>
    %cst_16 = arith.constant dense<0.000000e+00> : vector<128xf32>
    %50 = vector.multi_reduction <add>, %49, %cst_16 [1] : vector<128x128xf32> to vector<128xf32>
    %51 = vector.shape_cast %50 : vector<128xf32> to vector<128x1xf32>
    %52 = tpu.reciprocal %51 {approx = true} : vector<128x1xf32> -> vector<128x1xf32>
    %53 = vector.broadcast %52 : vector<128x1xf32> to vector<128x128xf32>
    %54 = arith.mulf %49, %53 : vector<128x128xf32>
    %55 = arith.truncf %54 : vector<128x128xf32> to vector<128x128xbf16>
    %cst_17 = arith.constant dense<0.000000e+00> : vector<128x64xf32>
    %56 = tpu.matmul %55, %42, %cst_17 {dimension_numbers = #tpu.dot_dimension_numbers<[1], [0], [0], [1], [0, 0, 1, 1], [], []>} : vector<128x128xbf16>, vector<128x64xbf16>, vector<128x64xf32> -> vector<128x64xf32>
    %57 = arith.truncf %56 : vector<128x64xf32> to vector<128x64xbf16>
    %c64 = arith.constant 64 : index
    %c0_18 = arith.constant 0 : index
    %58 = vector.load %arg4[%c64, %c0_18] : memref<384x384xbf16, #tpu.memory_space<vmem>>, vector<64x384xbf16>
    %cst_19 = arith.constant dense<0.000000e+00> : vector<128x384xf32>
    %59 = tpu.matmul %57, %58, %cst_19 {dimension_numbers = #tpu.dot_dimension_numbers<[1], [0], [0], [1], [0, 0, 1, 1], [], []>} : vector<128x64xbf16>, vector<64x384xbf16>, vector<128x384xf32> -> vector<128x384xf32>
    %60 = arith.addf %39, %59 : vector<128x384xf32>
    %61 = vector.extract_strided_slice %7 {offsets = [0, 128], sizes = [128, 64], strides = [1, 1]} : vector<128x384xbf16> to vector<128x64xbf16>
    %62 = vector.extract_strided_slice %8 {offsets = [0, 128], sizes = [128, 64], strides = [1, 1]} : vector<128x384xbf16> to vector<128x64xbf16>
    %63 = vector.extract_strided_slice %9 {offsets = [0, 128], sizes = [128, 64], strides = [1, 1]} : vector<128x384xbf16> to vector<128x64xbf16>
    %cst_20 = arith.constant dense<0.000000e+00> : vector<128x128xf32>
    %64 = tpu.matmul %61, %62, %cst_20 {dimension_numbers = #tpu.dot_dimension_numbers<[1], [1], [0], [0], [0, 0, 1, 0], [], []>} : vector<128x64xbf16>, vector<128x64xbf16>, vector<128x128xf32> -> vector<128x128xf32>
    %65 = arith.addf %64, %17 : vector<128x128xf32>
    %cst_21 = arith.constant dense<0xFF800000> : vector<128xf32>
    %66 = vector.multi_reduction <maximumf>, %65, %cst_21 [1] : vector<128x128xf32> to vector<128xf32>
    %67 = vector.shape_cast %66 : vector<128xf32> to vector<128x1xf32>
    %68 = vector.broadcast %67 : vector<128x1xf32> to vector<128x128xf32>
    %69 = arith.subf %65, %68 : vector<128x128xf32>
    %70 = math.exp %69 : vector<128x128xf32>
    %cst_22 = arith.constant dense<0.000000e+00> : vector<128xf32>
    %71 = vector.multi_reduction <add>, %70, %cst_22 [1] : vector<128x128xf32> to vector<128xf32>
    %72 = vector.shape_cast %71 : vector<128xf32> to vector<128x1xf32>
    %73 = tpu.reciprocal %72 {approx = true} : vector<128x1xf32> -> vector<128x1xf32>
    %74 = vector.broadcast %73 : vector<128x1xf32> to vector<128x128xf32>
    %75 = arith.mulf %70, %74 : vector<128x128xf32>
    %76 = arith.truncf %75 : vector<128x128xf32> to vector<128x128xbf16>
    %cst_23 = arith.constant dense<0.000000e+00> : vector<128x64xf32>
    %77 = tpu.matmul %76, %63, %cst_23 {dimension_numbers = #tpu.dot_dimension_numbers<[1], [0], [0], [1], [0, 0, 1, 1], [], []>} : vector<128x128xbf16>, vector<128x64xbf16>, vector<128x64xf32> -> vector<128x64xf32>
    %78 = arith.truncf %77 : vector<128x64xf32> to vector<128x64xbf16>
    %c128 = arith.constant 128 : index
    %c0_24 = arith.constant 0 : index
    %79 = vector.load %arg4[%c128, %c0_24] : memref<384x384xbf16, #tpu.memory_space<vmem>>, vector<64x384xbf16>
    %cst_25 = arith.constant dense<0.000000e+00> : vector<128x384xf32>
    %80 = tpu.matmul %78, %79, %cst_25 {dimension_numbers = #tpu.dot_dimension_numbers<[1], [0], [0], [1], [0, 0, 1, 1], [], []>} : vector<128x64xbf16>, vector<64x384xbf16>, vector<128x384xf32> -> vector<128x384xf32>
    %81 = arith.addf %60, %80 : vector<128x384xf32>
    %82 = vector.extract_strided_slice %7 {offsets = [0, 192], sizes = [128, 64], strides = [1, 1]} : vector<128x384xbf16> to vector<128x64xbf16>
    %83 = vector.extract_strided_slice %8 {offsets = [0, 192], sizes = [128, 64], strides = [1, 1]} : vector<128x384xbf16> to vector<128x64xbf16>
    %84 = vector.extract_strided_slice %9 {offsets = [0, 192], sizes = [128, 64], strides = [1, 1]} : vector<128x384xbf16> to vector<128x64xbf16>
    %cst_26 = arith.constant dense<0.000000e+00> : vector<128x128xf32>
    %85 = tpu.matmul %82, %83, %cst_26 {dimension_numbers = #tpu.dot_dimension_numbers<[1], [1], [0], [0], [0, 0, 1, 0], [], []>} : vector<128x64xbf16>, vector<128x64xbf16>, vector<128x128xf32> -> vector<128x128xf32>
    %86 = arith.addf %85, %17 : vector<128x128xf32>
    %cst_27 = arith.constant dense<0xFF800000> : vector<128xf32>
    %87 = vector.multi_reduction <maximumf>, %86, %cst_27 [1] : vector<128x128xf32> to vector<128xf32>
    %88 = vector.shape_cast %87 : vector<128xf32> to vector<128x1xf32>
    %89 = vector.broadcast %88 : vector<128x1xf32> to vector<128x128xf32>
    %90 = arith.subf %86, %89 : vector<128x128xf32>
    %91 = math.exp %90 : vector<128x128xf32>
    %cst_28 = arith.constant dense<0.000000e+00> : vector<128xf32>
    %92 = vector.multi_reduction <add>, %91, %cst_28 [1] : vector<128x128xf32> to vector<128xf32>
    %93 = vector.shape_cast %92 : vector<128xf32> to vector<128x1xf32>
    %94 = tpu.reciprocal %93 {approx = true} : vector<128x1xf32> -> vector<128x1xf32>
    %95 = vector.broadcast %94 : vector<128x1xf32> to vector<128x128xf32>
    %96 = arith.mulf %91, %95 : vector<128x128xf32>
    %97 = arith.truncf %96 : vector<128x128xf32> to vector<128x128xbf16>
    %cst_29 = arith.constant dense<0.000000e+00> : vector<128x64xf32>
    %98 = tpu.matmul %97, %84, %cst_29 {dimension_numbers = #tpu.dot_dimension_numbers<[1], [0], [0], [1], [0, 0, 1, 1], [], []>} : vector<128x128xbf16>, vector<128x64xbf16>, vector<128x64xf32> -> vector<128x64xf32>
    %99 = arith.truncf %98 : vector<128x64xf32> to vector<128x64xbf16>
    %c192 = arith.constant 192 : index
    %c0_30 = arith.constant 0 : index
    %100 = vector.load %arg4[%c192, %c0_30] : memref<384x384xbf16, #tpu.memory_space<vmem>>, vector<64x384xbf16>
    %cst_31 = arith.constant dense<0.000000e+00> : vector<128x384xf32>
    %101 = tpu.matmul %99, %100, %cst_31 {dimension_numbers = #tpu.dot_dimension_numbers<[1], [0], [0], [1], [0, 0, 1, 1], [], []>} : vector<128x64xbf16>, vector<64x384xbf16>, vector<128x384xf32> -> vector<128x384xf32>
    %102 = arith.addf %81, %101 : vector<128x384xf32>
    %103 = vector.extract_strided_slice %7 {offsets = [0, 256], sizes = [128, 64], strides = [1, 1]} : vector<128x384xbf16> to vector<128x64xbf16>
    %104 = vector.extract_strided_slice %8 {offsets = [0, 256], sizes = [128, 64], strides = [1, 1]} : vector<128x384xbf16> to vector<128x64xbf16>
    %105 = vector.extract_strided_slice %9 {offsets = [0, 256], sizes = [128, 64], strides = [1, 1]} : vector<128x384xbf16> to vector<128x64xbf16>
    %cst_32 = arith.constant dense<0.000000e+00> : vector<128x128xf32>
    %106 = tpu.matmul %103, %104, %cst_32 {dimension_numbers = #tpu.dot_dimension_numbers<[1], [1], [0], [0], [0, 0, 1, 0], [], []>} : vector<128x64xbf16>, vector<128x64xbf16>, vector<128x128xf32> -> vector<128x128xf32>
    %107 = arith.addf %106, %17 : vector<128x128xf32>
    %cst_33 = arith.constant dense<0xFF800000> : vector<128xf32>
    %108 = vector.multi_reduction <maximumf>, %107, %cst_33 [1] : vector<128x128xf32> to vector<128xf32>
    %109 = vector.shape_cast %108 : vector<128xf32> to vector<128x1xf32>
    %110 = vector.broadcast %109 : vector<128x1xf32> to vector<128x128xf32>
    %111 = arith.subf %107, %110 : vector<128x128xf32>
    %112 = math.exp %111 : vector<128x128xf32>
    %cst_34 = arith.constant dense<0.000000e+00> : vector<128xf32>
    %113 = vector.multi_reduction <add>, %112, %cst_34 [1] : vector<128x128xf32> to vector<128xf32>
    %114 = vector.shape_cast %113 : vector<128xf32> to vector<128x1xf32>
    %115 = tpu.reciprocal %114 {approx = true} : vector<128x1xf32> -> vector<128x1xf32>
    %116 = vector.broadcast %115 : vector<128x1xf32> to vector<128x128xf32>
    %117 = arith.mulf %112, %116 : vector<128x128xf32>
    %118 = arith.truncf %117 : vector<128x128xf32> to vector<128x128xbf16>
    %cst_35 = arith.constant dense<0.000000e+00> : vector<128x64xf32>
    %119 = tpu.matmul %118, %105, %cst_35 {dimension_numbers = #tpu.dot_dimension_numbers<[1], [0], [0], [1], [0, 0, 1, 1], [], []>} : vector<128x128xbf16>, vector<128x64xbf16>, vector<128x64xf32> -> vector<128x64xf32>
    %120 = arith.truncf %119 : vector<128x64xf32> to vector<128x64xbf16>
    %c256 = arith.constant 256 : index
    %c0_36 = arith.constant 0 : index
    %121 = vector.load %arg4[%c256, %c0_36] : memref<384x384xbf16, #tpu.memory_space<vmem>>, vector<64x384xbf16>
    %cst_37 = arith.constant dense<0.000000e+00> : vector<128x384xf32>
    %122 = tpu.matmul %120, %121, %cst_37 {dimension_numbers = #tpu.dot_dimension_numbers<[1], [0], [0], [1], [0, 0, 1, 1], [], []>} : vector<128x64xbf16>, vector<64x384xbf16>, vector<128x384xf32> -> vector<128x384xf32>
    %123 = arith.addf %102, %122 : vector<128x384xf32>
    %124 = vector.extract_strided_slice %7 {offsets = [0, 320], sizes = [128, 64], strides = [1, 1]} : vector<128x384xbf16> to vector<128x64xbf16>
    %125 = vector.extract_strided_slice %8 {offsets = [0, 320], sizes = [128, 64], strides = [1, 1]} : vector<128x384xbf16> to vector<128x64xbf16>
    %126 = vector.extract_strided_slice %9 {offsets = [0, 320], sizes = [128, 64], strides = [1, 1]} : vector<128x384xbf16> to vector<128x64xbf16>
    %cst_38 = arith.constant dense<0.000000e+00> : vector<128x128xf32>
    %127 = tpu.matmul %124, %125, %cst_38 {dimension_numbers = #tpu.dot_dimension_numbers<[1], [1], [0], [0], [0, 0, 1, 0], [], []>} : vector<128x64xbf16>, vector<128x64xbf16>, vector<128x128xf32> -> vector<128x128xf32>
    %128 = arith.addf %127, %17 : vector<128x128xf32>
    %cst_39 = arith.constant dense<0xFF800000> : vector<128xf32>
    %129 = vector.multi_reduction <maximumf>, %128, %cst_39 [1] : vector<128x128xf32> to vector<128xf32>
    %130 = vector.shape_cast %129 : vector<128xf32> to vector<128x1xf32>
    %131 = vector.broadcast %130 : vector<128x1xf32> to vector<128x128xf32>
    %132 = arith.subf %128, %131 : vector<128x128xf32>
    %133 = math.exp %132 : vector<128x128xf32>
    %cst_40 = arith.constant dense<0.000000e+00> : vector<128xf32>
    %134 = vector.multi_reduction <add>, %133, %cst_40 [1] : vector<128x128xf32> to vector<128xf32>
    %135 = vector.shape_cast %134 : vector<128xf32> to vector<128x1xf32>
    %136 = tpu.reciprocal %135 {approx = true} : vector<128x1xf32> -> vector<128x1xf32>
    %137 = vector.broadcast %136 : vector<128x1xf32> to vector<128x128xf32>
    %138 = arith.mulf %133, %137 : vector<128x128xf32>
    %139 = arith.truncf %138 : vector<128x128xf32> to vector<128x128xbf16>
    %cst_41 = arith.constant dense<0.000000e+00> : vector<128x64xf32>
    %140 = tpu.matmul %139, %126, %cst_41 {dimension_numbers = #tpu.dot_dimension_numbers<[1], [0], [0], [1], [0, 0, 1, 1], [], []>} : vector<128x128xbf16>, vector<128x64xbf16>, vector<128x64xf32> -> vector<128x64xf32>
    %141 = arith.truncf %140 : vector<128x64xf32> to vector<128x64xbf16>
    %c320 = arith.constant 320 : index
    %c0_42 = arith.constant 0 : index
    %142 = vector.load %arg4[%c320, %c0_42] : memref<384x384xbf16, #tpu.memory_space<vmem>>, vector<64x384xbf16>
    %cst_43 = arith.constant dense<0.000000e+00> : vector<128x384xf32>
    %143 = tpu.matmul %141, %142, %cst_43 {dimension_numbers = #tpu.dot_dimension_numbers<[1], [0], [0], [1], [0, 0, 1, 1], [], []>} : vector<128x64xbf16>, vector<64x384xbf16>, vector<128x384xf32> -> vector<128x384xf32>
    %144 = arith.addf %123, %143 : vector<128x384xf32>
    %c0_44 = arith.constant 0 : index
    %c0_45 = arith.constant 0 : index
    %145 = vector.load %arg5[%c0_44, %c0_45] : memref<1x384xf32, #tpu.memory_space<vmem>>, vector<1x384xf32>
    %146 = vector.broadcast %145 : vector<1x384xf32> to vector<128x384xf32>
    %147 = arith.addf %144, %146 : vector<128x384xf32>
    %148 = arith.truncf %147 : vector<128x384xf32> to vector<128x384xbf16>
    %c0_46 = arith.constant 0 : index
    %c0_47 = arith.constant 0 : index
    %c0_48 = arith.constant 0 : index
    %149 = vector.load %arg6[%c0_46, %c0_47, %c0_48] : memref<1x128x384xbf16, #tpu.memory_space<vmem>>, vector<1x128x384xbf16>
    %150 = vector.shape_cast %149 : vector<1x128x384xbf16> to vector<128x384xbf16>
    %151 = vector.shape_cast %148 : vector<128x384xbf16> to vector<1x128x384xbf16>
    tpu.vector_store %arg6[%c0_46, %c0_47, %c0_48], %151 {strides = array<i32>} : memref<1x128x384xbf16, #tpu.memory_space<vmem>>, vector<1x128x384xbf16>,
    return
  }
  func.func @transform_0(%arg0: i32, %arg1: i32) -> (i32, i32, i32) {
    %c0_i32 = arith.constant 0 : i32
    %c0_i32_0 = arith.constant 0 : i32
    %c0_i32_1 = arith.constant 0 : i32
    return %arg0, %c0_i32, %c0_i32_0 : i32, i32, i32
  }
  func.func @transform_1(%arg0: i32, %arg1: i32) -> (i32, i32) {
    %c0_i32 = arith.constant 0 : i32
    %c0_i32_0 = arith.constant 0 : i32
    %c0_i32_1 = arith.constant 0 : i32
    return %c0_i32, %c0_i32_0 : i32, i32
  }
  func.func @transform_2(%arg0: i32, %arg1: i32) -> (i32, i32) {
    %c0_i32 = arith.constant 0 : i32
    %c0_i32_0 = arith.constant 0 : i32
    %c0_i32_1 = arith.constant 0 : i32
    return %c0_i32, %c0_i32_0 : i32, i32
  }
  func.func @transform_3(%arg0: i32, %arg1: i32) -> (i32, i32) {
    %c0_i32 = arith.constant 0 : i32
    %c0_i32_0 = arith.constant 0 : i32
    %c0_i32_1 = arith.constant 0 : i32
    return %c0_i32, %c0_i32_0 : i32, i32
  }
  func.func @transform_4(%arg0: i32, %arg1: i32) -> (i32, i32, i32) {
    %c0_i32 = arith.constant 0 : i32
    %c0_i32_0 = arith.constant 0 : i32
    return %arg0, %arg1, %c0_i32 : i32, i32, i32
  }
}

</mosaic_0001>

<bundles_post_ra>
// kernel: multi_head_attention_forward.1
= control target key start
LH: loop header
LB: loop body
LE: loop exit
PB: predicated region body
PF: predicated region fallthrough
CT: control target
= control target key end

     0   :  { %9 = vsyncpa [#allocation3], 0  ;;  %s13938_s0 = inlined_call_operand.vmem [shape: bf16[2,128,384], index: 0, kind: input, shape index: {}]   ;;  %s13939_s1 = inlined_call_operand.vmem [shape: bf16[384,1152], index: 1, kind: input, shape index: {}]   ;;  %s13940_s2 = inlined_call_operand.vmem [shape: bf16[384,384], index: 2, kind: input, shape index: {}]   ;;  %s13941_s3 = inlined_call_operand.vmem [shape: f32[1,384], index: 3, kind: input, shape index: {}]   ;;  %s13942_s4 = inlined_call_operand.hbm [shape: bf16[2,128,384], index: 4, kind: output, shape index: {}]  }
   0x1   :  { %11 = vsyncpa [#allocation3 + $0x1], 0  ;;  %s10892_s15 = smov 0   ;;  %s10894_s16 = smov 0  }
   0x2   :  { %s10896_s17 = smov 0   ;;  %s10898_s18 = smov 0  }
   0x3   :  { %s10900_s19 = smov 0   ;;  %s10902_s20 = smov 0  }
   0x4 LB: > { %s8013_s21 = sadd.s32 4294967295, %s10859_s20   ;;  %s8014_s22 = sadd.s32 4294967294, %s10859_s20   ;;  %s10859_s20 = sphi %s10902_s20, %s17_s20   ;;  %s10855_s19 = sphi %s10900_s19, %s14190_s19   ;;  %s10851_s18 = sphi %s10898_s18, %s14189_s18   ;;  %s10847_s17 = sphi %s10896_s17, %s14188_s17   ;;  %s10843_s16 = sphi %s10894_s16, %s14187_s16   ;;  %s10839_s15 = sphi %s10892_s15, %s14186_s15  }
   0x5   : > { %s29_s23 = sadd.s32 1, %s10855_s19  ;;  %s127_s24 = sadd.s32 1, %s10847_s17 }
   0x6   : > { %p31_p0 = scmp.ge.s32.totalorder %s29_s23, 2  ;;  %p137_p1 = scmp.ne.s32.totalorder %s10847_s17, %s10843_s16 }
   0x7   : > { %p138_p2 = scmp.eq.s32.totalorder %s8013_s21, 1  ;;  %p143_p3 = scmp.ne.s32.totalorder %s10843_s16, %s10839_s15 }
   0x8   : > { %s14192_s23 = smov (%p31_p0, %s29_s23), 0  ;;  %p144_p5 = scmp.eq.s32.totalorder %s8014_s22, 1 }
   0x9   : > { %p10932_p4 = por %p138_p2, %p137_p1  ;;  %s122_s26 = ssub.s32 %s10855_s19, %s14192_s23 }
   0xa   : > { %p8017_p6 = scmp.ge.s32.totalorder %s10859_s20, 1  ;;  %p125_p7 = scmp.eq.s32.totalorder %s122_s26, 0 }
   0xb   : > { %p10939_p8 = por %p144_p5, %p143_p3  ;;  %p179_p9 = scmp.lt.s32.totalorder %s10859_s20, 3 }
   0xc   : > { %s10945_s28 = scalar_select %p125_p7, %s10847_s17, %s127_s24  }
   0xd   : > { %p180_p10 = pnand %p8017_p6, %p179_p9 }
   0xf   : > { %183 = sbr.rel (%p180_p10) target bundleno = 5557 (0x15b5), region = 36 }
  0x16   : > { %v9933_v0 = vld [vmem:[%s13939_s1 + $0x4] ss:$36 sps:$4 sm:$0xff]   ;;  %v13943_v2 = vmov 0   ;;  %v9939_v5 = vld [vmem:[%s13939_s1 + $0x4c] ss:$36 sps:$4 sm:$0xff]   ;;  %p205_p11 = scmp.lt.s32.totalorder %s10851_s18, 1 }
  0x17   : > { %v9935_v1 = vld [vmem:[%s13939_s1 + $0x484] ss:$36 sps:$4 sm:$0xff]   ;;  %1861 = vmatprep.mubr.bf16.mxu1 %v13943_v2  ;;  %1716 = vmatprep.subr.bf16.mxu0 %v9933_v0  ;;  %v9941_v6 = vld [vmem:[%s13939_s1 + $0x4cc] ss:$36 sps:$4 sm:$0xff]   ;;  %v9945_v9 = vld [vmem:[%s13939_s1 + $0x94] ss:$36 sps:$4 sm:$0xff]  }
  0x18   : > { %v9937_v3 = vld [vmem:[%s13939_s1] ss:$36 sps:$4 sm:$0xff]   ;;  %1829 = vmatprep.subr.bf16.mxu1 %v9935_v1  ;;  %v9943_v7 = vld [vmem:[%s13939_s1 + $0x48] ss:$36 sps:$4 sm:$0xff]   ;;  %v9947_v10 = vld [vmem:[%s13939_s1 + $0x514] ss:$36 sps:$4 sm:$0xff]  }
  0x19   : > { %v9938_v4 = vld [vmem:[%s13939_s1 + $0x480] ss:$36 sps:$4 sm:$0xff]   ;;  %1717 = vmatpush1.bf16.msra.mxu0 %v9937_v3  ;;  %v9944_v8 = vld [vmem:[%s13939_s1 + $0x4c8] ss:$36 sps:$4 sm:$0xff]   ;;  %v9949_v11 = vld [vmem:[%s13939_s1 + $0x90] ss:$36 sps:$4 sm:$0xff]  }
  0x1a   : > { %1830 = vmatpush1.bf16.msra.mxu1 %v9938_v4  ;;  %1718 = vmatprep.subr.bf16.mxu0 %v9939_v5  ;;  %v9950_v12 = vld [vmem:[%s13939_s1 + $0x510] ss:$36 sps:$4 sm:$0xff]   ;;  %v9951_v13 = vld [vmem:[%s13939_s1 + $0xdc] ss:$36 sps:$4 sm:$0xff]   ;;  %v9957_v17 = vld [vmem:[%s13939_s1 + $0x124] ss:$36 sps:$4 sm:$0xff]  }
  0x1b   : > { %1831 = vmatprep.subr.bf16.mxu1 %v9941_v6  ;;  %v9953_v14 = vld [vmem:[%s13939_s1 + $0x55c] ss:$36 sps:$4 sm:$0xff]   ;;  %v9959_v18 = vld [vmem:[%s13939_s1 + $0x5a4] ss:$36 sps:$4 sm:$0xff]   ;;  %s206_s7 = scalar_select %p205_p11, %s10851_s18, 1  ;;  %vm2937_vm0 = vcmask 523264  }
  0x1c   : > { %v9955_v15 = vld [vmem:[%s13939_s1 + $0xd8] ss:$36 sps:$4 sm:$0xff]   ;;  %v9961_v19 = vld [vmem:[%s13939_s1 + $0x120] ss:$36 sps:$4 sm:$0xff]   ;;  %v9963_v21 = vld [vmem:[%s13939_s1 + $0x16c] ss:$36 sps:$4 sm:$0xff]  }
  0x1d   : > { %1719 = vmatpush1.bf16.msra.mxu0 %v9943_v7  ;;  %v9956_v16 = vld [vmem:[%s13939_s1 + $0x558] ss:$36 sps:$4 sm:$0xff]   ;;  %v9962_v20 = vld [vmem:[%s13939_s1 + $0x5a0] ss:$36 sps:$4 sm:$0xff]   ;;  %v9965_v22 = vld [vmem:[%s13939_s1 + $0x5ec] ss:$36 sps:$4 sm:$0xff]  }
  0x1e   : > { %1832 = vmatpush1.bf16.msra.mxu1 %v9944_v8  ;;  %1720 = vmatprep.subr.bf16.mxu0 %v9945_v9  ;;  %s9871_s22 = smul.u32 192, %s206_s7  ;;  %v9967_v23 = vld [vmem:[%s13939_s1 + $0x168] ss:$36 sps:$4 sm:$0xff]   ;;  %v9969_v25 = vld [vmem:[%s13939_s1 + $0x1b4] ss:$36 sps:$4 sm:$0xff]   ;;  %s202_s10 = sand.u32 1, %s10843_s16  }
  0x1f   : > { %1833 = vmatprep.subr.bf16.mxu1 %v9947_v10  ;;  %v9968_v24 = vld [vmem:[%s13939_s1 + $0x5e8] ss:$36 sps:$4 sm:$0xff]   ;;  %v9971_v26 = vld [vmem:[%s13939_s1 + $0x634] ss:$36 sps:$4 sm:$0xff]   ;;  %v9975_v29 = vld [vmem:[%s13939_s1 + $0x1fc] ss:$36 sps:$4 sm:$0xff]  }
  0x20   : > { %s11031_s11 = scalar_lea.vmem %s13938_s0, %s9871_s22  ;;  %v9973_v27 = vld [vmem:[%s13939_s1 + $0x1b0] ss:$36 sps:$4 sm:$0xff]   ;;  %v9977_v30 = vld [vmem:[%s13939_s1 + $0x67c] ss:$36 sps:$4 sm:$0xff]   ;;  %v9981_v33 = vld [vmem:[%s13939_s1 + $0x244] ss:$36 sps:$4 sm:$0xff]  }
  0x21   : > { %1721 = vmatpush1.bf16.msra.mxu0 %v9949_v11  ;;  %v9974_v28 = vld [vmem:[%s13939_s1 + $0x630] ss:$36 sps:$4 sm:$0xff]   ;;  %v9979_v31 = vld [vmem:[%s13939_s1 + $0x1f8] ss:$36 sps:$4 sm:$0xff]   ;;  %v9984_v36 = vld [vmem:[%s13939_s1 + $0x8] ss:$36 sps:$4 sm:$0xff]  }
  0x22   : > { %1834 = vmatpush1.bf16.msra.mxu1 %v9950_v12  ;;  %1722 = vmatprep.subr.bf16.mxu0 %v9951_v13  ;;  %v9980_v32 = vld [vmem:[%s13939_s1 + $0x678] ss:$36 sps:$4 sm:$0xff]   ;;  %v9986_v34 = vld [vmem:[%s13939_s1 + $0xc] ss:$36 sps:$4 sm:$0xff]   ;;  %v9983_v35 = vld [vmem:[%s11031_s11 + $0x8] ss:$12 sps:$4 sm:$0xff]  }
  0x23   : > { %1835 = vmatprep.subr.bf16.mxu1 %v9953_v14  ;;  %v9987_v37 = vld [vmem:[%s13939_s1 + $0x240] ss:$36 sps:$4 sm:$0xff]   ;;  %v9988_v38 = vld [vmem:[%s13939_s1 + $0x28c] ss:$36 sps:$4 sm:$0xff]   ;;  %v9992_v39 = vld [vmem:[%s13939_s1 + $0x54] ss:$36 sps:$4 sm:$0xff]  }
  0x24   : > { %v9990_v40 = vld [vmem:[%s13939_s1 + $0x50] ss:$36 sps:$4 sm:$0xff]   ;;  %v9993_v41 = vld [vmem:[%s13939_s1 + $0x288] ss:$36 sps:$4 sm:$0xff]   ;;  %v9999_v43 = vld [vmem:[%s13939_s1 + $0x9c] ss:$36 sps:$4 sm:$0xff]  }
  0x25   : > { %1723 = vmatpush1.bf16.msra.mxu0 %v9955_v15  ;;  %v9994_v42 = vld [vmem:[%s13939_s1 + $0x2d4] ss:$36 sps:$4 sm:$0xff]   ;;  %v9996_v44 = vld [vmem:[%s11031_s11 + $0x20] ss:$12 sps:$4 sm:$0xff]   ;;  %v10005_v48 = vld [vmem:[%s13939_s1 + $0xe4] ss:$36 sps:$4 sm:$0xff]  }
  0x26   : > { %1836 = vmatpush1.bf16.msra.mxu1 %v9956_v16  ;;  %1724 = vmatprep.subr.bf16.mxu0 %v9957_v17  ;;  %v9997_v45 = vld [vmem:[%s13939_s1 + $0x98] ss:$36 sps:$4 sm:$0xff]   ;;  %v10000_v46 = vld [vmem:[%s13939_s1 + $0x2d0] ss:$36 sps:$4 sm:$0xff]   ;;  %v10003_v49 = vld [vmem:[%s13939_s1 + $0xe0] ss:$36 sps:$4 sm:$0xff]  }
  0x27   : > { %1837 = vmatprep.subr.bf16.mxu1 %v9959_v18  ;;  %v10001_v47 = vld [vmem:[%s13939_s1 + $0x31c] ss:$36 sps:$4 sm:$0xff]   ;;  %v10007_v51 = vld [vmem:[%s13939_s1 + $0x364] ss:$36 sps:$4 sm:$0xff]   ;;  %v10012_v52 = vld [vmem:[%s13939_s1 + $0x12c] ss:$36 sps:$4 sm:$0xff]  }
  0x28   : > { %v10006_v50 = vld [vmem:[%s13939_s1 + $0x318] ss:$36 sps:$4 sm:$0xff]   ;;  %v10010_v54 = vld [vmem:[%s13939_s1 + $0x128] ss:$36 sps:$4 sm:$0xff]   ;;  %v10013_v55 = vld [vmem:[%s13939_s1 + $0x360] ss:$36 sps:$4 sm:$0xff]  }
  0x29   : > { %1725 = vmatpush1.bf16.msra.mxu0 %v9961_v19  ;;  %v10009_v53 = vld [vmem:[%s11031_s11 + $0x38] ss:$12 sps:$4 sm:$0xff]   ;;  %v10014_v57 = vld [vmem:[%s13939_s1 + $0x3ac] ss:$36 sps:$4 sm:$0xff]   ;;  %v10025_v62 = vld [vmem:[%s13939_s1 + $0x1bc] ss:$36 sps:$4 sm:$0xff]  }
  0x2a   : > { %1838 = vmatpush1.bf16.msra.mxu1 %v9962_v20  ;;  %1726 = vmatprep.subr.bf16.mxu0 %v9963_v21  ;;  %v11117_v56 = vld [vmem:[%s11031_s11 + $0x4] ss:$12 sps:$4 sm:$0xff]   ;;  %v10018_v58 = vld [vmem:[%s13939_s1 + $0x174] ss:$36 sps:$4 sm:$0xff]   ;;  %v10019_v60 = vld [vmem:[%s13939_s1 + $0x3a8] ss:$36 sps:$4 sm:$0xff]  }
  0x2b   : > { %1839 = vmatprep.subr.bf16.mxu1 %v9965_v22  ;;  %1748 = vmatprep.mubr.bf16.mxu0 %v11117_v56  ;;  %v10016_v59 = vld [vmem:[%s13939_s1 + $0x170] ss:$36 sps:$4 sm:$0xff]   ;;  %v10023_v0 = vld [vmem:[%s13939_s1 + $0x1b8] ss:$36 sps:$4 sm:$0xff]   ;;  %v10031_v4 = vld [vmem:[%s13939_s1 + $0x204] ss:$36 sps:$4 sm:$0xff]  }
  0x2c   : > { %v10020_v61 = vld [vmem:[%s13939_s1 + $0x3f4] ss:$36 sps:$4 sm:$0xff]   ;;  %v10022_v63 = vld [vmem:[%s11031_s11 + $0x50] ss:$12 sps:$4 sm:$0xff]   ;;  %v10029_v5 = vld [vmem:[%s13939_s1 + $0x200] ss:$36 sps:$4 sm:$0xff]  }
  0x2d   : > { %1727 = vmatpush1.bf16.msra.mxu0 %v9967_v23  ;;  %v10026_v1 = vld [vmem:[%s13939_s1 + $0x3f0] ss:$36 sps:$4 sm:$0xff]   ;;  %v10027_v3 = vld [vmem:[%s13939_s1 + $0x43c] ss:$36 sps:$4 sm:$0xff]   ;;  %v10037_v11 = vld [vmem:[%s13939_s1 + $0x248] ss:$36 sps:$4 sm:$0xff]  }
  0x2e   : > { %1840 = vmatpush1.bf16.msra.mxu1 %v9968_v24  ;;  %1728 = vmatprep.subr.bf16.mxu0 %v9969_v25  ;;  %v10032_v6 = vld [vmem:[%s13939_s1 + $0x438] ss:$36 sps:$4 sm:$0xff]   ;;  %v11159_v7 = vld [vmem:[%s11031_s11] ss:$12 sps:$4 sm:$0xff]   ;;  %v10036_v10 = vld [vmem:[%s11031_s11 + $0x68] ss:$12 sps:$4 sm:$0xff]  }
  0x2f   : > { %1841 = vmatprep.subr.bf16.mxu1 %v9971_v26  ;;  %v10039_v8 = vld [vmem:[%s13939_s1 + $0x24c] ss:$36 sps:$4 sm:$0xff]   ;;  %v10042_v9 = vld [vmem:[%s13939_s1 + $0x14] ss:$36 sps:$4 sm:$0xff]   ;;  %v10048_v14 = vld [vmem:[%s13939_s1 + $0x5c] ss:$36 sps:$4 sm:$0xff]  }
  0x30   : > { %v10040_v12 = vld [vmem:[%s13939_s1 + $0x10] ss:$36 sps:$4 sm:$0xff]   ;;  %v11182_v15 = vld [vmem:[%s11031_s11 + $0x1c] ss:$12 sps:$4 sm:$0xff]   ;;  %v11192_v18 = vld [vmem:[%s11031_s11 + $0x18] ss:$12 sps:$4 sm:$0xff]  }
  0x31   : > { %1729 = vmatpush1.bf16.msra.mxu0 %v9973_v27  ;;  %v10045_v13 = vld [vmem:[%s13939_s1 + $0x294] ss:$36 sps:$4 sm:$0xff]   ;;  %v10055_v19 = vld [vmem:[%s13939_s1 + $0x2dc] ss:$36 sps:$4 sm:$0xff]   ;;  %v10058_v20 = vld [vmem:[%s13939_s1 + $0xa4] ss:$36 sps:$4 sm:$0xff]  }
  0x32   : > { %1842 = vmatpush1.bf16.msra.mxu1 %v9974_v28  ;;  %1730 = vmatprep.subr.bf16.mxu0 %v9975_v29  ;;  %v10043_v16 = vld [vmem:[%s13939_s1 + $0x290] ss:$36 sps:$4 sm:$0xff]   ;;  %v10046_v17 = vld [vmem:[%s13939_s1 + $0x58] ss:$36 sps:$4 sm:$0xff]   ;;  %v10052_v21 = vld [vmem:[%s11031_s11 + $0x80] ss:$12 sps:$4 sm:$0xff]  }
  0x33   : > { %1843 = vmatprep.subr.bf16.mxu1 %v9977_v30  ;;  %v10053_v22 = vld [vmem:[%s13939_s1 + $0x2d8] ss:$36 sps:$4 sm:$0xff]   ;;  %v10056_v23 = vld [vmem:[%s13939_s1 + $0xa0] ss:$36 sps:$4 sm:$0xff]   ;;  %v10064_v25 = vld [vmem:[%s13939_s1 + $0xec] ss:$36 sps:$4 sm:$0xff]  }
  0x34   : > { %v10061_v24 = vld [vmem:[%s13939_s1 + $0x324] ss:$36 sps:$4 sm:$0xff]   ;;  %v11216_v26 = vld [vmem:[%s11031_s11 + $0x34] ss:$12 sps:$4 sm:$0xff]   ;;  %v10071_v29 = vld [vmem:[%s13939_s1 + $0x36c] ss:$36 sps:$4 sm:$0xff]  }
  0x35   : > { %1731 = vmatpush1.bf16.msra.mxu0 %v9979_v31  ;;  %v10059_v27 = vld [vmem:[%s13939_s1 + $0x320] ss:$36 sps:$4 sm:$0xff]   ;;  %v10062_v28 = vld [vmem:[%s13939_s1 + $0xe8] ss:$36 sps:$4 sm:$0xff]   ;;  %v10074_v30 = vld [vmem:[%s13939_s1 + $0x134] ss:$36 sps:$4 sm:$0xff]  }
  0x36   : > { %1844 = vmatpush1.bf16.msra.mxu1 %v9980_v32  ;;  %1732 = vmatprep.subr.bf16.mxu0 %v9981_v33  ;;  %v11234_v31 = vld [vmem:[%s11031_s11 + $0x30] ss:$12 sps:$4 sm:$0xff]   ;;  %v10068_v32 = vld [vmem:[%s11031_s11 + $0x98] ss:$12 sps:$4 sm:$0xff]   ;;  %v10069_v33 = vld [vmem:[%s13939_s1 + $0x368] ss:$36 sps:$4 sm:$0xff]  }
  0x37   : > { %1942 = vmatprep.subr.bf16.mxu1 %v9986_v34  ;;  %v10072_v34 = vld [vmem:[%s13939_s1 + $0x130] ss:$36 sps:$4 sm:$0xff]   ;;  %s9870_s12 = smul.u32 192, %s202_s10  ;;  %s10864_s22 = smov [#allocation2]  }
  0x38   : > { %s9872_s14 = smul.u32 3072, %s10851_s18  ;;  %s13892_s18 = scalar_lea.sflag [#allocation3], %s202_s10 }
  0x39   : > { %1862 = vmatmul.mubr.bf16.vlgmr.msra.gmra.mrb[0].mxu1 %v9983_v35  ;;  %1733 = vmatpush1.bf16.msra.mxu0 %v9987_v37  ;;  %v10077_v35 = vld [vmem:[%s13939_s1 + $0x3b4] ss:$36 sps:$4 sm:$0xff]   ;;  %s13801_s13 = scalar_lea.vmem [#allocation2], %s9870_s12  ;;  %s10785_s30 = sshll.u32 %s10864_s22, 4  ;;  %s10786_s30 = int_to_ptr.vmem [resolvable:$false] %s10785_s30 }
  0x3a   : > { %1943 = vmatpush1.bf16.msra.mxu1 %v9984_v36  ;;  %1734 = vmatprep.subr.bf16.mxu0 %v9988_v38  ;;  %v10080_v36 = vld [vmem:[%s13939_s1 + $0x17c] ss:$36 sps:$4 sm:$0xff]   ;;  %v11250_v37 = vld [vmem:[%s11031_s11 + $0x4c] ss:$12 sps:$4 sm:$0xff]   ;;  %v10075_v38 = vld [vmem:[%s13939_s1 + $0x3b0] ss:$36 sps:$4 sm:$0xff]   ;;  %s13884_s26 = scalar_lea.hbm %s13942_s4, %s9872_s14 }
  0x3b   : > { %1944 = vmatprep.subr.bf16.mxu1 %v9992_v39  ;;  %1871 = vmatprep.mubr.bf16.mxu1 %v13943_v2  ;;  %v10078_v39 = vld [vmem:[%s13939_s1 + $0x178] ss:$36 sps:$4 sm:$0xff]   ;;  %s7940_s21 = sshll.u32 %s13801_s13, 4  ;;  %s10787_s5 = scalar_lea.vmem %s10786_s30, 6144  ;;  %s13886_s21 = int_to_ptr.vmem [resolvable:$true] %s7940_s21 }
  0x3c   : > { %s10781_s29 = scalar_lea.vmem %s13886_s21, 3072  ;;  %p10788_p1 = scmp.lt.s32.totalorder %s13886_s21, %s10786_s30 }
  0x3d   : > { %1735 = vmatpush1.bf16.msra.mxu0 %v9993_v41  ;;  %v10090_v41 = vld [vmem:[%s13939_s1 + $0x1c4] ss:$36 sps:$4 sm:$0xff]   ;;  %p10782_p12 = scmp.ne.s32.totalorder %s13886_s21, %s10781_s29  ;;  %p10789_p2 = scmp.lt.s32.totalorder %s10787_s5, %s10781_s29 }
  0x3e   : > { %1945 = vmatpush1.bf16.msra.mxu1 %v9990_v40  ;;  %1736 = vmatprep.subr.bf16.mxu0 %v9994_v42  ;;  %v10087_v40 = vld [vmem:[%s13939_s1 + $0x3fc] ss:$36 sps:$4 sm:$0xff]   ;;  %v11268_v42 = vld [vmem:[%s11031_s11 + $0x48] ss:$12 sps:$4 sm:$0xff]  }
  0x3f   : > { %1946 = vmatprep.subr.bf16.mxu1 %v9999_v43  ;;  %v11271_v43 = vld [vmem:[%s11031_s11 + $0xb0] ss:$12 sps:$4 sm:$0xff]   ;;  %p10783_p13 = pnand %p10782_p12, %p10932_p4  ;;  %p10790_p3 = por %p10789_p2, %p10788_p1 }
  0x41   : > { %1872 = vmatmul.mubr.bf16.gmra.mrb[4].mxu1 %v9996_v44  ;;  %1737 = vmatpush1.bf16.msra.mxu0 %v10000_v46  ;;  %v10085_v44 = vld [vmem:[%s13939_s1 + $0x3f8] ss:$36 sps:$4 sm:$0xff]   ;;  %v10093_v46 = vld [vmem:[%s13939_s1 + $0x444] ss:$36 sps:$4 sm:$0xff]   ;;  %p10784_p0 = pneg %p10783_p13 }
  0x42   : > { %1947 = vmatpush1.bf16.msra.mxu1 %v9997_v45  ;;  %1738 = vmatprep.subr.bf16.mxu0 %v10001_v47  ;;  %v10088_v45 = vld [vmem:[%s13939_s1 + $0x1c0] ss:$36 sps:$4 sm:$0xff]   ;;  %v10096_v47 = vld [vmem:[%s13939_s1 + $0x20c] ss:$36 sps:$4 sm:$0xff]  }
  0x43   : > { %1948 = vmatprep.subr.bf16.mxu1 %v10005_v48  ;;  %1881 = vmatprep.mubr.bf16.mxu1 %v13943_v2  ;;  %v11286_v48 = vld [vmem:[%s11031_s11 + $0x64] ss:$12 sps:$4 sm:$0xff]   ;;  %p10791_p5 = pnand %p10790_p3, %p10784_p0 }
  0x45   : > { %1739 = vmatpush1.bf16.msra.mxu0 %v10006_v50  ;;  %v10094_v50 = vld [vmem:[%s13939_s1 + $0x208] ss:$36 sps:$4 sm:$0xff]  }
  0x46   : > { %1949 = vmatpush1.bf16.msra.mxu1 %v10003_v49  ;;  %1740 = vmatprep.subr.bf16.mxu0 %v10007_v51  ;;  %v10091_v49 = vld [vmem:[%s13939_s1 + $0x440] ss:$36 sps:$4 sm:$0xff]   ;;  %v10102_v51 = vld [vmem:[%s13939_s1 + $0x48c] ss:$36 sps:$4 sm:$0xff]  }
  0x47   : > { %1950 = vmatprep.subr.bf16.mxu1 %v10012_v52  ;;  %v10105_v52 = vld [vmem:[%s13939_s1 + $0x254] ss:$36 sps:$4 sm:$0xff]  }
  0x49   : > { %1882 = vmatmul.mubr.bf16.gmra.mrb[8].mxu1 %v10009_v53  ;;  %1741 = vmatpush1.bf16.msra.mxu0 %v10013_v55  ;;  %v11305_v53 = vld [vmem:[%s11031_s11 + $0x60] ss:$12 sps:$4 sm:$0xff]   ;;  %v10103_v55 = vld [vmem:[%s13939_s1 + $0x250] ss:$36 sps:$4 sm:$0xff]  }
  0x4a   : > { %1951 = vmatpush1.bf16.msra.mxu1 %v10010_v54  ;;  %1742 = vmatprep.subr.bf16.mxu0 %v10014_v57  ;;  %v10100_v54 = vld [vmem:[%s13939_s1 + $0x488] ss:$36 sps:$4 sm:$0xff]   ;;  %v10108_v57 = vld [vmem:[%s13939_s1 + $0x29c] ss:$36 sps:$4 sm:$0xff]  }
  0x4b   : > { %1952 = vmatprep.subr.bf16.mxu1 %v10018_v58  ;;  %1891 = vmatprep.mubr.bf16.mxu1 %v13943_v2  ;;  %v11317_v58 = vld [vmem:[%s11031_s11 + $0x7c] ss:$12 sps:$4 sm:$0xff]  }
  0x4d   : > { %1743 = vmatpush1.bf16.msra.mxu0 %v10019_v60  ;;  %v10106_v60 = vld [vmem:[%s13939_s1 + $0x298] ss:$36 sps:$4 sm:$0xff]  }
  0x4e   : > { %1953 = vmatpush1.bf16.msra.mxu1 %v10016_v59  ;;  %1744 = vmatprep.subr.bf16.mxu0 %v10020_v61  ;;  %v10114_v59 = vld [vmem:[%s13939_s1 + $0x4d4] ss:$36 sps:$4 sm:$0xff]  }
  0x4f   : > { %1954 = vmatprep.subr.bf16.mxu1 %v10025_v62  ;;  %v10112_v61 = vld [vmem:[%s13939_s1 + $0x4d0] ss:$36 sps:$4 sm:$0xff]   ;;  %v10117_v62 = vld [vmem:[%s13939_s1 + $0x2e4] ss:$36 sps:$4 sm:$0xff]  }
  0x51   : > { %1892 = vmatmul.mubr.bf16.gmra.mrb[12].mxu1 %v10022_v63  ;;  %1745 = vmatpush1.bf16.msra.mxu0 %v10026_v1  ;;  %v10126_v63 = vld [vmem:[%s13939_s1 + $0x51c] ss:$36 sps:$4 sm:$0xff]  }
  0x52   : > { %1955 = vmatpush1.bf16.msra.mxu1 %v10023_v0  ;;  %1746 = vmatprep.subr.bf16.mxu0 %v10027_v3  ;;  %v11339_v0 = vld [vmem:[%s11031_s11 + $0x78] ss:$12 sps:$4 sm:$0xff]   ;;  %v11345_v3 = vld [vmem:[%s11031_s11 + $0x94] ss:$12 sps:$4 sm:$0xff]  }
  0x53   : > { %1956 = vmatprep.subr.bf16.mxu1 %v10031_v4  ;;  %1901 = vmatprep.mubr.bf16.mxu1 %v13943_v2  ;;  %v10115_v1 = vld [vmem:[%s13939_s1 + $0x2e0] ss:$36 sps:$4 sm:$0xff]   ;;  %v10120_v4 = vld [vmem:[%s13939_s1 + $0x32c] ss:$36 sps:$4 sm:$0xff]  }
  0x55   : > { %1747 = vmatpush1.bf16.msra.mxu0 %v10032_v6  ;;  %v10138_v6 = vld [vmem:[%s13939_s1 + $0x564] ss:$36 sps:$4 sm:$0xff]  }
  0x56   : > { %1957 = vmatpush1.bf16.msra.mxu1 %v10029_v5  ;;  %2168 = vmatprep.subr.bf16.mxu0 %v10042_v9  ;;  %v10124_v5 = vld [vmem:[%s13939_s1 + $0x518] ss:$36 sps:$4 sm:$0xff]  }
  0x57   : > { %1958 = vmatprep.subr.bf16.mxu1 %v10039_v8  ;;  %v10118_v8 = vld [vmem:[%s13939_s1 + $0x328] ss:$36 sps:$4 sm:$0xff]   ;;  %v10129_v9 = vld [vmem:[%s13939_s1 + $0x374] ss:$36 sps:$4 sm:$0xff]  }
  0x58   : > { %1749 = vmatmul.mubr.bf16.vlgmr.msra.gmra.mrb[0].mxu0 %v11159_v7 }
  0x59   : > { %1902 = vmatmul.mubr.bf16.gmra.mrb[16].mxu1 %v10036_v10  ;;  %2169 = vmatpush1.bf16.msra.mxu0 %v10040_v12  ;;  %v10136_v10 = vld [vmem:[%s13939_s1 + $0x560] ss:$36 sps:$4 sm:$0xff]   ;;  %v10127_v12 = vld [vmem:[%s13939_s1 + $0x370] ss:$36 sps:$4 sm:$0xff]  }
  0x5a   : > { %1959 = vmatpush1.bf16.msra.mxu1 %v10037_v11  ;;  %2170 = vmatprep.subr.bf16.mxu0 %v10048_v14  ;;  %v11370_v11 = vld [vmem:[%s11031_s11 + $0x90] ss:$12 sps:$4 sm:$0xff]  }
  0x5b   : > { %1960 = vmatprep.subr.bf16.mxu1 %v10045_v13  ;;  %1758 = vmatprep.mubr.bf16.mxu0 %v11182_v15  ;;  %v11376_v13 = vld [vmem:[%s11031_s11 + $0xac] ss:$12 sps:$4 sm:$0xff]   ;;  %v10132_v14 = vld [vmem:[%s13939_s1 + $0x3bc] ss:$36 sps:$4 sm:$0xff]  }
  0x5c   : > { %1911 = vmatprep.mubr.bf16.mxu1 %v13943_v2 }
  0x5d   : > { %2171 = vmatpush1.bf16.msra.mxu0 %v10046_v17  ;;  %v10130_v17 = vld [vmem:[%s13939_s1 + $0x3b8] ss:$36 sps:$4 sm:$0xff]  }
  0x5e   : > { %1961 = vmatpush1.bf16.msra.mxu1 %v10043_v16  ;;  %2172 = vmatprep.subr.bf16.mxu0 %v10058_v20  ;;  %v10147_v16 = vld [vmem:[%s13939_s1 + $0x5ac] ss:$36 sps:$4 sm:$0xff]   ;;  %v10150_v20 = vld [vmem:[%s13939_s1 + $0x5f4] ss:$36 sps:$4 sm:$0xff]  }
  0x5f   : > { %1962 = vmatprep.subr.bf16.mxu1 %v10055_v19  ;;  %v10145_v19 = vld [vmem:[%s13939_s1 + $0x5a8] ss:$36 sps:$4 sm:$0xff]  }
  0x60   : > { %1759 = vmatmul.mubr.bf16.gmra.mrb[4].mxu0 %v11192_v18 }
  0x61   : > { %1912 = vmatmul.mubr.bf16.gmra.mrb[20].mxu1 %v10052_v21  ;;  %2173 = vmatpush1.bf16.msra.mxu0 %v10056_v23  ;;  %v10141_v21 = vld [vmem:[%s13939_s1 + $0x404] ss:$36 sps:$4 sm:$0xff]  }
  0x62   : > { %1963 = vmatpush1.bf16.msra.mxu1 %v10053_v22  ;;  %2174 = vmatprep.subr.bf16.mxu0 %v10064_v25  ;;  %v11401_v22 = vld [vmem:[%s11031_s11 + $0xa8] ss:$12 sps:$4 sm:$0xff]   ;;  %v10139_v23 = vld [vmem:[%s13939_s1 + $0x400] ss:$36 sps:$4 sm:$0xff]  }
  0x63   : > { %1964 = vmatprep.subr.bf16.mxu1 %v10061_v24  ;;  %1768 = vmatprep.mubr.bf16.mxu0 %v11216_v26  ;;  %v10144_v24 = vld [vmem:[%s13939_s1 + $0x44c] ss:$36 sps:$4 sm:$0xff]  }
  0x64   : > { %1921 = vmatprep.mubr.bf16.mxu1 %v13943_v2  ;;  %v10148_v25 = vld [vmem:[%s13939_s1 + $0x5f0] ss:$36 sps:$4 sm:$0xff]  }
  0x65   : > { %2175 = vmatpush1.bf16.msra.mxu0 %v10062_v28  ;;  %v10142_v28 = vld [vmem:[%s13939_s1 + $0x448] ss:$36 sps:$4 sm:$0xff]  }
  0x66   : > { %1965 = vmatpush1.bf16.msra.mxu1 %v10059_v27  ;;  %2176 = vmatprep.subr.bf16.mxu0 %v10074_v30  ;;  %v10153_v27 = vld [vmem:[%s13939_s1 + $0x63c] ss:$36 sps:$4 sm:$0xff]  }
  0x67   : > { %1966 = vmatprep.subr.bf16.mxu1 %v10071_v29  ;;  %v10159_v29 = vld [vmem:[%s13939_s1 + $0x494] ss:$36 sps:$4 sm:$0xff]  }
  0x68   : > { %1769 = vmatmul.mubr.bf16.gmra.mrb[8].mxu0 %v11234_v31  ;;  %v10151_v30 = vld [vmem:[%s13939_s1 + $0x638] ss:$36 sps:$4 sm:$0xff]  }
  0x69   : > { %1922 = vmatmul.mubr.bf16.gmra.mrb[24].mxu1 %v10068_v32  ;;  %2177 = vmatpush1.bf16.msra.mxu0 %v10072_v34  ;;  %v10156_v32 = vld [vmem:[%s13939_s1 + $0x684] ss:$36 sps:$4 sm:$0xff]   ;;  %v10165_v34 = vld [vmem:[%s13939_s1 + $0x4dc] ss:$36 sps:$4 sm:$0xff]  }
  0x6a   : > { %1967 = vmatpush1.bf16.msra.mxu1 %v10069_v33  ;;  %2178 = vmatprep.subr.bf16.mxu0 %v10080_v36  ;;  %v10157_v33 = vld [vmem:[%s13939_s1 + $0x490] ss:$36 sps:$4 sm:$0xff]   ;;  %v10163_v36 = vld [vmem:[%s13939_s1 + $0x4d8] ss:$36 sps:$4 sm:$0xff]  }
  0x6b   : > { %1968 = vmatprep.subr.bf16.mxu1 %v10077_v35  ;;  %1778 = vmatprep.mubr.bf16.mxu0 %v11250_v37  ;;  %v10162_v35 = vld [vmem:[%s13939_s1 + $0x1c] ss:$36 sps:$4 sm:$0xff]  }
  0x6c   : > { %1931 = vmatprep.mubr.bf16.mxu1 %v13943_v2 }
  0x6d   : > { %2179 = vmatpush1.bf16.msra.mxu0 %v10078_v39  ;;  %v10175_v39 = vld [vmem:[%s13939_s1 + $0x568] ss:$36 sps:$4 sm:$0xff]  }
  0x6e   : > { %1969 = vmatpush1.bf16.msra.mxu1 %v10075_v38  ;;  %2180 = vmatprep.subr.bf16.mxu0 %v10090_v41  ;;  %v10169_v38 = vld [vmem:[%s13939_s1 + $0x520] ss:$36 sps:$4 sm:$0xff]   ;;  %v10181_v41 = vld [vmem:[%s13939_s1 + $0x5b0] ss:$36 sps:$4 sm:$0xff]  }
  0x6f   : > { %1970 = vmatprep.subr.bf16.mxu1 %v10087_v40  ;;  %v10183_v40 = vld [vmem:[%s13939_s1 + $0x5b4] ss:$36 sps:$4 sm:$0xff]  }
  0x70   : > { %1779 = vmatmul.mubr.bf16.gmra.mrb[12].mxu0 %v11268_v42 }
  0x71   : > { %1932 = vmatmul.mubr.bf16.gmra.mrb[28].mxu1 %v11271_v43  ;;  %2181 = vmatpush1.bf16.msra.mxu0 %v10088_v45  ;;  %v10193_v45 = vld [vmem:[%s13939_s1 + $0x640] ss:$36 sps:$4 sm:$0xff]  }
  0x72   : > { %1971 = vmatpush1.bf16.msra.mxu1 %v10085_v44  ;;  %2182 = vmatprep.subr.bf16.mxu0 %v10096_v47  ;;  %v10195_v44 = vld [vmem:[%s13939_s1 + $0x644] ss:$36 sps:$4 sm:$0xff]   ;;  %v10160_v47 = vld [vmem:[%s13939_s1 + $0x18] ss:$36 sps:$4 sm:$0xff]  }
  0x73   : > { %1972 = vmatprep.subr.bf16.mxu1 %v10093_v46  ;;  %1788 = vmatprep.mubr.bf16.mxu0 %v11286_v48  ;;  %v10229_v46 = vld [vmem:[%s13939_s1 + $0x260] ss:$36 sps:$4 sm:$0xff]  }
  0x74   : > { %1974 = vmatprep.mubr.bf16.mxu1 %v11117_v56 }
  0x75   : > { %2183 = vmatpush1.bf16.msra.mxu0 %v10094_v50  ;;  %v10174_v50 = vld [vmem:[%s13939_s1 + $0xac] ss:$36 sps:$4 sm:$0xff]  }
  0x76   : > { %1973 = vmatpush1.bf16.msra.mxu1 %v10091_v49  ;;  %2184 = vmatprep.subr.bf16.mxu0 %v10105_v52  ;;  %v11511_v49 = vld [vmem:[%s11031_s11 + $0x8] ss:$12 sps:$4 sm:$0xff]  }
  0x77   : > { %2055 = vmatprep.subr.bf16.mxu1 %v10102_v51  ;;  %v10172_v51 = vld [vmem:[%s13939_s1 + $0xa8] ss:$36 sps:$4 sm:$0xff]   ;;  %v10180_v52 = vld [vmem:[%s13939_s1 + $0xf4] ss:$36 sps:$4 sm:$0xff]  }
  0x78   : > { %1789 = vmatmul.mubr.bf16.gmra.mrb[16].mxu0 %v11305_v53 }
  0x79   : > { %1975 = vmatmul.mubr.bf16.vlgmr.msra.gmra.mrb[32].mxu1 %v11159_v7  ;;  %2185 = vmatpush1.bf16.msra.mxu0 %v10103_v55  ;;  %v10186_v55 = vld [vmem:[%s13939_s1 + $0x13c] ss:$36 sps:$4 sm:$0xff]  }
  0x7a   : > { %2056 = vmatpush1.bf16.msra.mxu1 %v10100_v54  ;;  %2186 = vmatprep.subr.bf16.mxu0 %v10108_v57  ;;  %v11530_v54 = vld [vmem:[%s11031_s11 + $0x20] ss:$12 sps:$4 sm:$0xff]   ;;  %v10184_v57 = vld [vmem:[%s13939_s1 + $0x138] ss:$36 sps:$4 sm:$0xff]  }
  0x7b   : > { %1798 = vmatprep.mubr.bf16.mxu0 %v11317_v58  ;;  %1984 = vmatprep.mubr.bf16.mxu1 %v11182_v15 }
  0x7c   : > { %2057 = vmatprep.subr.bf16.mxu1 %v10114_v59  ;;  %v10190_v59 = vld [vmem:[%s13939_s1 + $0x180] ss:$36 sps:$4 sm:$0xff]  }
  0x7d   : > { %2187 = vmatpush1.bf16.msra.mxu0 %v10106_v60  ;;  %v11549_v60 = vld [vmem:[%s11031_s11 + $0x38] ss:$12 sps:$4 sm:$0xff]  }
  0x7e   : > { %2058 = vmatpush1.bf16.msra.mxu1 %v10112_v61  ;;  %2188 = vmatprep.subr.bf16.mxu0 %v10117_v62  ;;  %v10198_v61 = vld [vmem:[%s13939_s1 + $0x1cc] ss:$36 sps:$4 sm:$0xff]  }
  0x7f   : > { %2059 = vmatprep.subr.bf16.mxu1 %v10126_v63  ;;  %v10196_v62 = vld [vmem:[%s13939_s1 + $0x1c8] ss:$36 sps:$4 sm:$0xff]   ;;  %v10204_v63 = vld [vmem:[%s13939_s1 + $0x214] ss:$36 sps:$4 sm:$0xff]  }
  0x80   : > { %1799 = vmatmul.mubr.bf16.gmra.mrb[20].mxu0 %v11339_v0 }
  0x81   : > { %1985 = vmatmul.mubr.bf16.gmra.mrb[36].mxu1 %v11192_v18  ;;  %2189 = vmatpush1.bf16.msra.mxu0 %v10115_v1  ;;  %v11568_v1 = vld [vmem:[%s11031_s11 + $0x50] ss:$12 sps:$4 sm:$0xff]  }
  0x82   : > { %1808 = vmatprep.mubr.bf16.mxu0 %v11345_v3  ;;  %2190 = vmatprep.subr.bf16.mxu0 %v10120_v4  ;;  %v10205_v4 = vld [vmem:[%s13939_s1 + $0x258] ss:$36 sps:$4 sm:$0xff]  }
  0x83   : > { %1994 = vmatprep.mubr.bf16.mxu1 %v11216_v26  ;;  %2060 = vmatpush1.bf16.msra.mxu1 %v10124_v5  ;;  %v10210_v5 = vld [vmem:[%s13939_s1 + $0x2a4] ss:$36 sps:$4 sm:$0xff]  }
  0x84   : > { %2061 = vmatprep.subr.bf16.mxu1 %v10138_v6  ;;  %v10230_v6 = vld [vmem:[%s13939_s1 + $0x20] ss:$36 sps:$4 sm:$0xff]  }
  0x85   : > { %2191 = vmatpush1.bf16.msra.mxu0 %v10118_v8  ;;  %v10231_v8 = vld [vmem:[%s13939_s1 + $0x2a8] ss:$36 sps:$4 sm:$0xff]  }
  0x86   : > { %2192 = vmatprep.subr.bf16.mxu0 %v10129_v9  ;;  %v10208_v9 = vld [vmem:[%s13939_s1 + $0x2a0] ss:$36 sps:$4 sm:$0xff]  }
  0x87   : > { %2062 = vmatpush1.bf16.msra.mxu1 %v10136_v10  ;;  %v11593_v10 = vld [vmem:[%s11031_s11 + $0x68] ss:$12 sps:$4 sm:$0xff]  }
  0x88   : > { %1809 = vmatmul.mubr.bf16.gmra.mrb[24].mxu0 %v11370_v11  ;;  %2063 = vmatprep.subr.bf16.mxu1 %v10147_v16  ;;  %v10211_v16 = vld [vmem:[%s13939_s1 + $0x2e8] ss:$36 sps:$4 sm:$0xff]  }
  0x89   : > { %1995 = vmatmul.mubr.bf16.gmra.mrb[40].mxu1 %v11234_v31  ;;  %2193 = vmatpush1.bf16.msra.mxu0 %v10127_v12  ;;  %v10213_v12 = vld [vmem:[%s13939_s1 + $0x2ec] ss:$36 sps:$4 sm:$0xff]  }
  0x8a   : > { %1818 = vmatprep.mubr.bf16.mxu0 %v11376_v13  ;;  %2194 = vmatprep.subr.bf16.mxu0 %v10132_v14  ;;  %v10232_v14 = vld [vmem:[%s13939_s1 + $0x68] ss:$36 sps:$4 sm:$0xff]  }
  0x8b   : > { %2004 = vmatprep.mubr.bf16.mxu1 %v11250_v37  ;;  %2064 = vmatpush1.bf16.msra.mxu1 %v10145_v19  ;;  %v10233_v19 = vld [vmem:[%s13939_s1 + $0x2f0] ss:$36 sps:$4 sm:$0xff]  }
  0x8c   : > { %2065 = vmatprep.subr.bf16.mxu1 %v10150_v20  ;;  %v11615_v20 = vld [vmem:[%s11031_s11 + $0x80] ss:$12 sps:$4 sm:$0xff]  }
  0x8d   : > { %2195 = vmatpush1.bf16.msra.mxu0 %v10130_v17  ;;  %v10216_v17 = vld [vmem:[%s13939_s1 + $0x334] ss:$36 sps:$4 sm:$0xff]  }
  0x8e   : > { %2196 = vmatprep.subr.bf16.mxu0 %v10141_v21  ;;  %v10234_v21 = vld [vmem:[%s13939_s1 + $0xb0] ss:$36 sps:$4 sm:$0xff]  }
  0x8f   : > { %2066 = vmatpush1.bf16.msra.mxu1 %v10148_v25  ;;  %v10219_v25 = vld [vmem:[%s13939_s1 + $0x37c] ss:$36 sps:$4 sm:$0xff]  }
  0x90   : > { %1819 = vmatmul.mubr.bf16.gmra.mrb[28].mxu0 %v11401_v22  ;;  %2067 = vmatprep.subr.bf16.mxu1 %v10153_v27  ;;  %v10217_v27 = vld [vmem:[%s13939_s1 + $0x378] ss:$36 sps:$4 sm:$0xff]  }
  0x91   : > { %2005 = vmatmul.mubr.bf16.gmra.mrb[44].mxu1 %v11268_v42  ;;  %2197 = vmatpush1.bf16.msra.mxu0 %v10139_v23  ;;  %v10214_v23 = vld [vmem:[%s13939_s1 + $0x330] ss:$36 sps:$4 sm:$0xff]  }
  0x92   : > { %2014 = vmatprep.mubr.bf16.mxu1 %v11286_v48  ;;  %2198 = vmatprep.subr.bf16.mxu0 %v10144_v24  ;;  %v10235_v24 = vld [vmem:[%s13939_s1 + $0x338] ss:$36 sps:$4 sm:$0xff]  }
  0x93   : > { %2200 = vmatprep.mubr.bf16.mxu0 %v11117_v56  ;;  %2068 = vmatpush1.bf16.msra.mxu1 %v10151_v30  ;;  %v10154_v56 = vld [vmem:[%s13939_s1 + $0x680] ss:$36 sps:$4 sm:$0xff]  }
  0x94   : > { %2069 = vmatprep.subr.bf16.mxu1 %v10156_v32  ;;  %v11643_v30 = vld [vmem:[%s11031_s11 + $0x98] ss:$12 sps:$4 sm:$0xff]  }
  0x95   : > { %2199 = vmatpush1.bf16.msra.mxu0 %v10142_v28  ;;  %v10222_v28 = vld [vmem:[%s13939_s1 + $0x3c4] ss:$36 sps:$4 sm:$0xff]  }
  0x96   : > { %2281 = vmatprep.subr.bf16.mxu0 %v10159_v29  ;;  %v10236_v29 = vld [vmem:[%s13939_s1 + $0xf8] ss:$36 sps:$4 sm:$0xff]   ;;  %v10237_v32 = vld [vmem:[%s13939_s1 + $0x380] ss:$36 sps:$4 sm:$0xff]  }
  0x97   : > { %2070 = vmatpush1.bf16.msra.mxu1 %v10154_v56  ;;  %v10225_v56 = vld [vmem:[%s13939_s1 + $0x40c] ss:$36 sps:$4 sm:$0xff]  }
  0x98   : > { %2201 = vmatmul.mubr.bf16.vlgmr.msra.gmra.mrb[32].mxu0 %v11159_v7  ;;  %v10171_v7 = vld [vmem:[%s13939_s1 + $0x524] ss:$36 sps:$4 sm:$0xff]   ;;  %2394 = vmatprep.subr.bf16.mxu1 %v10162_v35 }
  0x99   : > { %2015 = vmatmul.mubr.bf16.gmra.mrb[48].mxu1 %v11305_v53  ;;  %2210 = vmatprep.mubr.bf16.mxu0 %v11182_v15  ;;  %v10177_v15 = vld [vmem:[%s13939_s1 + $0x56c] ss:$36 sps:$4 sm:$0xff]  }
  0x9a   : > { %2024 = vmatprep.mubr.bf16.mxu1 %v11317_v58  ;;  %2282 = vmatpush1.bf16.msra.mxu0 %v10157_v33  ;;  %v10220_v33 = vld [vmem:[%s13939_s1 + $0x3c0] ss:$36 sps:$4 sm:$0xff]   ;;  %v10223_v35 = vld [vmem:[%s13939_s1 + $0x408] ss:$36 sps:$4 sm:$0xff]  }
  0x9b   : > { %2283 = vmatprep.subr.bf16.mxu0 %v10165_v34  ;;  %v10238_v34 = vld [vmem:[%s13939_s1 + $0x140] ss:$36 sps:$4 sm:$0xff]  }
  0x9e   : > { %2284 = vmatpush1.bf16.msra.mxu0 %v10163_v36  ;;  %v10228_v36 = vld [vmem:[%s13939_s1 + $0x454] ss:$36 sps:$4 sm:$0xff]  }
  0x9f   : > { %2285 = vmatprep.subr.bf16.mxu0 %v10171_v7  ;;  %v10239_v7 = vld [vmem:[%s13939_s1 + $0x3c8] ss:$36 sps:$4 sm:$0xff]  }
  0xa0   : > { %2211 = vmatmul.mubr.bf16.gmra.mrb[36].mxu0 %v11192_v18  ;;  %v10189_v18 = vld [vmem:[%s13939_s1 + $0x5fc] ss:$36 sps:$4 sm:$0xff]  }
  0xa1   : > { %2025 = vmatmul.mubr.bf16.gmra.mrb[52].mxu1 %v11339_v0  ;;  %2220 = vmatprep.mubr.bf16.mxu0 %v11216_v26  ;;  %v10187_v26 = vld [vmem:[%s13939_s1 + $0x5f8] ss:$36 sps:$4 sm:$0xff]  }
  0xa2   : > { %2034 = vmatprep.mubr.bf16.mxu1 %v11345_v3  ;;  %2286 = vmatpush1.bf16.msra.mxu0 %v10169_v38  ;;  %v10240_v38 = vld [vmem:[%s13939_s1 + $0x188] ss:$36 sps:$4 sm:$0xff]  }
  0xa3   : > { %2287 = vmatprep.subr.bf16.mxu0 %v10177_v15  ;;  %v10226_v15 = vld [vmem:[%s13939_s1 + $0x450] ss:$36 sps:$4 sm:$0xff]  }
  0xa6   : > { %2288 = vmatpush1.bf16.msra.mxu0 %v10175_v39  ;;  %v10241_v39 = vld [vmem:[%s13939_s1 + $0x410] ss:$36 sps:$4 sm:$0xff]  }
  0xa7   : > { %2289 = vmatprep.subr.bf16.mxu0 %v10183_v40  ;;  %v10247_v40 = vld [vmem:[%s13939_s1 + $0x49c] ss:$36 sps:$4 sm:$0xff]  }
  0xa8   : > { %2221 = vmatmul.mubr.bf16.gmra.mrb[40].mxu0 %v11234_v31  ;;  %v10201_v31 = vld [vmem:[%s13939_s1 + $0x68c] ss:$36 sps:$4 sm:$0xff]  }
  0xa9   : > { %2035 = vmatmul.mubr.bf16.gmra.mrb[56].mxu1 %v11370_v11  ;;  %2230 = vmatprep.mubr.bf16.mxu0 %v11250_v37  ;;  %v10199_v37 = vld [vmem:[%s13939_s1 + $0x688] ss:$36 sps:$4 sm:$0xff]  }
  0xaa   : > { %2044 = vmatprep.mubr.bf16.mxu1 %v11376_v13  ;;  %2290 = vmatpush1.bf16.msra.mxu0 %v10181_v41  ;;  %v10242_v41 = vld [vmem:[%s13939_s1 + $0x1d0] ss:$36 sps:$4 sm:$0xff]  }
  0xab   : > { %2291 = vmatprep.subr.bf16.mxu0 %v10189_v18  ;;  %v10245_v18 = vld [vmem:[%s13939_s1 + $0x498] ss:$36 sps:$4 sm:$0xff]  }
  0xae   : > { %2292 = vmatpush1.bf16.msra.mxu0 %v10187_v26  ;;  %v10243_v26 = vld [vmem:[%s13939_s1 + $0x458] ss:$36 sps:$4 sm:$0xff]  }
  0xaf   : > { %2293 = vmatprep.subr.bf16.mxu0 %v10195_v44  ;;  %v10250_v44 = vld [vmem:[%s13939_s1 + $0x4e4] ss:$36 sps:$4 sm:$0xff]  }
  0xb0   : > { %2231 = vmatmul.mubr.bf16.gmra.mrb[44].mxu0 %v11268_v42  ;;  %v10168_v42 = vld [vmem:[%s13939_s1 + $0x64] ss:$36 sps:$4 sm:$0xff]  }
  0xb1   : > { %2045 = vmatmul.mubr.bf16.gmra.mrb[60].mxu1 %v11401_v22  ;;  %2240 = vmatprep.mubr.bf16.mxu0 %v11286_v48  ;;  %v10166_v48 = vld [vmem:[%s13939_s1 + $0x60] ss:$36 sps:$4 sm:$0xff]  }
  0xb2   : > { %2087 = vmatprep.mubr.bf16.mxu1 %v13943_v2  ;;  %2294 = vmatpush1.bf16.msra.mxu0 %v10193_v45  ;;  %v11703_v45 = vld [vmem:[%s11031_s11] ss:$12 sps:$4 sm:$0xff]  }
  0xb3   : > { %2295 = vmatprep.subr.bf16.mxu0 %v10201_v31  ;;  %v11708_v31 = vld [vmem:[%s11031_s11 + $0x1c] ss:$12 sps:$4 sm:$0xff]  }
  0xb6   : > { %2296 = vmatpush1.bf16.msra.mxu0 %v10199_v37  ;;  %v10244_v37 = vld [vmem:[%s13939_s1 + $0x218] ss:$36 sps:$4 sm:$0xff]  }
  0xb7   : > { %8542 = vmatprep.subr.bf16.mxu0 %v10229_v46  ;;  %v10248_v46 = vld [vmem:[%s13939_s1 + $0x4e0] ss:$36 sps:$4 sm:$0xff]  }
  0xb8   : > { %2241 = vmatmul.mubr.bf16.gmra.mrb[48].mxu0 %v11305_v53  ;;  %v10178_v53 = vld [vmem:[%s13939_s1 + $0xf0] ss:$36 sps:$4 sm:$0xff]  }
  0xb9   : > { %2088 = vmatmul.mubr.bf16.vlgmr.msra.gmra.mrb[32].mxu1 %v11511_v49  ;;  %2250 = vmatprep.mubr.bf16.mxu0 %v11317_v58  ;;  %v10192_v58 = vld [vmem:[%s13939_s1 + $0x184] ss:$36 sps:$4 sm:$0xff]  }
  0xba   : > { %2395 = vmatpush1.bf16.msra.mxu1 %v10160_v47  ;;  %2097 = vmatprep.mubr.bf16.mxu1 %v13943_v2  ;;  %v10253_v47 = vld [vmem:[%s13939_s1 + $0x52c] ss:$36 sps:$4 sm:$0xff]  }
  0xbb   : > { %2396 = vmatprep.subr.bf16.mxu1 %v10168_v42  ;;  %v10251_v42 = vld [vmem:[%s13939_s1 + $0x528] ss:$36 sps:$4 sm:$0xff]  }
  0xbe   : > { %2397 = vmatpush1.bf16.msra.mxu1 %v10166_v48  ;;  %v10256_v48 = vld [vmem:[%s13939_s1 + $0x574] ss:$36 sps:$4 sm:$0xff]  }
  0xbf   : > { %2398 = vmatprep.subr.bf16.mxu1 %v10174_v50  ;;  %v10767_v50 = vld [vmem:[%s11031_s11 + $0x18] ss:$12 sps:$4 sm:$0xff]  }
  0xc0   : > { %2251 = vmatmul.mubr.bf16.gmra.mrb[52].mxu0 %v11339_v0  ;;  %v10202_v0 = vld [vmem:[%s13939_s1 + $0x210] ss:$36 sps:$4 sm:$0xff]  }
  0xc1   : > { %2098 = vmatmul.mubr.bf16.gmra.mrb[36].mxu1 %v11530_v54  ;;  %2260 = vmatprep.mubr.bf16.mxu0 %v11345_v3  ;;  %v10207_v3 = vld [vmem:[%s13939_s1 + $0x25c] ss:$36 sps:$4 sm:$0xff]  }
  0xc2   : > { %2399 = vmatpush1.bf16.msra.mxu1 %v10172_v51  ;;  %2107 = vmatprep.mubr.bf16.mxu1 %v13943_v2  ;;  %v10768_v51 = vld [vmem:[%s11031_s11 + $0x34] ss:$12 sps:$4 sm:$0xff]  }
  0xc3   : > { %2400 = vmatprep.subr.bf16.mxu1 %v10180_v52  ;;  %v10254_v52 = vld [vmem:[%s13939_s1 + $0x570] ss:$36 sps:$4 sm:$0xff]  }
  0xc6   : > { %2401 = vmatpush1.bf16.msra.mxu1 %v10178_v53  ;;  %v10259_v53 = vld [vmem:[%s13939_s1 + $0x5bc] ss:$36 sps:$4 sm:$0xff]  }
  0xc7   : > { %2402 = vmatprep.subr.bf16.mxu1 %v10186_v55  ;;  %v10257_v55 = vld [vmem:[%s13939_s1 + $0x5b8] ss:$36 sps:$4 sm:$0xff]  }
  0xc8   : > { %2261 = vmatmul.mubr.bf16.gmra.mrb[56].mxu0 %v11370_v11 }
  0xc9   : > { %2108 = vmatmul.mubr.bf16.gmra.mrb[40].mxu1 %v11549_v60  ;;  %2270 = vmatprep.mubr.bf16.mxu0 %v11376_v13 }
  0xca   : > { %2403 = vmatpush1.bf16.msra.mxu1 %v10184_v57  ;;  %2117 = vmatprep.mubr.bf16.mxu1 %v13943_v2  ;;  %v10262_v57 = vld [vmem:[%s13939_s1 + $0x604] ss:$36 sps:$4 sm:$0xff]  }
  0xcb   : > { %2404 = vmatprep.subr.bf16.mxu1 %v10192_v58  ;;  %v10769_v58 = vld [vmem:[%s11031_s11 + $0x30] ss:$12 sps:$4 sm:$0xff]  }
  0xce   : > { %2405 = vmatpush1.bf16.msra.mxu1 %v10190_v59  ;;  %v10770_v59 = vld [vmem:[%s11031_s11 + $0x4c] ss:$12 sps:$4 sm:$0xff]  }
  0xcf   : > { %2406 = vmatprep.subr.bf16.mxu1 %v10198_v61  ;;  %v10260_v61 = vld [vmem:[%s13939_s1 + $0x600] ss:$36 sps:$4 sm:$0xff]  }
  0xd0   : > { %2271 = vmatmul.mubr.bf16.gmra.mrb[60].mxu0 %v11401_v22 }
  0xd1   : > { %2118 = vmatmul.mubr.bf16.gmra.mrb[44].mxu1 %v11568_v1  ;;  %2313 = vmatprep.mubr.bf16.mxu0 %v13943_v2 }
  0xd2   : > { %2407 = vmatpush1.bf16.msra.mxu1 %v10196_v62  ;;  %2127 = vmatprep.mubr.bf16.mxu1 %v13943_v2 }
  0xd3   : > { %2408 = vmatprep.subr.bf16.mxu1 %v10204_v63  ;;  %v10265_v63 = vld [vmem:[%s13939_s1 + $0x64c] ss:$36 sps:$4 sm:$0xff]  }
  0xd6   : > { %2409 = vmatpush1.bf16.msra.mxu1 %v10202_v0 }
  0xd7   : > { %2410 = vmatprep.subr.bf16.mxu1 %v10207_v3 }
  0xd8   : > { %2314 = vmatmul.mubr.bf16.vlgmr.msra.gmra.mrb[32].mxu0 %v11511_v49 }
  0xd9   : > { %2128 = vmatmul.mubr.bf16.gmra.mrb[48].mxu1 %v11593_v10  ;;  %2323 = vmatprep.mubr.bf16.mxu0 %v13943_v2 }
  0xda   : > { %2411 = vmatpush1.bf16.msra.mxu1 %v10205_v4  ;;  %2137 = vmatprep.mubr.bf16.mxu1 %v13943_v2 }
  0xdb   : > { %2412 = vmatprep.subr.bf16.mxu1 %v10210_v5  ;;  %8543 = vmatpush3.bf16.msra.mxu0 %v10230_v6  ;;  %v10263_v5 = vld [vmem:[%s13939_s1 + $0x648] ss:$36 sps:$4 sm:$0xff]   ;;  %v10268_v6 = vld [vmem:[%s13939_s1 + $0x694] ss:$36 sps:$4 sm:$0xff]  }
  0xdc   : > { %8544 = vmatprep.subr.bf16.mxu0 %v10231_v8  ;;  %v11759_v8 = vld [vmem:[%s11031_s11 + $0xb0] ss:$12 sps:$4 sm:$0xff]  }
  0xde   : > { %2413 = vmatpush1.bf16.msra.mxu1 %v10208_v9  ;;  %v10772_v9 = vld [vmem:[%s11031_s11 + $0x48] ss:$12 sps:$4 sm:$0xff]  }
  0xdf   : > { %2414 = vmatprep.subr.bf16.mxu1 %v10213_v12  ;;  %8545 = vmatpush3.bf16.msra.mxu0 %v10232_v14  ;;  %v10773_v12 = vld [vmem:[%s11031_s11 + $0x64] ss:$12 sps:$4 sm:$0xff]  }
  0xe0   : > { %2324 = vmatmul.mubr.bf16.gmra.mrb[36].mxu0 %v11530_v54  ;;  %8546 = vmatprep.subr.bf16.mxu0 %v10233_v19  ;;  %v10266_v14 = vld [vmem:[%s13939_s1 + $0x690] ss:$36 sps:$4 sm:$0xff]  }
  0xe1   : > { %2138 = vmatmul.mubr.bf16.gmra.mrb[52].mxu1 %v11615_v20  ;;  %2333 = vmatprep.mubr.bf16.mxu0 %v13943_v2 }
  0xe2   : > { %2415 = vmatpush1.bf16.msra.mxu1 %v10211_v16  ;;  %2147 = vmatprep.mubr.bf16.mxu1 %v13943_v2 }
  0xe3   : > { %2416 = vmatprep.subr.bf16.mxu1 %v10216_v17  ;;  %8547 = vmatpush3.bf16.msra.mxu0 %v10234_v21  ;;  %v11771_v17 = vld [vmem:[%s13939_s1 + $0x4a0] ss:$36 sps:$4 sm:$0xff]  }
  0xe4   : > { %8548 = vmatprep.subr.bf16.mxu0 %v10235_v24  ;;  %v10774_v24 = vld [vmem:[%s11031_s11 + $0x60] ss:$12 sps:$4 sm:$0xff]  }
  0xe6   : > { %2417 = vmatpush1.bf16.msra.mxu1 %v10214_v23 }
  0xe7   : > { %2418 = vmatprep.subr.bf16.mxu1 %v10219_v25  ;;  %8549 = vmatpush3.bf16.msra.mxu0 %v10236_v29  ;;  %v10775_v25 = vld [vmem:[%s11031_s11 + $0x7c] ss:$12 sps:$4 sm:$0xff]  }
  0xe8   : > { %2334 = vmatmul.mubr.bf16.gmra.mrb[40].mxu0 %v11549_v60  ;;  %8550 = vmatprep.subr.bf16.mxu0 %v10237_v32 }
  0xe9   : > { %2148 = vmatmul.mubr.bf16.gmra.mrb[56].mxu1 %v11643_v30  ;;  %2343 = vmatprep.mubr.bf16.mxu0 %v13943_v2 }
  0xea   : > { %2419 = vmatpush1.bf16.msra.mxu1 %v10217_v27  ;;  %2157 = vmatprep.mubr.bf16.mxu1 %v13943_v2 }
  0xeb   : > { %2420 = vmatprep.subr.bf16.mxu1 %v10222_v28  ;;  %8551 = vmatpush3.bf16.msra.mxu0 %v10238_v34 }
  0xec   : > { %8552 = vmatprep.subr.bf16.mxu0 %v10239_v7 }
  0xee   : > { %2421 = vmatpush1.bf16.msra.mxu1 %v10220_v33  ;;  %v11783_v33 = vld [vmem:[%s11031_s11 + $0x78] ss:$12 sps:$4 sm:$0xff]  }
  0xef   : > { %2422 = vmatprep.subr.bf16.mxu1 %v10225_v56  ;;  %8553 = vmatpush3.bf16.msra.mxu0 %v10240_v38  ;;  %v11787_v56 = vld [vmem:[%s11031_s11 + $0x94] ss:$12 sps:$4 sm:$0xff]  }
  0xf0   : > { %2344 = vmatmul.mubr.bf16.gmra.mrb[44].mxu0 %v11568_v1  ;;  %8554 = vmatprep.subr.bf16.mxu0 %v10241_v39 }
  0xf1   : > { %2158 = vmatmul.mubr.bf16.gmra.mrb[60].mxu1 %v11271_v43  ;;  %2353 = vmatprep.mubr.bf16.mxu0 %v13943_v2  ;;  %v11683_v43 = vld [vmem:[%s11031_s11 + $0x4] ss:$12 sps:$4 sm:$0xff]  }
  0xf2   : > { %2423 = vmatpush1.bf16.msra.mxu1 %v10223_v35  ;;  %2426 = vmatprep.mubr.bf16.mxu1 %v11683_v43 }
  0xf3   : > { %2424 = vmatprep.subr.bf16.mxu1 %v10228_v36  ;;  %8555 = vmatpush3.bf16.msra.mxu0 %v10242_v41 }
  0xf4   : > { %8556 = vmatprep.subr.bf16.mxu0 %v10243_v26 }
  0xf6   : > { %2425 = vmatpush1.bf16.msra.mxu1 %v10226_v15 }
  0xf7   : > { %2507 = vmatprep.subr.bf16.mxu1 %v10247_v40  ;;  %8557 = vmatpush3.bf16.msra.mxu0 %v10244_v37 }
  0xf8   : > { %2354 = vmatmul.mubr.bf16.gmra.mrb[48].mxu0 %v11593_v10 }
  0xf9   : > { %2427 = vmatmul.mubr.bf16.vlgmr.msra.gmra.mrb[64].mxu1 %v11703_v45  ;;  %2363 = vmatprep.mubr.bf16.mxu0 %v13943_v2 }
  0xfa   : > { %2436 = vmatprep.mubr.bf16.mxu1 %v11708_v31  ;;  %2508 = vmatpush1.bf16.msra.mxu1 %v10245_v18 }
  0xfb   : > { %2509 = vmatprep.subr.bf16.mxu1 %v10250_v44 }
  0xfe   : > { %2510 = vmatpush1.bf16.msra.mxu1 %v10248_v46 }
  0xff   : > { %2511 = vmatprep.subr.bf16.mxu1 %v10253_v47 }
 0x100   : > { %2364 = vmatmul.mubr.bf16.gmra.mrb[52].mxu0 %v11615_v20 }
 0x101   : > { %2437 = vmatmul.mubr.bf16.gmra.mrb[68].mxu1 %v10767_v50  ;;  %2373 = vmatprep.mubr.bf16.mxu0 %v13943_v2 }
 0x102   : > { %2446 = vmatprep.mubr.bf16.mxu1 %v10768_v51  ;;  %2512 = vmatpush1.bf16.msra.mxu1 %v10251_v42 }
 0x103   : > { %2513 = vmatprep.subr.bf16.mxu1 %v10256_v48 }
 0x106   : > { %2514 = vmatpush1.bf16.msra.mxu1 %v10254_v52 }
 0x107   : > { %2515 = vmatprep.subr.bf16.mxu1 %v10259_v53 }
 0x108   : > { %2374 = vmatmul.mubr.bf16.gmra.mrb[56].mxu0 %v11643_v30 }
 0x109   : > { %2447 = vmatmul.mubr.bf16.gmra.mrb[72].mxu1 %v10769_v58  ;;  %2383 = vmatprep.mubr.bf16.mxu0 %v13943_v2 }
 0x10a   : > { %2456 = vmatprep.mubr.bf16.mxu1 %v10770_v59  ;;  %2516 = vmatpush1.bf16.msra.mxu1 %v10257_v55 }
 0x10b   : > { %2517 = vmatprep.subr.bf16.mxu1 %v10262_v57 }
 0x10c   : > { %v1863_v62 = vpop.f32.mrb[0].mxu1 }
 0x10d   : > { %v1865_v0 = vpop.f32.mrb[1].mxu1 }
 0x10e   : > { %v1867_v3 = vpop.f32.mrb[2].mxu1  ;;  %2518 = vmatpush1.bf16.msra.mxu1 %v10260_v61 }
 0x10f   : > { %v1869_v4 = vpop.f32.mrb[3].mxu1  ;;  %2519 = vmatprep.subr.bf16.mxu1 %v10265_v63 }
 0x110   : > { %2384 = vmatmul.mubr.bf16.gmra.mrb[60].mxu0 %v11759_v8 }
 0x111   : > { %2457 = vmatmul.mubr.bf16.gmra.mrb[76].mxu1 %v10772_v9  ;;  %2652 = vmatprep.mubr.bf16.mxu0 %v11683_v43 }
 0x112   : > { %2466 = vmatprep.mubr.bf16.mxu1 %v10773_v12  ;;  %2520 = vmatpush1.bf16.msra.mxu1 %v10263_v5 }
 0x113   : > { %2521 = vmatprep.subr.bf16.mxu1 %v10268_v6 }
 0x114   : > { %v1873_v16 = vpop.f32.mrb[4].mxu1 }
 0x115   : > { %v1875_v19 = vpop.f32.mrb[5].mxu1 }
 0x116   : > { %v1877_v21 = vpop.f32.mrb[6].mxu1  ;;  %2522 = vmatpush1.bf16.msra.mxu1 %v10266_v14 }
 0x117   : > { %v1879_v23 = vpop.f32.mrb[7].mxu1  ;;  %8886 = vmatprep.subr.bf16.mxu1 %v11771_v17 }
 0x118   : > { %2653 = vmatmul.mubr.bf16.vlgmr.msra.gmra.mrb[64].mxu0 %v11703_v45 }
 0x119   : > { %2467 = vmatmul.mubr.bf16.gmra.mrb[80].mxu1 %v10774_v24  ;;  %2660 = vmatprep.mubr.bf16.mxu0 %v11708_v31 }
 0x11a   : > { %2476 = vmatprep.mubr.bf16.mxu1 %v10775_v25 }
 0x11c   : > { %v1883_v27 = vpop.f32.mrb[8].mxu1 }
 0x11d   : > { %v1885_v28 = vpop.f32.mrb[9].mxu1 }
 0x11e   : > { %v11778_v29 = vpop.f32.mrb[10].mxu1 }
 0x11f   : > { %v11780_v32 = vpop.f32.mrb[11].mxu1 }
 0x120   : > { %2661 = vmatmul.mubr.bf16.gmra.mrb[68].mxu0 %v10767_v50 }
 0x121   : > { %2477 = vmatmul.mubr.bf16.gmra.mrb[84].mxu1 %v11783_v33  ;;  %2668 = vmatprep.mubr.bf16.mxu0 %v10768_v51 }
 0x122   : > { %2486 = vmatprep.mubr.bf16.mxu1 %v11787_v56 }
 0x124   : > { %v11790_v34 = vpop.f32.mrb[12].mxu1 }
 0x125   : > { %v11792_v35 = vpop.f32.mrb[13].mxu1 }
 0x126   : > { %v11794_v36 = vpop.f32.mrb[14].mxu1 }
 0x127   : > { %v11796_v7 = vpop.f32.mrb[15].mxu1 }
 0x128   : > { %2669 = vmatmul.mubr.bf16.gmra.mrb[72].mxu0 %v10769_v58 }
 0x129   : > { %2487 = vmatmul.mubr.bf16.gmra.mrb[88].mxu1 %v11370_v11  ;;  %2676 = vmatprep.mubr.bf16.mxu0 %v10770_v59  ;;  %v10270_v59 = vld [vmem:[%s13939_s1 + $0x4e8] ss:$36 sps:$4 sm:$0xff]  }
 0x12a   : > { %2496 = vmatprep.mubr.bf16.mxu1 %v11376_v13 }
 0x12b   : > { %v1750_v38 = vpop.f32.mrb[0].mxu0 }
 0x12c   : > { %v11800_v15 = vpop.f32.mrb[16].mxu1  ;;  %v1864_v39 = vadd.f32 %v1863_v62, %v1750_v38  ;;  %v1752_v43 = vpop.f32.mrb[1].mxu0 }
 0x12d   : > { %v11802_v40 = vpop.f32.mrb[17].mxu1  ;;  %v1866_v41 = vadd.f32 %v1865_v0, %v1752_v43  ;;  %v1754_v18 = vpop.f32.mrb[2].mxu0 }
 0x12e   : > { %v11804_v26 = vpop.f32.mrb[18].mxu1  ;;  %v1868_v44 = vadd.f32 %v1867_v3, %v1754_v18  ;;  %v1756_v45 = vpop.f32.mrb[3].mxu0  ;;  %v10271_v3 = vld [vmem:[%s13939_s1 + $0x530] ss:$36 sps:$4 sm:$0xff]  }
 0x12f   : > { %v11806_v31 = vpop.f32.mrb[19].mxu1  ;;  %v1870_v11 = vadd.f32 %v1869_v4, %v1756_v45 }
 0x130   : > { %v11808_v37 = vpack.c.bf16 %v1868_v44, %v1864_v39  ;;  %2677 = vmatmul.mubr.bf16.gmra.mrb[76].mxu0 %v10772_v9 }
 0x131   : > { %2497 = vmatmul.mubr.bf16.gmra.mrb[92].mxu1 %v11401_v22  ;;  %v11811_v13 = vpack.c.bf16 %v1870_v11, %v1866_v41  ;;  %2684 = vmatprep.mubr.bf16.mxu0 %v10773_v12 }
 0x132   : > { %2539 = vmatprep.mubr.bf16.mxu1 %v13943_v2 }
 0x133   : > { %14031 = vst [vmem:[#allocation5_spill] sm:$0xff] %v11811_v13  ;;  %v1760_v46 = vpop.f32.mrb[4].mxu0 }
 0x134   : > { %v11814_v47 = vpop.f32.mrb[20].mxu1  ;;  %v1874_v42 = vadd.f32 %v1873_v16, %v1760_v46  ;;  %v1762_v48 = vpop.f32.mrb[5].mxu0 }
 0x135   : > { %v11816_v50 = vpop.f32.mrb[21].mxu1  ;;  %v1876_v51 = vadd.f32 %v1875_v19, %v1762_v48  ;;  %v1764_v52 = vpop.f32.mrb[6].mxu0 }
 0x136   : > { %v11818_v53 = vpop.f32.mrb[22].mxu1  ;;  %v1878_v55 = vadd.f32 %v1877_v21, %v1764_v52  ;;  %v1766_v57 = vpop.f32.mrb[7].mxu0 }
 0x137   : > { %v11820_v22 = vpop.f32.mrb[23].mxu1  ;;  %v1880_v58 = vadd.f32 %v1879_v23, %v1766_v57  ;;  %v10272_v23 = vld [vmem:[%s13939_s1 + $0x578] ss:$36 sps:$4 sm:$0xff]  }
 0x138   : > { %v11825_v61 = vpack.c.bf16 %v1878_v55, %v1874_v42  ;;  %2685 = vmatmul.mubr.bf16.gmra.mrb[80].mxu0 %v10774_v24 }
 0x139   : > { %2540 = vmatmul.mubr.bf16.vlgmr.msra.gmra.mrb[64].mxu1 %v11511_v49  ;;  %v11828_v62 = vpack.c.bf16 %v1880_v58, %v1876_v51  ;;  %2692 = vmatprep.mubr.bf16.mxu0 %v10775_v25 }
 0x13a   : > { %2549 = vmatprep.mubr.bf16.mxu1 %v13943_v2  ;;  %8887 = vmatpush3.bf16.msra.mxu1 %v11771_v17 }
 0x13b   : > { %14032 = vst [vmem:[#allocation6_spill] sm:$0xff] %v11828_v62  ;;  %v1770_v63 = vpop.f32.mrb[8].mxu0  ;;  %8888 = vmatprep.subr.bf16.mxu1 %v10270_v59 }
 0x13c   : > { %v11832_v0 = vpop.f32.mrb[24].mxu1  ;;  %v1884_v4 = vadd.f32 %v1883_v27, %v1770_v63  ;;  %v1772_v5 = vpop.f32.mrb[9].mxu0  ;;  %v10276_v63 = vld [vmem:[%s13939_s1 + $0x698] ss:$36 sps:$4 sm:$0xff]  }
 0x13d   : > { %v11837_v6 = vpop.f32.mrb[25].mxu1  ;;  %v1886_v9 = vadd.f32 %v1885_v28, %v1772_v5  ;;  %v1774_v12 = vpop.f32.mrb[10].mxu0 }
 0x13e   : > { %v11839_v14 = vpop.f32.mrb[26].mxu1  ;;  %v1888_v16 = vadd.f32 %v11778_v29, %v1774_v12  ;;  %v1776_v19 = vpop.f32.mrb[11].mxu0  ;;  %8889 = vmatpush3.bf16.msra.mxu1 %v10270_v59  ;;  %v10273_v29 = vld [vmem:[%s13939_s1 + $0x5c0] ss:$36 sps:$4 sm:$0xff]  }
 0x13f   : > { %v11842_v17 = vpop.f32.mrb[27].mxu1  ;;  %v1890_v21 = vadd.f32 %v11780_v32, %v1776_v19  ;;  %8890 = vmatprep.subr.bf16.mxu1 %v10271_v3 }
 0x140   : > { %v11848_v24 = vpack.c.bf16 %v1888_v16, %v1884_v4  ;;  %2693 = vmatmul.mubr.bf16.gmra.mrb[84].mxu0 %v11783_v33 }
 0x141   : > { %2550 = vmatmul.mubr.bf16.gmra.mrb[68].mxu1 %v11530_v54  ;;  %v11852_v25 = vpack.c.bf16 %v1890_v21, %v1886_v9  ;;  %2700 = vmatprep.mubr.bf16.mxu0 %v11787_v56 }
 0x142   : > { %2559 = vmatprep.mubr.bf16.mxu1 %v13943_v2  ;;  %8891 = vmatpush3.bf16.msra.mxu1 %v10271_v3 }
 0x143   : > { %14033 = vst [vmem:[#allocation7_spill] sm:$0xff] %v11852_v25  ;;  %v1780_v27 = vpop.f32.mrb[12].mxu0  ;;  %8892 = vmatprep.subr.bf16.mxu1 %v10272_v23 }
 0x144   : > { %v11856_v28 = vpop.f32.mrb[28].mxu1  ;;  %v1894_v32 = vadd.f32 %v11790_v34, %v1780_v27  ;;  %v1782_v38 = vpop.f32.mrb[13].mxu0  ;;  %v10274_v34 = vld [vmem:[%s13939_s1 + $0x608] ss:$36 sps:$4 sm:$0xff]  }
 0x145   : > { %v11862_v33 = vpop.f32.mrb[29].mxu1  ;;  %v1896_v39 = vadd.f32 %v11792_v35, %v1782_v38  ;;  %v1784_v43 = vpop.f32.mrb[14].mxu0  ;;  %v10778_v35 = vld [vmem:[%s11031_s11 + $0x90] ss:$12 sps:$4 sm:$0xff]  }
 0x146   : > { %v11865_v56 = vpop.f32.mrb[30].mxu1  ;;  %v1898_v41 = vadd.f32 %v11794_v36, %v1784_v43  ;;  %v1786_v18 = vpop.f32.mrb[15].mxu0  ;;  %8893 = vmatpush3.bf16.msra.mxu1 %v10272_v23  ;;  %v10779_v36 = vld [vmem:[%s11031_s11 + $0xac] ss:$12 sps:$4 sm:$0xff]  }
 0x147   : > { %v11868_v44 = vpop.f32.mrb[31].mxu1  ;;  %v1900_v45 = vadd.f32 %v11796_v7, %v1786_v18  ;;  %8894 = vmatprep.subr.bf16.mxu1 %v10273_v29  ;;  %v10275_v7 = vld [vmem:[%s13939_s1 + $0x650] ss:$36 sps:$4 sm:$0xff]  }
 0x148   : > { %v11874_v11 = vpack.c.bf16 %v1898_v41, %v1894_v32  ;;  %2701 = vmatmul.mubr.bf16.gmra.mrb[88].mxu0 %v10778_v35 }
 0x149   : > { %2560 = vmatmul.mubr.bf16.gmra.mrb[72].mxu1 %v11549_v60  ;;  %v11878_v46 = vpack.c.bf16 %v1900_v45, %v1896_v39  ;;  %2708 = vmatprep.mubr.bf16.mxu0 %v10779_v36 }
 0x14a   : > { %2569 = vmatprep.mubr.bf16.mxu1 %v13943_v2  ;;  %8895 = vmatpush3.bf16.msra.mxu1 %v10273_v29 }
 0x14b   : > { %14034 = vst [vmem:[#allocation8_spill] sm:$0xff] %v11878_v46  ;;  %v1790_v42 = vpop.f32.mrb[16].mxu0  ;;  %8896 = vmatprep.subr.bf16.mxu1 %v10274_v34 }
 0x14c   : > { %v1904_v48 = vadd.f32 %v11800_v15, %v1790_v42  ;;  %v1792_v51 = vpop.f32.mrb[17].mxu0  ;;  %v10780_v15 = vld [vmem:[%s11031_s11 + $0xa8] ss:$12 sps:$4 sm:$0xff]   ;;  %s10862_s11 = smov 64  }
 0x14d   : > { %v1906_v52 = vadd.f32 %v11802_v40, %v1792_v51  ;;  %v1794_v55 = vpop.f32.mrb[18].mxu0 }
 0x14e   : > { %v1908_v57 = vadd.f32 %v11804_v26, %v1794_v55  ;;  %v1796_v58 = vpop.f32.mrb[19].mxu0  ;;  %8897 = vmatpush3.bf16.msra.mxu1 %v10274_v34 }
 0x14f   : > { %v1910_v59 = vadd.f32 %v11806_v31, %v1796_v58  ;;  %8898 = vmatprep.subr.bf16.mxu1 %v10275_v7 }
 0x150   : > { %v11892_v3 = vpack.c.bf16 %v1908_v57, %v1904_v48  ;;  %2709 = vmatmul.mubr.bf16.gmra.mrb[92].mxu0 %v10780_v15 }
 0x151   : > { %2570 = vmatmul.mubr.bf16.gmra.mrb[76].mxu1 %v11568_v1  ;;  %v11896_v40 = vpack.c.bf16 %v1910_v59, %v1906_v52  ;;  %8934 = vmatprep.mubr.msk.bf16.mxu0 %vm2937_vm0, %v11808_v37 }
 0x152   : > { %2579 = vmatprep.mubr.bf16.mxu1 %v13943_v2  ;;  %8899 = vmatpush3.bf16.msra.mxu1 %v10275_v7 }
 0x153   : > { %14035 = vst [vmem:[#allocation9_spill] sm:$0xff] %v11896_v40  ;;  %v1800_v26 = vpop.f32.mrb[20].mxu0  ;;  %8900 = vmatprep.subr.bf16.mxu1 %v10276_v63 }
 0x154   : > { %v1914_v31 = vadd.f32 %v11814_v47, %v1800_v26  ;;  %v1802_v4 = vpop.f32.mrb[21].mxu0 }
 0x155   : > { %v1916_v5 = vadd.f32 %v11816_v50, %v1802_v4  ;;  %v1804_v9 = vpop.f32.mrb[22].mxu0 }
 0x156   : > { %v1918_v12 = vadd.f32 %v11818_v53, %v1804_v9  ;;  %v1806_v16 = vpop.f32.mrb[23].mxu0  ;;  %8901 = vmatpush3.bf16.msra.mxu1 %v10276_v63 }
 0x157   : > { %v1920_v19 = vadd.f32 %v11820_v22, %v1806_v16 }
 0x158   : > { %v11905_v21 = vpack.c.bf16 %v1918_v12, %v1914_v31 }
 0x159   : > { %2580 = vmatmul.mubr.bf16.gmra.mrb[80].mxu1 %v11593_v10  ;;  %v11908_v23 = vpack.c.bf16 %v1920_v19, %v1916_v5 }
 0x15a   : > { %2589 = vmatprep.mubr.bf16.mxu1 %v13943_v2 }
 0x15b   : > { %14036 = vst [vmem:[#allocation10_spill] sm:$0xff] %v11908_v23  ;;  %v1810_v27 = vpop.f32.mrb[24].mxu0 }
 0x15c   : > { %v1924_v47 = vadd.f32 %v11832_v0, %v1810_v27  ;;  %v1812_v29 = vpop.f32.mrb[25].mxu0 }
 0x15d   : > { %v1926_v50 = vadd.f32 %v11837_v6, %v1812_v29  ;;  %v1814_v32 = vpop.f32.mrb[26].mxu0 }
 0x15e   : > { %v1928_v53 = vadd.f32 %v11839_v14, %v1814_v32  ;;  %v1816_v38 = vpop.f32.mrb[27].mxu0 }
 0x15f   : > { %v1930_v22 = vadd.f32 %v11842_v17, %v1816_v38 }
 0x160   : > { %v11915_v39 = vpack.c.bf16 %v1928_v53, %v1924_v47 }
 0x161   : > { %2590 = vmatmul.mubr.bf16.gmra.mrb[84].mxu1 %v11615_v20  ;;  %v11918_v43 = vpack.c.bf16 %v1930_v22, %v1926_v50 }
 0x162   : > { %2599 = vmatprep.mubr.bf16.mxu1 %v13943_v2 }
 0x163   : > { %14037 = vst [vmem:[#allocation11_spill] sm:$0xff] %v11918_v43  ;;  %v1820_v41 = vpop.f32.mrb[28].mxu0 }
 0x164   : > { %v1934_v0 = vadd.f32 %v11856_v28, %v1820_v41  ;;  %v1822_v18 = vpop.f32.mrb[29].mxu0 }
 0x165   : > { %v1936_v6 = vadd.f32 %v11862_v33, %v1822_v18  ;;  %v1824_v45 = vpop.f32.mrb[30].mxu0 }
 0x166   : > { %v1938_v14 = vadd.f32 %v11865_v56, %v1824_v45  ;;  %v1826_v34 = vpop.f32.mrb[31].mxu0 }
 0x167   : > { %v1940_v17 = vadd.f32 %v11868_v44, %v1826_v34 }
 0x168   : > { %v11925_v35 = vpack.c.bf16 %v1938_v14, %v1934_v0 }
 0x169   : > { %2600 = vmatmul.mubr.bf16.gmra.mrb[88].mxu1 %v11643_v30  ;;  %v11928_v36 = vpack.c.bf16 %v1940_v17, %v1936_v6 }
 0x16a   : > { %2609 = vmatprep.mubr.bf16.mxu1 %v13943_v2 }
 0x16b   : > { %14038 = vst [vmem:[#allocation12_spill] sm:$0xff] %v11928_v36 }
 0x171   : > { %2610 = vmatmul.mubr.bf16.gmra.mrb[92].mxu1 %v11759_v8 }
 0x172   : > { %8902 = vmatprep.mubr.bf16.mxu1 %v11511_v49 }
 0x179   : > { %8903 = vmatmul.mubr.bf16.vlgmr.msra.gmra.mrb[96].mxu1 %v11530_v54 }
 0x17a   : > { %8906 = vmatprep.mubr.bf16.mxu1 %v11549_v60 }
 0x181   : > { %8907 = vmatmul.mubr.bf16.gmra.mrb[100].mxu1 %v11568_v1 }
 0x182   : > { %8910 = vmatprep.mubr.bf16.mxu1 %v11593_v10 }
 0x189   : > { %8911 = vmatmul.mubr.bf16.gmra.mrb[104].mxu1 %v11615_v20 }
 0x18a   : > { %8914 = vmatprep.mubr.bf16.mxu1 %v11643_v30 }
 0x18c   : > { %v2089_v28 = vpop.f32.mrb[32].mxu1 }
 0x18d   : > { %v2091_v33 = vpop.f32.mrb[33].mxu1 }
 0x18e   : > { %v2093_v56 = vpop.f32.mrb[34].mxu1 }
 0x18f   : > { %v11939_v44 = vpack.c.bf16 %v2093_v56, %v2089_v28  ;;  %v2095_v42 = vpop.f32.mrb[35].mxu1 }
 0x190   : > { %v2838_v7 = vpack.c.bf16 %v2095_v42, %v2091_v33 }
 0x191   : > { %14039 = vst [vmem:[#allocation13_spill] sm:$0xff] %v11939_v44  ;;  %8915 = vmatmul.mubr.bf16.gmra.mrb[108].mxu1 %v11759_v8 }
 0x192   : > { %3388 = vrot.lane.b32.xlu0 %v2838_v7, %s10862_s11  ;;  %9822 = vmatprep.subr.msk.bf16.mxu0 %vm2937_vm0, %v2838_v7  ;;  %v2963_v49 = vsel %vm2937_vm0, %v2838_v7, 0 }
 0x193   : > { %8919 = vmatpush3.bf16.xpose.msra.mxu0 %v2963_v49 }
 0x194   : > { %v2099_v54 = vpop.f32.mrb[36].mxu1 }
 0x195   : > { %v2101_v60 = vpop.f32.mrb[37].mxu1 }
 0x196   : > { %v2103_v1 = vpop.f32.mrb[38].mxu1 }
 0x197   : > { %v11945_v10 = vpack.c.bf16 %v2103_v1, %v2099_v54  ;;  %v2105_v20 = vpop.f32.mrb[39].mxu1 }
 0x198   : > { %v2841_v30 = vpack.c.bf16 %v2105_v20, %v2101_v60 }
 0x199   : > { %14040 = vst [vmem:[#allocation14_spill] sm:$0xff] %v11945_v10 }
 0x19a   : > { %3390 = vrot.lane.b32.xlu1 %v2841_v30, %s10862_s11  ;;  %9823 = vmatprep.subr.msk.bf16.mxu0 %vm2937_vm0, %v2841_v30  ;;  %v2966_v8 = vsel %vm2937_vm0, %v2841_v30, 0 }
 0x19b   : > { %8921 = vmatpush3.bf16.xpose.msra.mxu0 %v2966_v8 }
 0x19c   : > { %v2109_v48 = vpop.f32.mrb[40].mxu1 }
 0x19d   : > { %v2111_v51 = vpop.f32.mrb[41].mxu1 }
 0x19e   : > { %v2113_v52 = vpop.f32.mrb[42].mxu1 }
 0x19f   : > { %v11950_v55 = vpack.c.bf16 %v2113_v52, %v2109_v48  ;;  %v2115_v57 = vpop.f32.mrb[43].mxu1 }
 0x1a0   : > { %v11952_v58 = vpack.c.bf16 %v2115_v57, %v2111_v51 }
 0x1a1   : > { %14041 = vst [vmem:[#allocation15_spill] sm:$0xff] %v11950_v55 }
 0x1a2   : > { %9824 = vmatprep.subr.msk.bf16.mxu0 %vm2937_vm0, %v11952_v58  ;;  %v2969_v59 = vsel %vm2937_vm0, %v11952_v58, 0 }
 0x1a3   : > { %8923 = vmatpush3.bf16.xpose.msra.mxu0 %v2969_v59 }
 0x1a4   : > { %v2119_v63 = vpop.f32.mrb[44].mxu1 }
 0x1a5   : > { %v2121_v15 = vpop.f32.mrb[45].mxu1 }
 0x1a6   : > { %v2123_v26 = vpop.f32.mrb[46].mxu1 }
 0x1a7   : > { %v11958_v31 = vpack.c.bf16 %v2123_v26, %v2119_v63  ;;  %v2125_v4 = vpop.f32.mrb[47].mxu1 }
 0x1a8   : > { %v11960_v5 = vpack.c.bf16 %v2125_v4, %v2121_v15 }
 0x1a9   : > { %14042 = vst [vmem:[#allocation16_spill] sm:$0xff] %v11958_v31 }
 0x1aa   : > { %9825 = vmatprep.subr.msk.bf16.mxu0 %vm2937_vm0, %v11960_v5  ;;  %v2972_v9 = vsel %vm2937_vm0, %v11960_v5, 0 }
 0x1ab   : > { %8925 = vmatpush3.bf16.xpose.msra.mxu0 %v2972_v9  ;;  %v2315_v16 = vpop.f32.mrb[32].mxu0 }
 0x1ac   : > { %v2129_v12 = vpop.f32.mrb[48].mxu1  ;;  %v2317_v27 = vpop.f32.mrb[33].mxu0 }
 0x1ad   : > { %v2131_v19 = vpop.f32.mrb[49].mxu1  ;;  %v2319_v29 = vpop.f32.mrb[34].mxu0 }
 0x1ae   : > { %v2133_v47 = vpop.f32.mrb[50].mxu1  ;;  %v11968_v53 = vpack.c.bf16 %v2319_v29, %v2315_v16  ;;  %v2321_v38 = vpop.f32.mrb[35].mxu0 }
 0x1af   : > { %v11966_v50 = vpack.c.bf16 %v2133_v47, %v2129_v12  ;;  %v2135_v32 = vpop.f32.mrb[51].mxu1  ;;  %v11972_v41 = vpack.c.bf16 %v2321_v38, %v2317_v27 }
 0x1b0   : > { %14044 = vst [vmem:[#allocation18_spill] sm:$0xff] %v11968_v53  ;;  %v11970_v22 = vpack.c.bf16 %v2135_v32, %v2131_v19 }
 0x1b1   : > { %14043 = vst [vmem:[#allocation17_spill] sm:$0xff] %v11966_v50  ;;  %14045 = vst [vmem:[#allocation19_spill] sm:$0xff] %v11972_v41 }
 0x1b2   : > { %9826 = vmatprep.subr.msk.bf16.mxu0 %vm2937_vm0, %v11970_v22  ;;  %v2975_v0 = vsel %vm2937_vm0, %v11970_v22, 0 }
 0x1b3   : > { %8927 = vmatpush3.bf16.xpose.msra.mxu0 %v2975_v0  ;;  %v2325_v6 = vpop.f32.mrb[36].mxu0 }
 0x1b4   : > { %v2139_v18 = vpop.f32.mrb[52].mxu1  ;;  %v2327_v14 = vpop.f32.mrb[37].mxu0 }
 0x1b5   : > { %v2141_v45 = vpop.f32.mrb[53].mxu1  ;;  %v2329_v17 = vpop.f32.mrb[38].mxu0 }
 0x1b6   : > { %v2143_v34 = vpop.f32.mrb[54].mxu1  ;;  %v11980_v56 = vpack.c.bf16 %v2329_v17, %v2325_v6  ;;  %v2331_v42 = vpop.f32.mrb[39].mxu0 }
 0x1b7   : > { %v11978_v28 = vpack.c.bf16 %v2143_v34, %v2139_v18  ;;  %v2145_v33 = vpop.f32.mrb[55].mxu1  ;;  %v11984_v49 = vpack.c.bf16 %v2331_v42, %v2327_v14 }
 0x1b8   : > { %14047 = vst [vmem:[#allocation21_spill] sm:$0xff] %v11980_v56  ;;  %v11982_v7 = vpack.c.bf16 %v2145_v33, %v2141_v45 }
 0x1b9   : > { %14046 = vst [vmem:[#allocation20_spill] sm:$0xff] %v11978_v28  ;;  %14048 = vst [vmem:[#allocation22_spill] sm:$0xff] %v11984_v49 }
 0x1ba   : > { %9827 = vmatprep.subr.msk.bf16.mxu0 %vm2937_vm0, %v11982_v7  ;;  %v2978_v54 = vsel %vm2937_vm0, %v11982_v7, 0 }
 0x1bb   : > { %8929 = vmatpush3.bf16.xpose.msra.mxu0 %v2978_v54  ;;  %v2335_v1 = vpop.f32.mrb[40].mxu0 }
 0x1bc   : > { %v2149_v60 = vpop.f32.mrb[56].mxu1  ;;  %v2337_v30 = vpop.f32.mrb[41].mxu0 }
 0x1bd   : > { %v2151_v20 = vpop.f32.mrb[57].mxu1  ;;  %v2339_v48 = vpop.f32.mrb[42].mxu0 }
 0x1be   : > { %v2153_v8 = vpop.f32.mrb[58].mxu1  ;;  %v11992_v57 = vpack.c.bf16 %v2339_v48, %v2335_v1  ;;  %v2341_v59 = vpop.f32.mrb[43].mxu0 }
 0x1bf   : > { %v11990_v51 = vpack.c.bf16 %v2153_v8, %v2149_v60  ;;  %v2155_v52 = vpop.f32.mrb[59].mxu1  ;;  %v11996_v15 = vpack.c.bf16 %v2341_v59, %v2337_v30 }
 0x1c0   : > { %14050 = vst [vmem:[#allocation24_spill] sm:$0xff] %v11992_v57  ;;  %v11994_v63 = vpack.c.bf16 %v2155_v52, %v2151_v20 }
 0x1c1   : > { %14049 = vst [vmem:[#allocation23_spill] sm:$0xff] %v11990_v51  ;;  %14051 = vst [vmem:[#allocation25_spill] sm:$0xff] %v11996_v15 }
 0x1c2   : > { %9828 = vmatprep.subr.msk.bf16.mxu0 %vm2937_vm0, %v11994_v63  ;;  %v2981_v26 = vsel %vm2937_vm0, %v11994_v63, 0 }
 0x1c3   : > { %8931 = vmatpush3.bf16.xpose.msra.mxu0 %v2981_v26  ;;  %v2345_v9 = vpop.f32.mrb[44].mxu0 }
 0x1c4   : > { %v2159_v4 = vpop.f32.mrb[60].mxu1  ;;  %v2347_v16 = vpop.f32.mrb[45].mxu0 }
 0x1c5   : > { %v2161_v12 = vpop.f32.mrb[61].mxu1  ;;  %v2349_v27 = vpop.f32.mrb[46].mxu0 }
 0x1c6   : > { %v2163_v19 = vpop.f32.mrb[62].mxu1  ;;  %v12004_v32 = vpack.c.bf16 %v2349_v27, %v2345_v9  ;;  %v2351_v38 = vpop.f32.mrb[47].mxu0 }
 0x1c7   : > { %v12002_v47 = vpack.c.bf16 %v2163_v19, %v2159_v4  ;;  %v2165_v29 = vpop.f32.mrb[63].mxu1  ;;  %v12008_v18 = vpack.c.bf16 %v2351_v38, %v2347_v16 }
 0x1c8   : > { %14053 = vst [vmem:[#allocation27_spill] sm:$0xff] %v12004_v32  ;;  %v12006_v0 = vpack.c.bf16 %v2165_v29, %v2161_v12 }
 0x1c9   : > { %14052 = vst [vmem:[#allocation26_spill] sm:$0xff] %v12002_v47  ;;  %14054 = vst [vmem:[#allocation28_spill] sm:$0xff] %v12008_v18 }
 0x1ca   : > { %9829 = vmatprep.subr.msk.bf16.mxu0 %vm2937_vm0, %v12006_v0  ;;  %v2984_v6 = vsel %vm2937_vm0, %v12006_v0, 0 }
 0x1cb   : > { %8933 = vmatpush3.bf16.xpose.msra.mxu0 %v2984_v6  ;;  %v2355_v45 = vpop.f32.mrb[48].mxu0 }
 0x1cc   : > { %v2357_v14 = vpop.f32.mrb[49].mxu0 }
 0x1cd   : > { %v2359_v34 = vpop.f32.mrb[50].mxu0 }
 0x1ce   : > { %v12014_v17 = vpack.c.bf16 %v2359_v34, %v2355_v45  ;;  %v2361_v33 = vpop.f32.mrb[51].mxu0 }
 0x1cf   : > { %v12016_v42 = vpack.c.bf16 %v2361_v33, %v2357_v14 }
 0x1d0   : > { %14055 = vst [vmem:[#allocation29_spill] sm:$0xff] %v12014_v17 }
 0x1d1   : > { %14056 = vst [vmem:[#allocation30_spill] sm:$0xff] %v12016_v42 }
 0x1d2   : > { %8935 = vmatmul.mubr.msk.bf16.vlgmr.msra.gmra.mrb[96].mxu0 %vm2937_vm0, %v11825_v61 }
 0x1d3   : > { %8938 = vmatprep.mubr.msk.bf16.mxu0 %vm2937_vm0, %v11848_v24  ;;  %v2365_v54 = vpop.f32.mrb[52].mxu0 }
 0x1d4   : > { %v2367_v60 = vpop.f32.mrb[53].mxu0 }
 0x1d5   : > { %v2369_v1 = vpop.f32.mrb[54].mxu0 }
 0x1d6   : > { %v12022_v20 = vpack.c.bf16 %v2369_v1, %v2365_v54  ;;  %v2371_v30 = vpop.f32.mrb[55].mxu0 }
 0x1d7   : > { %v12024_v8 = vpack.c.bf16 %v2371_v30, %v2367_v60 }
 0x1d8   : > { %14057 = vst [vmem:[#allocation31_spill] sm:$0xff] %v12022_v20 }
 0x1d9   : > { %14058 = vst [vmem:[#allocation32_spill] sm:$0xff] %v12024_v8 }
 0x1da   : > { %8939 = vmatmul.mubr.msk.bf16.gmra.mrb[100].mxu0 %vm2937_vm0, %v11874_v11 }
 0x1db   : > { %8942 = vmatprep.mubr.msk.bf16.mxu0 %vm2937_vm0, %v11892_v3  ;;  %v2375_v48 = vpop.f32.mrb[56].mxu0 }
 0x1dc   : > { %v2377_v52 = vpop.f32.mrb[57].mxu0 }
 0x1dd   : > { %v2379_v59 = vpop.f32.mrb[58].mxu0 }
 0x1de   : > { %v12030_v26 = vpack.c.bf16 %v2379_v59, %v2375_v48  ;;  %v2381_v4 = vpop.f32.mrb[59].mxu0 }
 0x1df   : > { %v12032_v9 = vpack.c.bf16 %v2381_v4, %v2377_v52 }
 0x1e0   : > { %14059 = vst [vmem:[#allocation33_spill] sm:$0xff] %v12030_v26 }
 0x1e1   : > { %14060 = vst [vmem:[#allocation34_spill] sm:$0xff] %v12032_v9 }
 0x1e2   : > { %8943 = vmatmul.mubr.msk.bf16.gmra.mrb[104].mxu0 %vm2937_vm0, %v11905_v21 }
 0x1e3   : > { %8946 = vmatprep.mubr.msk.bf16.mxu0 %vm2937_vm0, %v11915_v39  ;;  %v2385_v12 = vpop.f32.mrb[60].mxu0 }
 0x1e4   : > { %v2387_v16 = vpop.f32.mrb[61].mxu0 }
 0x1e5   : > { %v2389_v19 = vpop.f32.mrb[62].mxu0 }
 0x1e6   : > { %v12038_v27 = vpack.c.bf16 %v2389_v19, %v2385_v12  ;;  %v2391_v29 = vpop.f32.mrb[63].mxu0 }
 0x1e7   : > { %v12040_v38 = vpack.c.bf16 %v2391_v29, %v2387_v16 }
 0x1e8   : > { %14061 = vst [vmem:[#allocation35_spill] sm:$0xff] %v12038_v27 }
 0x1e9   : > { %14062 = vst [vmem:[#allocation36_spill] sm:$0xff] %v12040_v38 }
 0x1ea   : > { %8947 = vmatmul.mubr.msk.bf16.gmra.mrb[108].mxu0 %vm2937_vm0, %v11925_v35 }
 0x1eb   : > { %v8558_v6 = vpop.f32.mrb[64].mxu0 }
 0x1ec   : > { %v8559_v45 = vpop.f32.mrb[65].mxu0 }
 0x1ed   : > { %v12044_v14 = vadd.f32 %v8559_v45, %v8558_v6  ;;  %v8561_v34 = vpop.f32.mrb[66].mxu0 }
 0x1ee   : > { %v8562_v33 = vpop.f32.mrb[67].mxu0 }
 0x1ef   : > { %v12046_v54 = vadd.f32 %v8562_v33, %v8561_v34 }
 0x1f3   : > { %v8564_v60 = vpop.f32.mrb[68].mxu0 }
 0x1f4   : > { %v8565_v1 = vpop.f32.mrb[69].mxu0 }
 0x1f5   : > { %v12048_v30 = vadd.f32 %v8565_v1, %v8564_v60  ;;  %v8567_v48 = vpop.f32.mrb[70].mxu0 }
 0x1f6   : > { %v8568_v52 = vpop.f32.mrb[71].mxu0 }
 0x1f7   : > { %v12050_v59 = vadd.f32 %v8568_v52, %v8567_v48 }
 0x1fb   : > { %v8570_v4 = vpop.f32.mrb[72].mxu0 }
 0x1fc   : > { %v8571_v12 = vpop.f32.mrb[73].mxu0 }
 0x1fd   : > { %v12052_v16 = vadd.f32 %v8571_v12, %v8570_v4  ;;  %v8573_v19 = vpop.f32.mrb[74].mxu0 }
 0x1fe   : > { %v8574_v29 = vpop.f32.mrb[75].mxu0 }
 0x1ff   : > { %v12054_v6 = vadd.f32 %v8574_v29, %v8573_v19 }
 0x203   : > { %v8576_v45 = vpop.f32.mrb[76].mxu0 }
 0x204   : > { %v8577_v2 = vpop.f32.mrb[77].mxu0  ;;  %v12123_v62 = vpop.permute.xlu0 %3388 }
 0x205   : > { %v12056_v34 = vadd.f32 %v8577_v2, %v8576_v45  ;;  %v8579_v33 = vpop.f32.mrb[78].mxu0 }
 0x206   : > { %v8580_v47 = vpop.f32.mrb[79].mxu0 }
 0x207   : > { %v12058_v60 = vadd.f32 %v8580_v47, %v8579_v33 }
 0x20b   : > { %v8582_v48 = vpop.f32.mrb[80].mxu0 }
 0x20c   : > { %v2541_v1 = vpop.f32.mrb[64].mxu1  ;;  %v8583_v28 = vpop.f32.mrb[81].mxu0 }
 0x20d   : > { %v2543_v51 = vpop.f32.mrb[65].mxu1  ;;  %v12062_v12 = vadd.f32 %v8583_v28, %v8582_v48  ;;  %v8585_v19 = vpop.f32.mrb[82].mxu0 }
 0x20e   : > { %v2545_v52 = vpop.f32.mrb[66].mxu1  ;;  %v8586_v31 = vpop.f32.mrb[83].mxu0 }
 0x20f   : > { %v12060_v50 = vpack.c.bf16 %v2545_v52, %v2541_v1  ;;  %v2547_v4 = vpop.f32.mrb[67].mxu1  ;;  %v12067_v2 = vadd.f32 %v8586_v31, %v8585_v19 }
 0x210   : > { %v12064_v29 = vpack.c.bf16 %v2547_v4, %v2543_v51 }
 0x211   : > { %8950 = vmatprep.subr.bf16.mxu1 %v12060_v50 }
 0x212   : > { %14063 = vst [vmem:[#allocation37_spill] sm:$0xff] %v12064_v29  ;;  %8951 = vmatpush3.bf16.msra.mxu1 %v12060_v50 }
 0x213   : > { %v8588_v45 = vpop.f32.mrb[84].mxu0 }
 0x214   : > { %v2551_v47 = vpop.f32.mrb[68].mxu1  ;;  %v8589_v55 = vpop.f32.mrb[85].mxu0 }
 0x215   : > { %v2553_v33 = vpop.f32.mrb[69].mxu1  ;;  %v12070_v1 = vadd.f32 %v8589_v55, %v8588_v45  ;;  %v8591_v52 = vpop.f32.mrb[86].mxu0 }
 0x216   : > { %v2555_v10 = vpop.f32.mrb[70].mxu1  ;;  %v8592_v51 = vpop.f32.mrb[87].mxu0 }
 0x217   : > { %v12072_v28 = vpack.c.bf16 %v2555_v10, %v2551_v47  ;;  %v2557_v48 = vpop.f32.mrb[71].mxu1  ;;  %v12076_v44 = vadd.f32 %v8592_v51, %v8591_v52 }
 0x218   : > { %v12074_v4 = vpack.c.bf16 %v2557_v48, %v2553_v33 }
 0x219   : > { %8952 = vmatprep.subr.bf16.mxu1 %v12072_v28 }
 0x21a   : > { %14064 = vst [vmem:[#allocation38_spill] sm:$0xff] %v12074_v4  ;;  %8953 = vmatpush3.bf16.msra.mxu1 %v12072_v28 }
 0x21b   : > { %v8594_v19 = vpop.f32.mrb[88].mxu0 }
 0x21c   : > { %v2561_v31 = vpop.f32.mrb[72].mxu1  ;;  %v8595_v9 = vpop.f32.mrb[89].mxu0 }
 0x21d   : > { %v2563_v38 = vpop.f32.mrb[73].mxu1  ;;  %v12080_v55 = vadd.f32 %v8595_v9, %v8594_v19  ;;  %v8597_v45 = vpop.f32.mrb[90].mxu0 }
 0x21e   : > { %v2565_v8 = vpop.f32.mrb[74].mxu1  ;;  %v8598_v42 = vpop.f32.mrb[91].mxu0 }
 0x21f   : > { %v12082_v10 = vpack.c.bf16 %v2565_v8, %v2561_v31  ;;  %v2567_v47 = vpop.f32.mrb[75].mxu1  ;;  %v12086_v52 = vadd.f32 %v8598_v42, %v8597_v45 }
 0x220   : > { %v12084_v33 = vpack.c.bf16 %v2567_v47, %v2563_v38 }
 0x221   : > { %8954 = vmatprep.subr.bf16.mxu1 %v12082_v10 }
 0x222   : > { %14065 = vst [vmem:[#allocation39_spill] sm:$0xff] %v12084_v33  ;;  %8955 = vmatpush3.bf16.msra.mxu1 %v12082_v10 }
 0x223   : > { %v8600_v51 = vpop.f32.mrb[92].mxu0 }
 0x224   : > { %v2571_v48 = vpop.f32.mrb[76].mxu1  ;;  %v8601_v15 = vpop.f32.mrb[93].mxu0 }
 0x225   : > { %v2573_v18 = vpop.f32.mrb[77].mxu1  ;;  %v12090_v9 = vadd.f32 %v8601_v15, %v8600_v51  ;;  %v8603_v19 = vpop.f32.mrb[94].mxu0 }
 0x226   : > { %v2575_v49 = vpop.f32.mrb[78].mxu1  ;;  %v8604_v41 = vpop.f32.mrb[95].mxu0 }
 0x227   : > { %v12092_v8 = vpack.c.bf16 %v2575_v49, %v2571_v48  ;;  %v2577_v31 = vpop.f32.mrb[79].mxu1  ;;  %v12096_v42 = vadd.f32 %v8604_v41, %v8603_v19 }
 0x228   : > { %v12094_v38 = vpack.c.bf16 %v2577_v31, %v2573_v18 }
 0x229   : > { %14066 = vst [vmem:[#allocation40_spill] sm:$0xff] %v12092_v8  ;;  %8956 = vmatprep.subr.bf16.mxu1 %v12092_v8 }
 0x22a   : > { %14067 = vst [vmem:[#allocation41_spill] sm:$0xff] %v12094_v38  ;;  %8957 = vmatpush3.bf16.msra.mxu1 %v12092_v8 }
 0x22c   : > { %v2581_v45 = vpop.f32.mrb[80].mxu1 }
 0x22d   : > { %v2583_v47 = vpop.f32.mrb[81].mxu1 }
 0x22e   : > { %v2585_v36 = vpop.f32.mrb[82].mxu1 }
 0x22f   : > { %v12100_v43 = vpack.c.bf16 %v2585_v36, %v2581_v45  ;;  %v2587_v15 = vpop.f32.mrb[83].mxu1 }
 0x230   : > { %v12102_v51 = vpack.c.bf16 %v2587_v15, %v2583_v47 }
 0x231   : > { %14068 = vst [vmem:[#allocation42_spill] sm:$0xff] %v12100_v43  ;;  %8958 = vmatprep.subr.bf16.mxu1 %v12100_v43 }
 0x232   : > { %14069 = vst [vmem:[#allocation43_spill] sm:$0xff] %v12102_v51  ;;  %8959 = vmatpush3.bf16.msra.mxu1 %v12100_v43 }
 0x234   : > { %v2591_v49 = vpop.f32.mrb[84].mxu1 }
 0x235   : > { %v2593_v18 = vpop.f32.mrb[85].mxu1 }
 0x236   : > { %v2595_v41 = vpop.f32.mrb[86].mxu1 }
 0x237   : > { %v12106_v48 = vpack.c.bf16 %v2595_v41, %v2591_v49  ;;  %v2597_v19 = vpop.f32.mrb[87].mxu1 }
 0x238   : > { %v12108_v31 = vpack.c.bf16 %v2597_v19, %v2593_v18 }
 0x239   : > { %14070 = vst [vmem:[#allocation44_spill] sm:$0xff] %v12106_v48  ;;  %8960 = vmatprep.subr.bf16.mxu1 %v12106_v48 }
 0x23a   : > { %14071 = vst [vmem:[#allocation45_spill] sm:$0xff] %v12108_v31  ;;  %8961 = vmatpush3.bf16.msra.mxu1 %v12106_v48 }
 0x23c   : > { %v2601_v36 = vpop.f32.mrb[88].mxu1 }
 0x23d   : > { %v2603_v45 = vpop.f32.mrb[89].mxu1 }
 0x23e   : > { %v2605_v47 = vpop.f32.mrb[90].mxu1 }
 0x23f   : > { %v12112_v15 = vpack.c.bf16 %v2605_v47, %v2601_v36  ;;  %v2607_v23 = vpop.f32.mrb[91].mxu1 }
 0x240   : > { %v12114_v40 = vpack.c.bf16 %v2607_v23, %v2603_v45 }
 0x241   : > { %14072 = vst [vmem:[#allocation46_spill] sm:$0xff] %v12112_v15  ;;  %8962 = vmatprep.subr.bf16.mxu1 %v12112_v15 }
 0x242   : > { %14073 = vst [vmem:[#allocation47_spill] sm:$0xff] %v12114_v40  ;;  %8963 = vmatpush3.bf16.msra.mxu1 %v12112_v15 }
 0x244   : > { %v2611_v49 = vpop.f32.mrb[92].mxu1 }
 0x245   : > { %v2613_v41 = vpop.f32.mrb[93].mxu1 }
 0x246   : > { %v2615_v18 = vpop.f32.mrb[94].mxu1 }
 0x247   : > { %v12118_v19 = vpack.c.bf16 %v2615_v18, %v2611_v49  ;;  %v2617_v46 = vpop.f32.mrb[95].mxu1 }
 0x248   : > { %v12120_v25 = vpack.c.bf16 %v2617_v46, %v2613_v41 }
 0x249   : > { %14074 = vst [vmem:[#allocation48_spill] sm:$0xff] %v12118_v19  ;;  %8964 = vmatprep.subr.bf16.mxu1 %v12118_v19 }
 0x24a   : > { %14075 = vst [vmem:[#allocation49_spill] sm:$0xff] %v12120_v25  ;;  %8965 = vmatpush3.bf16.msra.mxu1 %v12118_v19 }
 0x24b   : > { %9830 = vmatprep.subr.msk.bf16.mxu1 %vm2937_vm0, %v12123_v62 }
 0x24c   : > { %v8904_v23 = vpop.f32.mrb[96].mxu1 }
 0x24d   : > { %v2751_v36 = vpop.f32.mrb[97].mxu1  ;;  %v2760_v45 = vadd.f32 %v8904_v23, %v12048_v30 }
 0x24e   : > { %v2752_v47 = vadd.f32 %v12044_v14, %v2751_v36  ;;  %v8905_v49 = vpop.f32.mrb[98].mxu1 }
 0x24f   : > { %v2754_v18 = vpop.f32.mrb[99].mxu1  ;;  %v2763_v46 = vadd.f32 %v8905_v49, %v12050_v59 }
 0x250   : > { %v2755_v41 = vadd.f32 %v12046_v54, %v2754_v18 }
 0x251   : > { %v12132_v27 = vpack.c.bf16 %v2763_v46, %v2760_v45 }
 0x252   : > { %v12134_v25 = vpack.c.bf16 %v2755_v41, %v2752_v47 }
 0x253   : > { %14076 = vst [vmem:[#allocation50_spill] sm:$0xff] %v12132_v27 }
 0x254   : > { %14077 = vst [vmem:[#allocation51_spill] sm:$0xff] %v12134_v25  ;;  %v8908_v40 = vpop.f32.mrb[100].mxu1 }
 0x255   : > { %v2767_v26 = vpop.f32.mrb[101].mxu1  ;;  %v2776_v31 = vadd.f32 %v8908_v40, %v12056_v34 }
 0x256   : > { %v2768_v51 = vadd.f32 %v12052_v16, %v2767_v26  ;;  %v8909_v20 = vpop.f32.mrb[102].mxu1 }
 0x257   : > { %v2770_v30 = vpop.f32.mrb[103].mxu1  ;;  %v2779_v14 = vadd.f32 %v8909_v20, %v12058_v60 }
 0x258   : > { %v2771_v23 = vadd.f32 %v12054_v6, %v2770_v30 }
 0x259   : > { %v12140_v36 = vpack.c.bf16 %v2779_v14, %v2776_v31 }
 0x25a   : > { %v12142_v59 = vpack.c.bf16 %v2771_v23, %v2768_v51 }
 0x25b   : > { %14078 = vst [vmem:[#allocation52_spill] sm:$0xff] %v12140_v36 }
 0x25c   : > { %14079 = vst [vmem:[#allocation53_spill] sm:$0xff] %v12142_v59  ;;  %v8912_v54 = vpop.f32.mrb[104].mxu1 }
 0x25d   : > { %v2783_v45 = vpop.f32.mrb[105].mxu1  ;;  %v2792_v47 = vadd.f32 %v8912_v54, %v12070_v1 }
 0x25e   : > { %v2784_v49 = vadd.f32 %v12062_v12, %v2783_v45  ;;  %v8913_v18 = vpop.f32.mrb[106].mxu1 }
 0x25f   : > { %v2786_v40 = vpop.f32.mrb[107].mxu1  ;;  %v2795_v26 = vadd.f32 %v8913_v18, %v12076_v44 }
 0x260   : > { %v2787_v16 = vadd.f32 %v12067_v2, %v2786_v40  ;;  %v2886_v2 = vlaneseq }
 0x261   : > { %v12148_v34 = vpack.c.bf16 %v2795_v26, %v2792_v47 }
 0x262   : > { %v12150_v20 = vpack.c.bf16 %v2787_v16, %v2784_v49  ;;  %v12160_v14 = vshrl.u32 %v2886_v2, 7  ;;  %v12163_v54 = vand.u32 127, %v2886_v2 }
 0x263   : > { %14080 = vst [vmem:[#allocation54_spill] sm:$0xff] %v12148_v34 }
 0x264   : > { %14081 = vst [vmem:[#allocation55_spill] sm:$0xff] %v12150_v20  ;;  %v8916_v6 = vpop.f32.mrb[108].mxu1  ;;  %14084 = vst [vmem:[#allocation58_spill] sm:$0xff] %v12160_v14  ;;  %v2889_v23 = vadd.s32 16, %v12160_v14  ;;  %vm2905_vm2 = vcmp.le.s32.totalorder %v12163_v54, %v12160_v14  ;;  %v2893_v47 = vadd.s32 48, %v12160_v14  ;;  %v2894_v26 = vadd.s32 56, %v12160_v14 }
 0x265   : > { %v2799_v60 = vpop.f32.mrb[109].mxu1  ;;  %v2808_v51 = vadd.f32 %v8916_v6, %v12090_v9  ;;  %v10863_v9 = vmov -1e+30   ;;  %v2901_v34 = vadd.s32 112, %v12160_v14 }
 0x266   : > { %v2800_v31 = vadd.f32 %v12080_v55, %v2799_v60  ;;  %v8917_v46 = vpop.f32.mrb[110].mxu1  ;;  %vm2907_vm1 = vcmp.le.s32.totalorder %v12163_v54, %v2889_v23  ;;  %v2890_v55 = vadd.s32 24, %v12160_v14  ;;  %v12174_v45 = vsel %vm2905_vm2, 0.0, %v10863_v9 }
 0x267   : > { %v2802_v1 = vpop.f32.mrb[111].mxu1  ;;  %v2811_v12 = vadd.f32 %v8917_v46, %v12096_v42  ;;  %v12171_v42 = vsel %vm2907_vm1, 0.0, %v10863_v9  ;;  %vm2911_vm5 = vcmp.le.s32.totalorder %v12163_v54, %v2893_v47  ;;  %v2891_v46 = vadd.s32 32, %v12160_v14 }
 0x268   : > { %v2803_v41 = vadd.f32 %v12086_v52, %v2802_v1  ;;  %v2888_v52 = vadd.s32 8, %v12160_v14  ;;  %vm2908_vm3 = vcmp.le.s32.totalorder %v12163_v54, %v2890_v55  ;;  %vm2912_vm6 = vcmp.le.s32.totalorder %v12163_v54, %v2894_v26 }
 0x269   : > { %v12156_v30 = vpack.c.bf16 %v2811_v12, %v2808_v51  ;;  %v12187_v6 = vsel %vm2908_vm3, 0.0, %v10863_v9  ;;  %v2892_v12 = vadd.s32 40, %v12160_v14  ;;  %v12205_v2 = vsel %vm2911_vm5, 0.0, %v10863_v9 }
 0x26a   : > { %v12158_v44 = vpack.c.bf16 %v2803_v41, %v2800_v31  ;;  %vm2906_vm4 = vcmp.le.s32.totalorder %v12163_v54, %v2888_v52  ;;  %v2897_v23 = vadd.s32 80, %v12160_v14  ;;  %vm2909_vm7 = vcmp.le.s32.totalorder %v12163_v54, %v2891_v46 }
 0x26b   : > { %14082 = vst [vmem:[#allocation56_spill] sm:$0xff] %v12156_v30  ;;  %v12191_v51 = vsel %vm2906_vm4, 0.0, %v10863_v9  ;;  %v12212_v52 = vsel %vm2912_vm6, 0.0, %v10863_v9  ;;  %vm2910_vm8 = vcmp.le.s32.totalorder %v12163_v54, %v2892_v12  ;;  %v2896_v12 = vadd.s32 72, %v12160_v14 }
 0x26c   : > { %14083 = vst [vmem:[#allocation57_spill] sm:$0xff] %v12158_v44  ;;  %vm2915_vm9 = vcmp.le.s32.totalorder %v12163_v54, %v2897_v23  ;;  %v12227_v46 = vsel %vm2910_vm8, 0.0, %v10863_v9  ;;  %vm2919_vm13 = vcmp.le.s32.totalorder %v12163_v54, %v2901_v34 }
 0x26d   : > { %vm2914_vm12 = vcmp.le.s32.totalorder %v12163_v54, %v2896_v12  ;;  %v12271_v38 = vsel %vm2919_vm13, 0.0, %v10863_v9 }
 0x26e   : > { %14089 = vst [vmem:[#allocation63_spill] sm:$0xff] %v12271_v38 }
 0x2a5   : > { %v8936_v49 = vpop.f32.mrb[96].mxu0 }
 0x2a6   : > { %v12180_v18 = vadd.f32 %v8936_v49, %v12171_v42  ;;  %v3020_v40 = vpop.f32.mrb[97].mxu0 }
 0x2a7   : > { %v12184_v16 = vadd.f32 %v3020_v40, %v12174_v45  ;;  %v8937_v60 = vpop.f32.mrb[98].mxu0  ;;  %v2898_v40 = vadd.s32 88, %v12160_v14 }
 0x2a8   : > { %3087 = vmax.xlane.f32.xlu1 %v12180_v18  ;;  %v3023_v31 = vpop.f32.mrb[99].mxu0  ;;  %v12197_v1 = vadd.f32 %v8937_v60, %v12187_v6  ;;  %v12220_v60 = vsel %vm2909_vm7, 0.0, %v10863_v9 }
 0x2a9   : > { %3083 = vmax.xlane.f32.xlu0 %v12184_v16  ;;  %v12202_v41 = vadd.f32 %v3023_v31, %v12191_v51  ;;  %14085 = vst [vmem:[#allocation59_spill] sm:$0xff] %v12220_v60  ;;  %vm2916_vm10 = vcmp.le.s32.totalorder %v12163_v54, %v2898_v40 }
 0x2aa   : > { %v12247_v40 = vsel %vm2916_vm10, 0.0, %v10863_v9 }
 0x2ac   : > { %3089 = vmax.xlane.f32.xlu1 %v12197_v1 }
 0x2ad   : > { %v8940_v55 = vpop.f32.mrb[100].mxu0  ;;  %3085 = vmax.xlane.f32.xlu0 %v12202_v41 }
 0x2ae   : > { %v12215_v47 = vadd.f32 %v8940_v55, %v12205_v2  ;;  %v3036_v49 = vpop.f32.mrb[101].mxu0  ;;  %v2895_v55 = vadd.s32 64, %v12160_v14 }
 0x2af   : > { %v8941_v26 = vpop.f32.mrb[102].mxu0  ;;  %v12235_v44 = vadd.f32 %v3036_v49, %v12220_v60 }
 0x2b0   : > { %v12223_v31 = vadd.f32 %v8941_v26, %v12212_v52  ;;  %v3039_v30 = vpop.f32.mrb[103].mxu0  ;;  %v12238_v26 = vsel %vm2915_vm9, 0.0, %v10863_v9  ;;  %vm2913_vm11 = vcmp.le.s32.totalorder %v12163_v54, %v2895_v55  ;;  %v12262_v55 = vsel %vm2914_vm12, 0.0, %v10863_v9 }
 0x2b1   : > { %3095 = vmax.xlane.f32.xlu0 %v12215_v47  ;;  %14086 = vst [vmem:[#allocation60_spill] sm:$0xff] %v12238_v26  ;;  %v12241_v23 = vadd.f32 %v3039_v30, %v12227_v46  ;;  %v12255_v59 = vsel %vm2913_vm11, 0.0, %v10863_v9  ;;  %14088 = vst [vmem:[#allocation62_spill] sm:$0xff] %v12262_v55 }
 0x2b2   : > { %3097 = vmax.xlane.f32.xlu1 %v12223_v31  ;;  %14087 = vst [vmem:[#allocation61_spill] sm:$0xff] %v12255_v59 }
 0x2b5   : > { %v8944_v20 = vpop.f32.mrb[104].mxu0  ;;  %3091 = vmax.xlane.f32.xlu0 %v12235_v44 }
 0x2b6   : > { %v12250_v36 = vadd.f32 %v8944_v20, %v12238_v26  ;;  %v3052_v49 = vpop.f32.mrb[105].mxu0  ;;  %3093 = vmax.xlane.f32.xlu1 %v12241_v23  ;;  %v2899_v20 = vadd.s32 96, %v12160_v14 }
 0x2b7   : > { %v8945_v30 = vpop.f32.mrb[106].mxu0  ;;  %v12268_v12 = vadd.f32 %v3052_v49, %v12255_v59 }
 0x2b8   : > { %v12258_v27 = vadd.f32 %v8945_v30, %v12247_v40  ;;  %v3055_v25 = vpop.f32.mrb[107].mxu0  ;;  %vm2917_vm14 = vcmp.le.s32.totalorder %v12163_v54, %v2899_v20  ;;  %v2900_v20 = vadd.s32 104, %v12160_v14 }
 0x2b9   : > { %3103 = vmax.xlane.f32.xlu0 %v12250_v36  ;;  %v12274_v30 = vadd.f32 %v3055_v25, %v12262_v55  ;;  %v12283_v49 = vsel %vm2917_vm14, 0.0, %v10863_v9 }
 0x2ba   : > { %3105 = vmax.xlane.f32.xlu1 %v12258_v27  ;;  %14090 = vst [vmem:[#allocation64_spill] sm:$0xff] %v12283_v49  ;;  %vm2918_vm1 = vcmp.le.s32.totalorder %v12163_v54, %v2900_v20 }
 0x2bb   : > { %v12305_v32 = vsel %vm2918_vm1, 0.0, %v10863_v9 }
 0x2bc   : > { %14092 = vst [vmem:[#allocation66_spill] sm:$0xff] %v12305_v32 }
 0x2bd   : > { %v8948_v33 = vpop.f32.mrb[108].mxu0  ;;  %3099 = vmax.xlane.f32.xlu0 %v12268_v12 }
 0x2be   : > { %v12279_v34 = vadd.f32 %v8948_v33, %v12271_v38  ;;  %v3068_v17 = vpop.f32.mrb[109].mxu0  ;;  %3101 = vmax.xlane.f32.xlu1 %v12274_v30  ;;  %v2902_v33 = vadd.s32 120, %v12160_v14 }
 0x2bf   : > { %v8949_v13 = vpop.f32.mrb[110].mxu0  ;;  %v12287_v25 = vadd.f32 %v3068_v17, %v12283_v49 }
 0x2c0   : > { %v3071_v4 = vpop.f32.mrb[111].mxu0  ;;  %vm2920_vm15 = vcmp.le.s32.totalorder %v12163_v54, %v2902_v33 }
 0x2c1   : > { %3111 = vmax.xlane.f32.xlu0 %v12279_v34  ;;  %v12298_v29 = vsel %vm2920_vm15, 0.0, %v10863_v9 }
 0x2c2   : > { %14091 = vst [vmem:[#allocation65_spill] sm:$0xff] %v12298_v29  ;;  %v12302_v17 = vadd.f32 %v8949_v13, %v12298_v29 }
 0x2c5   : > { %3107 = vmax.xlane.f32.xlu0 %v12287_v25 }
 0x2cf   : > { %3394 = vrot.lane.b32.xlu1 %v11960_v5, %s10862_s11  ;;  %v12312_v5 = vpop.permute.xlu1 %3390 }
 0x2db   : > { %3392 = vrot.lane.b32.xlu0 %v11952_v58, %s10862_s11  ;;  %v12309_v58 = vadd.f32 %v3071_v4, %v12305_v32 }
 0x2f3   : > { %3113 = vmax.xlane.f32.xlu1 %v12302_v17 }
 0x2f7   : > { %3109 = vmax.xlane.f32.xlu1 %v12309_v58 }
 0x335   : > { %v3088_v33 = vpop.xlane.xlu1 %3087 }
 0x336   : > { %v3117_v14 = vsub.f32 %v12180_v18, %v3088_v33  ;;  %v3084_v57 = vpop.xlane.xlu0 %3083 }
 0x337   : > { %v3115_v54 = vsub.f32 %v12184_v16, %v3084_v57 }
 0x338   : > { %v3135_v13 = vmul.f32 1.442695, %v3117_v14 }
 0x339   : > { %v3131_v20 = vmul.f32 1.442695, %v3115_v54  ;;  %v3090_v56 = vpop.xlane.xlu1 %3089 }
 0x33a   : > { %10373 = vpow2.f32 %v3135_v13  ;;  %v3118_v9 = vsub.f32 %v12197_v1, %v3090_v56  ;;  %v3086_v53 = vpop.xlane.xlu0 %3085 }
 0x33b   : > { %v3116_v4 = vsub.f32 %v12202_v41, %v3086_v53  ;;  %10375 = vpow2.f32 %v3131_v20 }
 0x33c   : > { %v3137_v15 = vmul.f32 1.442695, %v3118_v9 }
 0x33d   : > { %v3133_v19 = vmul.f32 1.442695, %v3116_v4 }
 0x33e   : > { %10377 = vpow2.f32 %v3137_v15  ;;  %v3096_v53 = vpop.xlane.xlu0 %3095 }
 0x33f   : > { %10379 = vpow2.f32 %v3133_v19  ;;  %v3098_v14 = vpop.xlane.xlu1 %3097  ;;  %v3121_v41 = vsub.f32 %v12215_v47, %v3096_v53 }
 0x340   : > { %v3122_v4 = vsub.f32 %v12223_v31, %v3098_v14 }
 0x341   : > { %v3143_v13 = vmul.f32 1.442695, %v3121_v41 }
 0x342   : > { %v3092_v15 = vpop.xlane.xlu0 %3091  ;;  %v3145_v8 = vmul.f32 1.442695, %v3122_v4 }
 0x343   : > { %v3094_v1 = vpop.xlane.xlu1 %3093  ;;  %v3119_v33 = vsub.f32 %v12235_v44, %v3092_v15  ;;  %10381 = vpow2.f32 %v3143_v13 }
 0x344   : > { %v12318_v48 = vpop.eup %10373  ;;  %v3120_v20 = vsub.f32 %v12241_v23, %v3094_v1 }
 0x345   : > { %3167 = vadd.xlane.f32.xlu0 %v12318_v48  ;;  %v12321_v18 = vpop.eup %10375  ;;  %v3139_v32 = vmul.f32 1.442695, %v3119_v33 }
 0x346   : > { %v3104_v19 = vpop.xlane.xlu0 %3103 }
 0x347   : > { %v3106_v9 = vpop.xlane.xlu1 %3105  ;;  %10383 = vpow2.f32 %v3139_v32  ;;  %v3125_v43 = vsub.f32 %v12250_v36, %v3104_v19 }
 0x348   : > { %v12323_v57 = vpop.eup %10377  ;;  %v3126_v32 = vsub.f32 %v12258_v27, %v3106_v9 }
 0x349   : > { %3169 = vadd.xlane.f32.xlu1 %v12323_v57  ;;  %3163 = vadd.xlane.f32.xlu0 %v12321_v18  ;;  %v12327_v56 = vpop.eup %10379  ;;  %v3151_v23 = vmul.f32 1.442695, %v3125_v43 }
 0x34a   : > { %v3100_v16 = vpop.xlane.xlu0 %3099 }
 0x34b   : > { %v3102_v47 = vpop.xlane.xlu1 %3101  ;;  %v3123_v15 = vsub.f32 %v12268_v12, %v3100_v16  ;;  %v3153_v12 = vmul.f32 1.442695, %v3126_v32 }
 0x34d   : > { %3165 = vadd.xlane.f32.xlu1 %v12327_v56  ;;  %v12344_v1 = vpop.eup %10381  ;;  %v3147_v36 = vmul.f32 1.442695, %v3123_v15 }
 0x34e   : > { %v3112_v54 = vpop.xlane.xlu0 %3111 }
 0x34f   : > { %v12342_v14 = vpop.permute.xlu1 %3394 }
 0x352   : > { %v3108_v29 = vpop.xlane.xlu0 %3107 }
 0x353   : > { %v3127_v53 = vsub.f32 %v12287_v25, %v3108_v29  ;;  %v3124_v25 = vsub.f32 %v12274_v30, %v3102_v47 }
 0x355   : > { %v3155_v31 = vmul.f32 1.442695, %v3127_v53 }
 0x35e   : > { %3398 = vrot.lane.b32.xlu1 %v11982_v7, %s10862_s11  ;;  %v3141_v7 = vmul.f32 1.442695, %v3120_v20 }
 0x35f   : > { %3396 = vrot.lane.b32.xlu0 %v11970_v22, %s10862_s11  ;;  %v3129_v22 = vsub.f32 %v12279_v34, %v3112_v54  ;;  %v12348_v34 = vpop.eup %10383 }
 0x360   : > { %10385 = vpow2.f32 %v3141_v7 }
 0x361   : > { %v3159_v44 = vmul.f32 1.442695, %v3129_v22  ;;  %10387 = vpow2.f32 %v3145_v8 }
 0x363   : > { %10389 = vpow2.f32 %v3159_v44  ;;  %v3429_v44 = vsel %vm2937_vm0, %v12123_v62, 0 }
 0x364   : > { %10391 = vpow2.f32 %v3151_v23 }
 0x365   : > { %10393 = vpow2.f32 %v3155_v31 }
 0x366   : > { %10395 = vpow2.f32 %v3147_v36 }
 0x36a   : > { %v12350_v8 = vpop.eup %10385 }
 0x36b   : > { %v12356_v16 = vpop.eup %10387 }
 0x36d   : > { %v12358_v41 = vpop.eup %10389 }
 0x36e   : > { %v12363_v54 = vpop.eup %10391 }
 0x36f   : > { %v12365_v13 = vpop.eup %10393 }
 0x370   : > { %v12369_v20 = vpop.eup %10395 }
 0x37e   : > { %3175 = vadd.xlane.f32.xlu0 %v12344_v1 }
 0x380   : > { %v3114_v29 = vpop.xlane.xlu1 %3113 }
 0x381   : > { %v3130_v43 = vsub.f32 %v12302_v17, %v3114_v29  ;;  %v3149_v17 = vmul.f32 1.442695, %v3124_v25 }
 0x382   : > { %3173 = vadd.xlane.f32.xlu0 %v12350_v8  ;;  %3171 = vadd.xlane.f32.xlu1 %v12348_v34 }
 0x383   : > { %v3161_v19 = vmul.f32 1.442695, %v3130_v43 }
 0x384   : > { %v3110_v27 = vpop.xlane.xlu1 %3109 }
 0x385   : > { %10397 = vpow2.f32 %v3161_v19  ;;  %v3128_v33 = vsub.f32 %v12309_v58, %v3110_v27 }
 0x386   : > { %3177 = vadd.xlane.f32.xlu1 %v12356_v16  ;;  %3191 = vadd.xlane.f32.xlu0 %v12358_v41  ;;  %10399 = vpow2.f32 %v3153_v12 }
 0x387   : > { %10401 = vpow2.f32 %v3149_v17  ;;  %v3157_v30 = vmul.f32 1.442695, %v3128_v33 }
 0x389   : > { %10403 = vpow2.f32 %v3157_v30 }
 0x38a   : > { %3183 = vadd.xlane.f32.xlu1 %v12363_v54  ;;  %3187 = vadd.xlane.f32.xlu0 %v12365_v13 }
 0x38e   : > { %3179 = vadd.xlane.f32.xlu1 %v12369_v20 }
 0x38f   : > { %v12372_v9 = vpop.eup %10397 }
 0x390   : > { %3193 = vadd.xlane.f32.xlu0 %v12372_v9  ;;  %v12375_v58 = vpop.eup %10399 }
 0x391   : > { %v12378_v4 = vpop.eup %10401 }
 0x392   : > { %3185 = vadd.xlane.f32.xlu1 %v12375_v58 }
 0x393   : > { %v12381_v7 = vpop.eup %10403 }
 0x396   : > { %3181 = vadd.xlane.f32.xlu1 %v12378_v4 }
 0x39a   : > { %3189 = vadd.xlane.f32.xlu1 %v12381_v7 }
 0x3a6   : > { %3400 = vrot.lane.b32.xlu0 %v11994_v63, %s10862_s11 }
 0x3aa   : > { %3364 = vrot.lane.b32.xlu0 %v11808_v37, %s10862_s11  ;;  %v3393_v37 = vpop.permute.xlu0 %3392 }
 0x3ab   : > { %3402 = vrot.lane.b32.xlu1 %v12006_v0, %s10862_s11 }
 0x3ae   : > { %3368 = vrot.lane.b32.xlu0 %v11848_v24, %s10862_s11 }
 0x3af   : > { %3366 = vrot.lane.b32.xlu1 %v11825_v61, %s10862_s11 }
 0x3b2   : > { %3372 = vrot.lane.b32.xlu0 %v11892_v3, %s10862_s11 }
 0x3b3   : > { %3370 = vrot.lane.b32.xlu1 %v11874_v11, %s10862_s11 }
 0x3b6   : > { %3376 = vrot.lane.b32.xlu0 %v11915_v39, %s10862_s11 }
 0x3b7   : > { %3374 = vrot.lane.b32.xlu1 %v11905_v21, %s10862_s11 }
 0x3ba   : > { %3709 = vrot.lane.b32.xlu0 %v12060_v50, %s10862_s11 }
 0x3bb   : > { %3378 = vrot.lane.b32.xlu1 %v11925_v35, %s10862_s11 }
 0x3be   : > { %3713 = vrot.lane.b32.xlu0 %v12082_v10, %s10862_s11 }
 0x3bf   : > { %3711 = vrot.lane.b32.xlu1 %v12072_v28, %s10862_s11 }
 0x3d2   : > { %v3168_v61 = vpop.xlane.xlu0 %3167 }
 0x3d6   : > { %v3170_v24 = vpop.xlane.xlu1 %3169  ;;  %v3164_v11 = vpop.xlane.xlu0 %3163 }
 0x3d7   : > { %10405 = vrcp.f32 %v3170_v24 }
 0x3d8   : > { %10407 = vrcp.f32 %v3164_v11 }
 0x3d9   : > { %10409 = vrcp.f32 %v3168_v61 }
 0x3da   : > { %v3166_v3 = vpop.xlane.xlu1 %3165  ;;  %v3397_v62 = vpop.permute.xlu0 %3396 }
 0x3db   : > { %10411 = vrcp.f32 %v3166_v3  ;;  %v3441_v53 = vsel %vm2937_vm0, %v3397_v62, 0 }
 0x3e1   : > { %v10406_v21 = vpop.eup %10405 }
 0x3e2   : > { %v10408_v39 = vpop.eup %10407  ;;  %v3214_v35 = vmul.f32 %v10406_v21, %v12323_v57  ;;  %v3432_v57 = vsel %vm2937_vm0, %v12312_v5, 0 }
 0x3e3   : > { %v10410_v50 = vpop.eup %10409  ;;  %v3211_v0 = vmul.f32 %v10408_v39, %v12321_v18  ;;  %v3435_v18 = vsel %vm2937_vm0, %v3393_v37, 0 }
 0x3e4   : > { %v3213_v28 = vmul.f32 %v10410_v50, %v12318_v48  ;;  %v3438_v48 = vsel %vm2937_vm0, %v12342_v14, 0 }
 0x3e5   : > { %v10412_v63 = vpop.eup %10411 }
 0x3e6   : > { %v3212_v10 = vmul.f32 %v10412_v63, %v12327_v56  ;;  %v3228_v47 = vpack.c.bf16 %v3214_v35, %v3213_v28  ;;  %v3399_v56 = vpop.permute.xlu1 %3398 }
 0x3e7   : > { %v3444_v32 = vsel %vm2937_vm0, %v3399_v56, 0 }
 0x3e8   : > { %v3227_v22 = vpack.c.bf16 %v3212_v10, %v3211_v0 }
 0x3ea   : > { %8966 = vmatprep.mubr.bf16.mxu1 %v3227_v22 }
 0x3eb   : > { %8967 = vmatmul.mubr.bf16.vlgmr.msra.gmra.mrb[112].mxu1 %v3228_v47 }
 0x3ec   : > { %8983 = vmatpush3.bf16.xpose.msra.mxu1 %v3429_v44 }
 0x3ed   : > { %9831 = vmatprep.subr.msk.bf16.mxu1 %vm2937_vm0, %v12312_v5 }
 0x3f4   : > { %8985 = vmatpush3.bf16.xpose.msra.mxu1 %v3432_v57 }
 0x3f5   : > { %9832 = vmatprep.subr.msk.bf16.mxu1 %vm2937_vm0, %v3393_v37 }
 0x3fc   : > { %8987 = vmatpush3.bf16.xpose.msra.mxu1 %v3435_v18 }
 0x3fd   : > { %9833 = vmatprep.subr.msk.bf16.mxu1 %vm2937_vm0, %v12342_v14 }
 0x404   : > { %8989 = vmatpush3.bf16.xpose.msra.mxu1 %v3438_v48 }
 0x405   : > { %9834 = vmatprep.subr.msk.bf16.mxu1 %vm2937_vm0, %v3397_v62 }
 0x40b   : > { %v3176_v5 = vpop.xlane.xlu0 %3175 }
 0x40c   : > { %8991 = vmatpush3.bf16.xpose.msra.mxu1 %v3441_v53 }
 0x40d   : > { %9835 = vmatprep.subr.msk.bf16.mxu1 %vm2937_vm0, %v3399_v56 }
 0x40f   : > { %v3172_v23 = vpop.xlane.xlu1 %3171  ;;  %v3174_v15 = vpop.xlane.xlu0 %3173 }
 0x410   : > { %10413 = vrcp.f32 %v3172_v23 }
 0x411   : > { %10415 = vrcp.f32 %v3174_v15 }
 0x412   : > { %10417 = vrcp.f32 %v3176_v5 }
 0x413   : > { %v3178_v31 = vpop.xlane.xlu1 %3177  ;;  %v3192_v14 = vpop.xlane.xlu0 %3191 }
 0x414   : > { %10419 = vrcp.f32 %v3178_v31  ;;  %8993 = vmatpush3.bf16.xpose.msra.mxu1 %v3444_v32 }
 0x417   : > { %v3184_v36 = vpop.xlane.xlu1 %3183  ;;  %v3188_v29 = vpop.xlane.xlu0 %3187 }
 0x41a   : > { %v10414_v43 = vpop.eup %10413 }
 0x41b   : > { %v10416_v12 = vpop.eup %10415  ;;  %v3180_v25 = vpop.xlane.xlu1 %3179  ;;  %v3215_v19 = vmul.f32 %v10414_v43, %v12348_v34 }
 0x41c   : > { %v10418_v27 = vpop.eup %10417  ;;  %v3216_v17 = vmul.f32 %v10416_v12, %v12350_v8 }
 0x41d   : > { %v3194_v33 = vpop.xlane.xlu0 %3193  ;;  %v3217_v24 = vmul.f32 %v10418_v27, %v12344_v1 }
 0x41e   : > { %v10420_v30 = vpop.eup %10419  ;;  %v3229_v37 = vpack.c.bf16 %v3216_v17, %v3215_v19 }
 0x41f   : > { %v3186_v61 = vpop.xlane.xlu1 %3185  ;;  %v3218_v11 = vmul.f32 %v10420_v30, %v12356_v16 }
 0x420   : > { %8970 = vmatprep.mubr.bf16.mxu1 %v3229_v37  ;;  %10421 = vrcp.f32 %v3186_v61 }
 0x421   : > { %v3401_v3 = vpop.permute.xlu0 %3400  ;;  %v3230_v21 = vpack.c.bf16 %v3218_v11, %v3217_v24  ;;  %10423 = vrcp.f32 %v3180_v25 }
 0x422   : > { %9836 = vmatprep.subr.msk.bf16.mxu1 %vm2937_vm0, %v3401_v3  ;;  %v3447_v34 = vsel %vm2937_vm0, %v3401_v3, 0  ;;  %10425 = vrcp.f32 %v3184_v36 }
 0x423   : > { %v3182_v39 = vpop.xlane.xlu1 %3181  ;;  %8971 = vmatmul.mubr.bf16.gmra.mrb[116].mxu1 %v3230_v21 }
 0x424   : > { %10427 = vrcp.f32 %v3182_v39  ;;  %8995 = vmatpush3.bf16.xpose.msra.mxu1 %v3447_v34 }
 0x425   : > { %v3365_v8 = vpop.permute.xlu0 %3364  ;;  %10429 = vrcp.f32 %v3188_v29 }
 0x427   : > { %v3190_v50 = vpop.xlane.xlu1 %3189 }
 0x428   : > { %10431 = vrcp.f32 %v3190_v50 }
 0x429   : > { %10433 = vrcp.f32 %v3194_v33  ;;  %v3369_v1 = vpop.permute.xlu0 %3368 }
 0x42a   : > { %v10422_v16 = vpop.eup %10421  ;;  %10435 = vrcp.f32 %v3192_v14 }
 0x42b   : > { %v3403_v63 = vpop.permute.xlu1 %3402  ;;  %v10424_v35 = vpop.eup %10423  ;;  %v3222_v47 = vmul.f32 %v10422_v16, %v12375_v58 }
 0x42c   : > { %9837 = vmatprep.subr.msk.bf16.mxu1 %vm2937_vm0, %v3403_v63  ;;  %v3450_v0 = vsel %vm2937_vm0, %v3403_v63, 0  ;;  %v10426_v10 = vpop.eup %10425  ;;  %v3219_v57 = vmul.f32 %v10424_v35, %v12369_v20 }
 0x42d   : > { %8997 = vmatpush3.bf16.xpose.msra.mxu1 %v3450_v0  ;;  %v3373_v28 = vpop.permute.xlu0 %3372  ;;  %v3221_v62 = vmul.f32 %v10426_v10, %v12363_v54 }
 0x42e   : > { %v10428_v22 = vpop.eup %10427 }
 0x42f   : > { %v3367_v44 = vpop.permute.xlu1 %3366  ;;  %v3220_v18 = vmul.f32 %v10428_v22, %v12378_v4  ;;  %v10430_v48 = vpop.eup %10429  ;;  %v3232_v23 = vpack.c.bf16 %v3222_v47, %v3221_v62 }
 0x430   : > { %v3223_v32 = vmul.f32 %v10430_v48, %v12365_v13 }
 0x431   : > { %v3377_v56 = vpop.permute.xlu0 %3376  ;;  %v3231_v53 = vpack.c.bf16 %v3220_v18, %v3219_v57 }
 0x432   : > { %v10432_v5 = vpop.eup %10431 }
 0x433   : > { %v10434_v15 = vpop.eup %10433  ;;  %v3371_v31 = vpop.permute.xlu1 %3370  ;;  %8974 = vmatprep.mubr.bf16.mxu1 %v3231_v53  ;;  %v3224_v14 = vmul.f32 %v10432_v5, %v12381_v7 }
 0x434   : > { %8975 = vmatmul.mubr.bf16.gmra.mrb[120].mxu1 %v3232_v23  ;;  %v10436_v58 = vpop.eup %10435  ;;  %v3226_v4 = vmul.f32 %v10434_v15, %v12372_v9 }
 0x435   : > { %v3710_v36 = vpop.permute.xlu0 %3709  ;;  %v3233_v20 = vpack.c.bf16 %v3224_v14, %v3223_v32  ;;  %v3225_v54 = vmul.f32 %v10436_v58, %v12358_v41 }
 0x436   : > { %9014 = vmatprep.subr.bf16.mxu0 %v3710_v36 }
 0x437   : > { %v3375_v29 = vpop.permute.xlu1 %3374  ;;  %8978 = vmatprep.mubr.bf16.mxu1 %v3233_v20  ;;  %9015 = vmatpush3.bf16.msra.mxu0 %v3710_v36  ;;  %v3234_v43 = vpack.c.bf16 %v3226_v4, %v3225_v54 }
 0x439   : > { %v3714_v7 = vpop.permute.xlu0 %3713 }
 0x43b   : > { %v3379_v12 = vpop.permute.xlu1 %3378 }
 0x43c   : > { %8979 = vmatmul.mubr.bf16.gmra.mrb[124].mxu1 %v3234_v43 }
 0x43d   : > { %8998 = vmatprep.mubr.msk.bf16.mxu1 %vm2937_vm0, %v3365_v8 }
 0x43f   : > { %v3712_v13 = vpop.permute.xlu1 %3711 }
 0x440   : > { %9016 = vmatprep.subr.bf16.mxu0 %v3712_v13 }
 0x441   : > { %9017 = vmatpush3.bf16.msra.mxu0 %v3712_v13 }
 0x442   : > { %9018 = vmatprep.subr.bf16.mxu0 %v3714_v7 }
 0x444   : > { %8999 = vmatmul.mubr.msk.bf16.vlgmr.msra.gmra.mrb[128].mxu1 %vm2937_vm0, %v3367_v44 }
 0x445   : > { %9002 = vmatprep.mubr.msk.bf16.mxu1 %vm2937_vm0, %v3369_v1  ;;  %9019 = vmatpush3.bf16.msra.mxu0 %v3714_v7 }
 0x44c   : > { %9003 = vmatmul.mubr.msk.bf16.gmra.mrb[132].mxu1 %vm2937_vm0, %v3371_v31 }
 0x44d   : > { %9006 = vmatprep.mubr.msk.bf16.mxu1 %vm2937_vm0, %v3373_v28 }
 0x454   : > { %9007 = vmatmul.mubr.msk.bf16.gmra.mrb[136].mxu1 %vm2937_vm0, %v3375_v29 }
 0x455   : > { %9010 = vmatprep.mubr.msk.bf16.mxu1 %vm2937_vm0, %v3377_v56 }
 0x45c   : > { %9011 = vmatmul.mubr.msk.bf16.gmra.mrb[140].mxu1 %vm2937_vm0, %v3379_v12 }
 0x4be   : > { %v8968_v41 = vpop.f32.mrb[112].mxu1 }
 0x4bf   : > { %v3269_v9 = vpop.f32.mrb[113].mxu1 }
 0x4c0   : > { %v8969_v25 = vpop.f32.mrb[114].mxu1 }
 0x4c1   : > { %v12454_v19 = vpack.c.bf16 %v8969_v25, %v8968_v41  ;;  %v3272_v27 = vpop.f32.mrb[115].mxu1 }
 0x4c2   : > { %v12456_v17 = vpack.c.bf16 %v3272_v27, %v3269_v9 }
 0x4f6   : > { %v8972_v33 = vpop.f32.mrb[116].mxu1 }
 0x4f7   : > { %v3285_v30 = vpop.f32.mrb[117].mxu1 }
 0x4f8   : > { %v8973_v37 = vpop.f32.mrb[118].mxu1 }
 0x4f9   : > { %v12458_v61 = vpack.c.bf16 %v8973_v37, %v8972_v33  ;;  %v3288_v24 = vpop.f32.mrb[119].mxu1  ;;  %v14093_v33 = vld [vmem:[#allocation42_spill] sm:$0xff]  ;;  %v14095_v37 = vld [vmem:[#allocation65_spill] sm:$0xff] }
 0x4fa   : > { %v12460_v11 = vpack.c.bf16 %v3288_v24, %v3285_v30  ;;  %v14094_v30 = vld [vmem:[#allocation40_spill] sm:$0xff] }
 0x507   : > { %v8976_v3 = vpop.f32.mrb[120].mxu1 }
 0x508   : > { %v3301_v21 = vpop.f32.mrb[121].mxu1 }
 0x509   : > { %v8977_v34 = vpop.f32.mrb[122].mxu1 }
 0x50a   : > { %v12462_v39 = vpack.c.bf16 %v8977_v34, %v8976_v3  ;;  %v3304_v8 = vpop.f32.mrb[123].mxu1  ;;  %v14096_v3 = vld [vmem:[#allocation66_spill] sm:$0xff]  ;;  %v14097_v34 = vld [vmem:[#allocation44_spill] sm:$0xff] }
 0x50b   : > { %v12464_v50 = vpack.c.bf16 %v3304_v8, %v3301_v21 }
 0x50f   : > { %v8980_v1 = vpop.f32.mrb[124].mxu1 }
 0x510   : > { %v3317_v16 = vpop.f32.mrb[125].mxu1 }
 0x511   : > { %v8981_v63 = vpop.f32.mrb[126].mxu1 }
 0x512   : > { %v12466_v35 = vpack.c.bf16 %v8981_v63, %v8980_v1  ;;  %v3320_v0 = vpop.f32.mrb[127].mxu1 }
 0x513   : > { %v12468_v10 = vpack.c.bf16 %v3320_v0, %v3317_v16 }
 0x517   : > { %v9000_v28 = vpop.f32.mrb[128].mxu1 }
 0x518   : > { %v3495_v22 = vadd.f32 %v9000_v28, %v12171_v42  ;;  %v3486_v47 = vpop.f32.mrb[129].mxu1 }
 0x519   : > { %v9001_v44 = vpop.f32.mrb[130].mxu1  ;;  %v3487_v48 = vadd.f32 %v3486_v47, %v12174_v45 }
 0x51a   : > { %3553 = vmax.xlane.f32.xlu0 %v3495_v22  ;;  %v3489_v57 = vpop.f32.mrb[131].mxu1  ;;  %v3498_v56 = vadd.f32 %v9001_v44, %v12187_v6 }
 0x51b   : > { %v3490_v18 = vadd.f32 %v3489_v57, %v12191_v51 }
 0x51d   : > { %3551 = vmax.xlane.f32.xlu1 %v3490_v18 }
 0x51e   : > { %3549 = vmax.xlane.f32.xlu0 %v3487_v48 }
 0x51f   : > { %v9004_v62 = vpop.f32.mrb[132].mxu1 }
 0x520   : > { %v3502_v53 = vpop.f32.mrb[133].mxu1  ;;  %v3511_v31 = vadd.f32 %v9004_v62, %v12205_v2 }
 0x521   : > { %v9005_v5 = vpop.f32.mrb[134].mxu1  ;;  %v3503_v58 = vadd.f32 %v3502_v53, %v12220_v60 }
 0x522   : > { %v12475_v23 = vadd.f32 %v9005_v5, %v12212_v52  ;;  %3555 = vmax.xlane.f32.xlu0 %v3498_v56  ;;  %v3505_v15 = vpop.f32.mrb[135].mxu1 }
 0x523   : > { %v3506_v32 = vadd.f32 %v3505_v15, %v12227_v46 }
 0x524   : > { %3563 = vmax.xlane.f32.xlu1 %v12475_v23 }
 0x526   : > { %3561 = vmax.xlane.f32.xlu0 %v3511_v31 }
 0x527   : > { %v9008_v14 = vpop.f32.mrb[136].mxu1 }
 0x528   : > { %3559 = vmax.xlane.f32.xlu1 %v3506_v32  ;;  %v3518_v36 = vpop.f32.mrb[137].mxu1  ;;  %v3527_v54 = vadd.f32 %v9008_v14, %v12238_v26 }
 0x529   : > { %v9009_v20 = vpop.f32.mrb[138].mxu1  ;;  %v12490_v13 = vadd.f32 %v3518_v36, %v12255_v59 }
 0x52a   : > { %v12482_v4 = vadd.f32 %v9009_v20, %v12247_v40  ;;  %3557 = vmax.xlane.f32.xlu0 %v3503_v58  ;;  %v3521_v29 = vpop.f32.mrb[139].mxu1 }
 0x52b   : > { %v12487_v43 = vadd.f32 %v3521_v29, %v12262_v55 }
 0x52c   : > { %3571 = vmax.xlane.f32.xlu1 %v12482_v4 }
 0x52e   : > { %3569 = vmax.xlane.f32.xlu0 %v3527_v54 }
 0x52f   : > { %v9012_v12 = vpop.f32.mrb[140].mxu1 }
 0x530   : > { %3567 = vmax.xlane.f32.xlu1 %v12487_v43  ;;  %v3534_v7 = vpop.f32.mrb[141].mxu1  ;;  %v12495_v25 = vadd.f32 %v9012_v12, %v12271_v38 }
 0x531   : > { %v9013_v41 = vpop.f32.mrb[142].mxu1  ;;  %v12499_v27 = vadd.f32 %v3534_v7, %v12283_v49 }
 0x532   : > { %3565 = vmax.xlane.f32.xlu0 %v12490_v13  ;;  %v3537_v9 = vpop.f32.mrb[143].mxu1  ;;  %v12507_v24 = vadd.f32 %v9013_v41, %v14095_v37 }
 0x533   : > { %v12511_v21 = vadd.f32 %v3537_v9, %v14096_v3 }
 0x536   : > { %3577 = vmax.xlane.f32.xlu0 %v12495_v25 }
 0x53a   : > { %3573 = vmax.xlane.f32.xlu0 %v12499_v27 }
 0x541   : > { %3717 = vrot.lane.b32.xlu1 %v14093_v33, %s10862_s11 }
 0x550   : > { %3715 = vrot.lane.b32.xlu0 %v14094_v30, %s10862_s11 }
 0x565   : > { %3579 = vmax.xlane.f32.xlu1 %v12507_v24 }
 0x569   : > { %3575 = vmax.xlane.f32.xlu1 %v12511_v21 }
 0x57a   : > { %3719 = vrot.lane.b32.xlu1 %v14097_v34, %s10862_s11 }
 0x5a7   : > { %v3554_v8 = vpop.xlane.xlu0 %3553 }
 0x5a8   : > { %v3583_v1 = vsub.f32 %v3495_v22, %v3554_v8 }
 0x5aa   : > { %v3601_v16 = vmul.f32 1.442695, %v3583_v1  ;;  %v3552_v0 = vpop.xlane.xlu1 %3551 }
 0x5ab   : > { %v3550_v63 = vpop.xlane.xlu0 %3549  ;;  %v3582_v44 = vsub.f32 %v3490_v18, %v3552_v0 }
 0x5ac   : > { %10437 = vpow2.f32 %v3601_v16  ;;  %v3581_v28 = vsub.f32 %v3487_v48, %v3550_v63 }
 0x5ad   : > { %v3599_v15 = vmul.f32 1.442695, %v3582_v44 }
 0x5ae   : > { %v3597_v47 = vmul.f32 1.442695, %v3581_v28 }
 0x5af   : > { %v3556_v57 = vpop.xlane.xlu0 %3555 }
 0x5b0   : > { %10439 = vpow2.f32 %v3597_v47  ;;  %v3584_v62 = vsub.f32 %v3498_v56, %v3556_v57 }
 0x5b1   : > { %v3564_v53 = vpop.xlane.xlu1 %3563 }
 0x5b2   : > { %v3603_v5 = vmul.f32 1.442695, %v3584_v62  ;;  %v3588_v18 = vsub.f32 %v12475_v23, %v3564_v53 }
 0x5b3   : > { %v3562_v14 = vpop.xlane.xlu0 %3561 }
 0x5b4   : > { %10441 = vpow2.f32 %v3603_v5  ;;  %v3587_v36 = vsub.f32 %v3511_v31, %v3562_v14  ;;  %v3611_v30 = vmul.f32 1.442695, %v3588_v18 }
 0x5b5   : > { %v3560_v20 = vpop.xlane.xlu1 %3559  ;;  %10443 = vpow2.f32 %v3599_v15 }
 0x5b6   : > { %v12516_v29 = vpop.eup %10437  ;;  %v3609_v22 = vmul.f32 1.442695, %v3587_v36  ;;  %v3586_v12 = vsub.f32 %v3506_v32, %v3560_v20 }
 0x5b7   : > { %3633 = vadd.xlane.f32.xlu1 %v12516_v29  ;;  %v3558_v48 = vpop.xlane.xlu0 %3557 }
 0x5b8   : > { %10445 = vpow2.f32 %v3609_v22  ;;  %v3607_v7 = vmul.f32 1.442695, %v3586_v12  ;;  %v3585_v56 = vsub.f32 %v3503_v58, %v3558_v48  ;;  %v14098_v22 = vld [vmem:[#allocation48_spill] sm:$0xff]  ;;  %v14099_v12 = vld [vmem:[#allocation46_spill] sm:$0xff] }
 0x5b9   : > { %v3572_v33 = vpop.xlane.xlu1 %3571 }
 0x5ba   : > { %v12520_v41 = vpop.eup %10439  ;;  %v3605_v9 = vmul.f32 1.442695, %v3585_v56  ;;  %10447 = vpow2.f32 %v3607_v7  ;;  %v3592_v58 = vsub.f32 %v12482_v4, %v3572_v33 }
 0x5bb   : > { %3629 = vadd.xlane.f32.xlu1 %v12520_v41  ;;  %v3570_v31 = vpop.xlane.xlu0 %3569 }
 0x5bc   : > { %10449 = vpow2.f32 %v3605_v9  ;;  %v3591_v32 = vsub.f32 %v3527_v54, %v3570_v31  ;;  %v3619_v47 = vmul.f32 1.442695, %v3592_v58 }
 0x5bd   : > { %10451 = vpow2.f32 %v3611_v30  ;;  %v3568_v63 = vpop.xlane.xlu1 %3567 }
 0x5be   : > { %v12523_v34 = vpop.eup %10441  ;;  %v3617_v8 = vmul.f32 1.442695, %v3591_v32  ;;  %v3590_v44 = vsub.f32 %v12487_v43, %v3568_v63 }
 0x5bf   : > { %3635 = vadd.xlane.f32.xlu1 %v12523_v34  ;;  %v3566_v23 = vpop.xlane.xlu0 %3565  ;;  %v12528_v16 = vpop.eup %10443 }
 0x5c0   : > { %v3589_v1 = vsub.f32 %v12490_v13, %v3566_v23  ;;  %10453 = vpow2.f32 %v3617_v8  ;;  %v3615_v62 = vmul.f32 1.442695, %v3590_v44 }
 0x5c1   : > { %v3718_v15 = vpop.permute.xlu1 %3717 }
 0x5c2   : > { %v12530_v0 = vpop.eup %10445  ;;  %v3613_v28 = vmul.f32 1.442695, %v3589_v1 }
 0x5c3   : > { %3631 = vadd.xlane.f32.xlu1 %v12528_v16  ;;  %3641 = vadd.xlane.f32.xlu0 %v12530_v0  ;;  %v3578_v54 = vpop.xlane.xlu0 %3577 }
 0x5c4   : > { %10455 = vpow2.f32 %v3613_v28  ;;  %v12535_v57 = vpop.eup %10447  ;;  %v3595_v32 = vsub.f32 %v12495_v25, %v3578_v54 }
 0x5c5   : > { %10457 = vpow2.f32 %v3619_v47 }
 0x5c6   : > { %v12537_v4 = vpop.eup %10449  ;;  %10459 = vpow2.f32 %v3615_v62  ;;  %v3625_v23 = vmul.f32 1.442695, %v3595_v32 }
 0x5c7   : > { %3639 = vadd.xlane.f32.xlu1 %v12535_v57  ;;  %3637 = vadd.xlane.f32.xlu0 %v12537_v4  ;;  %v3574_v13 = vpop.xlane.xlu0 %3573  ;;  %v12541_v53 = vpop.eup %10451 }
 0x5c8   : > { %v3593_v48 = vsub.f32 %v12499_v27, %v3574_v13 }
 0x5ca   : > { %v12544_v43 = vpop.eup %10453  ;;  %v3621_v7 = vmul.f32 1.442695, %v3593_v48 }
 0x5cb   : > { %3643 = vadd.xlane.f32.xlu0 %v12541_v53  ;;  %v3716_v5 = vpop.permute.xlu0 %3715 }
 0x5cc   : > { %9020 = vmatprep.subr.bf16.mxu0 %v3716_v5  ;;  %10461 = vpow2.f32 %v3621_v7 }
 0x5cd   : > { %9021 = vmatpush3.bf16.msra.mxu0 %v3716_v5 }
 0x5ce   : > { %v12546_v14 = vpop.eup %10455  ;;  %9022 = vmatprep.subr.bf16.mxu0 %v3718_v15 }
 0x5cf   : > { %3649 = vadd.xlane.f32.xlu0 %v12544_v43  ;;  %3645 = vadd.xlane.f32.xlu1 %v12546_v14  ;;  %v12550_v36 = vpop.eup %10457 }
 0x5d0   : > { %v12553_v20 = vpop.eup %10459 }
 0x5d1   : > { %9023 = vmatpush3.bf16.msra.mxu0 %v3718_v15 }
 0x5d3   : > { %3651 = vadd.xlane.f32.xlu0 %v12550_v36 }
 0x5d6   : > { %v12564_v58 = vpop.eup %10461 }
 0x5d7   : > { %3647 = vadd.xlane.f32.xlu0 %v12553_v20 }
 0x5e0   : > { %3723 = vrot.lane.b32.xlu1 %v14098_v22, %s10862_s11 }
 0x5ed   : > { %3721 = vrot.lane.b32.xlu0 %v14099_v12, %s10862_s11 }
 0x5f2   : > { %v3580_v18 = vpop.xlane.xlu1 %3579 }
 0x5f3   : > { %v3596_v56 = vsub.f32 %v12507_v24, %v3580_v18 }
 0x5f5   : > { %v3627_v33 = vmul.f32 1.442695, %v3596_v56 }
 0x5f6   : > { %v3576_v9 = vpop.xlane.xlu1 %3575 }
 0x5f7   : > { %v3594_v31 = vsub.f32 %v12511_v21, %v3576_v9  ;;  %10463 = vpow2.f32 %v3627_v33 }
 0x5f9   : > { %v3623_v8 = vmul.f32 1.442695, %v3594_v31 }
 0x5fa   : > { %v3720_v30 = vpop.permute.xlu1 %3719 }
 0x5fb   : > { %9024 = vmatprep.subr.bf16.mxu0 %v3720_v30  ;;  %10465 = vpow2.f32 %v3623_v8  ;;  %v10279_v8 = vld [vmem:[%s13940_s2 + $0x64] ss:$12 sps:$4 sm:$0xff]  }
 0x5fc   : > { %9025 = vmatpush3.bf16.msra.mxu0 %v3720_v30  ;;  %10467 = vpow2.f32 %v3625_v23 }
 0x601   : > { %v12567_v27 = vpop.eup %10463 }
 0x604   : > { %3653 = vadd.xlane.f32.xlu1 %v12564_v58 }
 0x605   : > { %v12570_v24 = vpop.eup %10465 }
 0x606   : > { %v12573_v21 = vpop.eup %10467 }
 0x608   : > { %3659 = vadd.xlane.f32.xlu1 %v12567_v27 }
 0x60c   : > { %3655 = vadd.xlane.f32.xlu0 %v12570_v24 }
 0x610   : > { %3657 = vadd.xlane.f32.xlu0 %v12573_v21 }
 0x644   : > { %v3634_v25 = vpop.xlane.xlu1 %3633 }
 0x648   : > { %v3630_v1 = vpop.xlane.xlu1 %3629 }
 0x649   : > { %10469 = vrcp.f32 %v3630_v1 }
 0x64c   : > { %v3636_v63 = vpop.xlane.xlu1 %3635 }
 0x650   : > { %v3632_v28 = vpop.xlane.xlu1 %3631  ;;  %v3642_v54 = vpop.xlane.xlu0 %3641 }
 0x651   : > { %10471 = vrcp.f32 %v3632_v28 }
 0x652   : > { %10473 = vrcp.f32 %v3636_v63  ;;  %v10277_v63 = vld [vmem:[%s13940_s2 + $0x60] ss:$12 sps:$4 sm:$0xff]  }
 0x653   : > { %v10470_v13 = vpop.eup %10469 }
 0x654   : > { %v3638_v47 = vpop.xlane.xlu0 %3637  ;;  %v3640_v5 = vpop.xlane.xlu1 %3639  ;;  %v3677_v22 = vmul.f32 %v10470_v13, %v12520_v41 }
 0x655   : > { %10475 = vrcp.f32 %v3640_v5 }
 0x656   : > { %10477 = vrcp.f32 %v3638_v47 }
 0x657   : > { %10479 = vrcp.f32 %v3634_v25 }
 0x658   : > { %v3644_v44 = vpop.xlane.xlu0 %3643 }
 0x659   : > { %10481 = vrcp.f32 %v3644_v44 }
 0x65b   : > { %v10472_v62 = vpop.eup %10471 }
 0x65c   : > { %v3650_v15 = vpop.xlane.xlu0 %3649  ;;  %v3678_v12 = vmul.f32 %v10472_v62, %v12528_v16  ;;  %v3646_v7 = vpop.xlane.xlu1 %3645  ;;  %v10285_v62 = vld [vmem:[%s13940_s2 + $0x94] ss:$12 sps:$4 sm:$0xff]  }
 0x65d   : > { %v10474_v9 = vpop.eup %10473 }
 0x65e   : > { %v3693_v48 = vpack.c.bf16 %v3678_v12, %v3677_v22  ;;  %v3680_v32 = vmul.f32 %v10474_v9, %v12523_v34  ;;  %v10282_v34 = vld [vmem:[%s13940_s2 + $0x7c] ss:$12 sps:$4 sm:$0xff]  }
 0x65f   : > { %v10476_v33 = vpop.eup %10475  ;;  %v10283_v12 = vld [vmem:[%s13940_s2 + $0x90] ss:$12 sps:$4 sm:$0xff]  }
 0x660   : > { %9030 = vmatprep.mubr.bf16.mxu0 %v3693_v48  ;;  %v3652_v18 = vpop.xlane.xlu0 %3651  ;;  %v10478_v30 = vpop.eup %10477  ;;  %v3682_v25 = vmul.f32 %v10476_v33, %v12535_v57 }
 0x661   : > { %v10480_v41 = vpop.eup %10479  ;;  %v3724_v16 = vpop.permute.xlu1 %3723  ;;  %v3681_v23 = vmul.f32 %v10478_v30, %v12537_v4 }
 0x662   : > { %v3679_v1 = vmul.f32 %v10480_v41, %v12516_v29  ;;  %v10280_v29 = vld [vmem:[%s13940_s2 + $0x78] ss:$12 sps:$4 sm:$0xff]  }
 0x663   : > { %v3695_v47 = vpack.c.bf16 %v3682_v25, %v3681_v23 }
 0x664   : > { %v3648_v56 = vpop.xlane.xlu0 %3647  ;;  %v3694_v28 = vpack.c.bf16 %v3680_v32, %v3679_v1 }
 0x665   : > { %10483 = vrcp.f32 %v3648_v56 }
 0x666   : > { %10485 = vrcp.f32 %v3642_v54  ;;  %v10482_v54 = vpop.eup %10481 }
 0x667   : > { %10487 = vrcp.f32 %v3646_v7  ;;  %v3684_v13 = vmul.f32 %v10482_v54, %v12541_v53  ;;  %v10293_v54 = vld [vmem:[%s13940_s2 + $0x8] ss:$12 sps:$4 sm:$0xff]  }
 0x668   : > { %v3722_v31 = vpop.permute.xlu0 %3721  ;;  %10489 = vrcp.f32 %v3652_v18 }
 0x669   : > { %9026 = vmatprep.subr.bf16.mxu0 %v3722_v31  ;;  %10491 = vrcp.f32 %v3650_v15 }
 0x66a   : > { %9027 = vmatpush3.bf16.msra.mxu0 %v3722_v31 }
 0x66b   : > { %9028 = vmatprep.subr.bf16.mxu0 %v3724_v16 }
 0x66e   : > { %9029 = vmatpush3.bf16.msra.mxu0 %v3724_v16 }
 0x66f   : > { %3942 = vmatprep.subr.bf16.mxu0 %v10279_v8  ;;  %v10484_v4 = vpop.eup %10483 }
 0x670   : > { %v10486_v57 = vpop.eup %10485  ;;  %v3686_v5 = vmul.f32 %v10484_v4, %v12553_v20 }
 0x671   : > { %9031 = vmatmul.mubr.bf16.vlgmr.msra.gmra.mrb[112].mxu0 %v3694_v28  ;;  %v10488_v44 = vpop.eup %10487  ;;  %v3683_v15 = vmul.f32 %v10486_v57, %v12530_v0  ;;  %v10288_v28 = vld [vmem:[%s13940_s2 + $0xac] ss:$12 sps:$4 sm:$0xff]  }
 0x672   : > { %9034 = vmatprep.mubr.bf16.mxu0 %v3695_v47  ;;  %3943 = vmatpush1.bf16.msra.mxu0 %v10277_v63  ;;  %v3685_v22 = vmul.f32 %v10488_v44, %v12546_v14  ;;  %v10490_v18 = vpop.eup %10489  ;;  %v14100_v63 = vmov 0  }
 0x673   : > { %3944 = vmatprep.subr.bf16.mxu0 %v10282_v34  ;;  %v3696_v48 = vpack.c.bf16 %v3684_v13, %v3683_v15  ;;  %v10492_v7 = vpop.eup %10491  ;;  %v3688_v56 = vmul.f32 %v10490_v18, %v12550_v36  ;;  %v10292_v34 = vld [vmem:[%s13940_s2 + $0xb0] ss:$12 sps:$4 sm:$0xff]  }
 0x674   : > { %v3697_v53 = vpack.c.bf16 %v3686_v5, %v3685_v22  ;;  %v3687_v20 = vmul.f32 %v10492_v7, %v12544_v43 }
 0x676   : > { %3945 = vmatpush1.bf16.msra.mxu0 %v10280_v29  ;;  %v3698_v0 = vpack.c.bf16 %v3688_v56, %v3687_v20 }
 0x677   : > { %3946 = vmatprep.subr.bf16.mxu0 %v10285_v62 }
 0x679   : > { %9035 = vmatmul.mubr.bf16.gmra.mrb[116].mxu0 %v3696_v48 }
 0x67a   : > { %9038 = vmatprep.mubr.bf16.mxu0 %v3697_v53  ;;  %3947 = vmatpush1.bf16.msra.mxu0 %v10283_v12  ;;  %v10299_v53 = vld [vmem:[%s13940_s2 + $0x4] ss:$12 sps:$4 sm:$0xff]  }
 0x67b   : > { %3948 = vmatprep.subr.bf16.mxu0 %v10288_v28  ;;  %v10302_v28 = vld [vmem:[%s13940_s2 + $0x1c] ss:$12 sps:$4 sm:$0xff]  }
 0x681   : > { %9039 = vmatmul.mubr.bf16.gmra.mrb[120].mxu0 %v3698_v0 }
 0x691   : > { %v3654_v14 = vpop.xlane.xlu1 %3653 }
 0x692   : > { %10493 = vrcp.f32 %v3654_v14 }
 0x695   : > { %v3660_v9 = vpop.xlane.xlu1 %3659 }
 0x699   : > { %v3656_v33 = vpop.xlane.xlu0 %3655 }
 0x69a   : > { %10495 = vrcp.f32 %v3656_v33  ;;  %v10295_v33 = vld [vmem:[%s13940_s2 + $0x38] ss:$12 sps:$4 sm:$0xff]  }
 0x69b   : > { %10497 = vrcp.f32 %v3660_v9  ;;  %v10294_v9 = vld [vmem:[%s13940_s2 + $0x20] ss:$12 sps:$4 sm:$0xff]  }
 0x69c   : > { %v10494_v30 = vpop.eup %10493 }
 0x69d   : > { %v3658_v31 = vpop.xlane.xlu0 %3657  ;;  %v3689_v16 = vmul.f32 %v10494_v30, %v12564_v58  ;;  %v10286_v58 = vld [vmem:[%s13940_s2 + $0xa8] ss:$12 sps:$4 sm:$0xff]  }
 0x69e   : > { %10499 = vrcp.f32 %v3658_v31  ;;  %3949 = vmatpush1.bf16.msra.mxu0 %v10286_v58  ;;  %v10296_v31 = vld [vmem:[%s13940_s2 + $0x50] ss:$12 sps:$4 sm:$0xff]   ;;  %v14101_v30 = vld [vmem:[#allocation18_spill] sm:$0xff]  ;;  %v10300_v58 = vld [vmem:[%s13940_s2 + $0x18] ss:$12 sps:$4 sm:$0xff]  }
 0x6a4   : > { %v10496_v41 = vpop.eup %10495 }
 0x6a5   : > { %v3690_v32 = vmul.f32 %v10496_v41, %v12570_v24  ;;  %v10498_v8 = vpop.eup %10497  ;;  %v10289_v24 = vld [vmem:[%s13940_s2 + $0x68] ss:$12 sps:$4 sm:$0xff]  }
 0x6a6   : > { %v3692_v25 = vmul.f32 %v10498_v8, %v12567_v27  ;;  %9446 = vmatprep.subr.bf16.mxu1 %v10289_v24  ;;  %9046 = vmatprep.subr.bf16.mxu0 %v10289_v24  ;;  %v10290_v27 = vld [vmem:[%s13940_s2 + $0x80] ss:$12 sps:$4 sm:$0xff]  }
 0x6a7   : > { %v3699_v36 = vpack.c.bf16 %v3690_v32, %v3689_v16  ;;  %9450 = vmatpush3.bf16.msra.mxu1 %v10289_v24 }
 0x6a8   : > { %v10500_v23 = vpop.eup %10499  ;;  %9447 = vmatprep.subr.bf16.mxu1 %v10290_v27 }
 0x6a9   : > { %9042 = vmatprep.mubr.bf16.mxu0 %v3699_v36  ;;  %v3691_v43 = vmul.f32 %v10500_v23, %v12573_v21  ;;  %v10291_v21 = vld [vmem:[%s13940_s2 + $0x98] ss:$12 sps:$4 sm:$0xff]  }
 0x6ab   : > { %v3700_v1 = vpack.c.bf16 %v3692_v25, %v3691_v43  ;;  %9451 = vmatpush3.bf16.msra.mxu1 %v10290_v27  ;;  %v4475_v43 = vsel %vm2937_vm0, %v14101_v30, 0  ;;  %v14102_v25 = vld [vmem:[#allocation21_spill] sm:$0xff] }
 0x6ac   : > { %9448 = vmatprep.subr.bf16.mxu1 %v10291_v21 }
 0x6ad   : > { %9043 = vmatmul.mubr.bf16.gmra.mrb[124].mxu0 %v3700_v1  ;;  %v10297_v1 = vld [vmem:[%s13940_s2] ss:$12 sps:$4 sm:$0xff]  }
 0x6ae   : > { %3974 = vmatprep.mubr.bf16.mxu0 %v14100_v63 }
 0x6af   : > { %9452 = vmatpush3.bf16.msra.mxu1 %v10291_v21 }
 0x6b0   : > { %9449 = vmatprep.subr.bf16.mxu1 %v10292_v34 }
 0x6b3   : > { %9453 = vmatpush3.bf16.msra.mxu1 %v10292_v34 }
 0x6b4   : > { %9070 = vmatprep.subr.bf16.mxu1 %v10293_v54 }
 0x744   : > { %v9032_v47 = vpop.f32.mrb[112].mxu0 }
 0x745   : > { %v3767_v4 = vpop.f32.mrb[113].mxu0 }
 0x746   : > { %v9033_v57 = vpop.f32.mrb[114].mxu0 }
 0x747   : > { %v12632_v29 = vpack.c.bf16 %v9033_v57, %v9032_v47  ;;  %v3770_v44 = vpop.f32.mrb[115].mxu0  ;;  %v10306_v47 = vld [vmem:[%s13940_s2 + $0x48] ss:$12 sps:$4 sm:$0xff]  }
 0x748   : > { %v3830_v13 = vpack.c.bf16 %v3770_v44, %v3767_v4  ;;  %v14104_v57 = vld [vmem:[#allocation27_spill] sm:$0xff] }
 0x749   : > { %v4484_v44 = vsel %vm2937_vm0, %v14104_v57, 0 }
 0x74a   : > { %8287 = vmatmul.mubr.msk.bf16.vlgmr.msra.gmra.mrb[128].mxu0 %vm2937_vm0, %v3830_v13 }
 0x74b   : > { %3984 = vmatprep.mubr.bf16.mxu0 %v14100_v63  ;;  %9047 = vmatpush3.bf16.msra.mxu0 %v10289_v24  ;;  %v4478_v24 = vsel %vm2937_vm0, %v14102_v25, 0 }
 0x74c   : > { %v9036_v62 = vpop.f32.mrb[116].mxu0  ;;  %9048 = vmatprep.subr.bf16.mxu0 %v10290_v27 }
 0x74d   : > { %v3783_v5 = vpop.f32.mrb[117].mxu0 }
 0x74e   : > { %v9037_v15 = vpop.f32.mrb[118].mxu0 }
 0x74f   : > { %v12636_v22 = vpack.c.bf16 %v9037_v15, %v9036_v62  ;;  %v3786_v12 = vpop.f32.mrb[119].mxu0  ;;  %9049 = vmatpush3.bf16.msra.mxu0 %v10290_v27  ;;  %v10305_v27 = vld [vmem:[%s13940_s2 + $0x34] ss:$12 sps:$4 sm:$0xff]  }
 0x750   : > { %v3832_v48 = vpack.c.bf16 %v3786_v12, %v3783_v5  ;;  %9050 = vmatprep.subr.bf16.mxu0 %v10291_v21  ;;  %v14107_v62 = vld [vmem:[#allocation5_spill] sm:$0xff]  ;;  %v14111_v12 = vld [vmem:[#allocation31_spill] sm:$0xff] }
 0x751   : > { %v14108_v5 = vld [vmem:[#allocation29_spill] sm:$0xff] }
 0x752   : > { %8288 = vmatmul.mubr.msk.bf16.gmra.mrb[132].mxu0 %vm2937_vm0, %v12632_v29  ;;  %v4487_v15 = vsel %vm2937_vm0, %v14108_v5, 0 }
 0x753   : > { %3994 = vmatprep.mubr.bf16.mxu0 %v14100_v63  ;;  %9051 = vmatpush3.bf16.msra.mxu0 %v10291_v21  ;;  %v14103_v21 = vld [vmem:[#allocation24_spill] sm:$0xff] }
 0x754   : > { %v9040_v18 = vpop.f32.mrb[120].mxu0  ;;  %9052 = vmatprep.subr.bf16.mxu0 %v10292_v34  ;;  %v4481_v4 = vsel %vm2937_vm0, %v14103_v21, 0 }
 0x755   : > { %v3799_v7 = vpop.f32.mrb[121].mxu0 }
 0x756   : > { %v9041_v56 = vpop.f32.mrb[122].mxu0 }
 0x757   : > { %v3835_v20 = vpack.c.bf16 %v9041_v56, %v9040_v18  ;;  %v3802_v0 = vpop.f32.mrb[123].mxu0  ;;  %9053 = vmatpush3.bf16.msra.mxu0 %v10292_v34  ;;  %v10303_v34 = vld [vmem:[%s13940_s2 + $0x30] ss:$12 sps:$4 sm:$0xff]   ;;  %v14113_v18 = vld [vmem:[#allocation45_spill] sm:$0xff] }
 0x758   : > { %v3834_v14 = vpack.c.bf16 %v3802_v0, %v3799_v7  ;;  %4240 = vmatprep.subr.bf16.mxu0 %v10299_v53  ;;  %v14114_v53 = vld [vmem:[#allocation33_spill] sm:$0xff]  ;;  %v14115_v7 = vld [vmem:[#allocation47_spill] sm:$0xff]  ;;  %v14118_v0 = vld [vmem:[#allocation6_spill] sm:$0xff] }
 0x759   : > { %v14116_v56 = vld [vmem:[#allocation49_spill] sm:$0xff] }
 0x75a   : > { %8289 = vmatmul.mubr.msk.bf16.gmra.mrb[136].mxu0 %vm2937_vm0, %v3832_v48  ;;  %9062 = vmatprep.mubr.msk.bf16.mxu1 %vm2937_vm0, %v3834_v14 }
 0x75b   : > { %9063 = vmatmul.mubr.msk.bf16.vlgmr.msra.gmra.mrb[144].mxu1 %vm2937_vm0, %v3835_v20  ;;  %4004 = vmatprep.mubr.bf16.mxu0 %v14100_v63 }
 0x75c   : > { %9071 = vmatpush3.bf16.msra.mxu1 %v10293_v54  ;;  %v10308_v54 = vld [vmem:[%s13940_s2 + $0x4c] ss:$12 sps:$4 sm:$0xff]  }
 0x75d   : > { %9072 = vmatprep.subr.bf16.mxu1 %v10294_v9 }
 0x760   : > { %9073 = vmatpush3.bf16.msra.mxu1 %v10294_v9  ;;  %v14121_v9 = vld [vmem:[#allocation9_spill] sm:$0xff] }
 0x761   : > { %9074 = vmatprep.subr.bf16.mxu1 %v10295_v33 }
 0x762   : > { %8290 = vmatmul.mubr.msk.bf16.gmra.mrb[140].mxu0 %vm2937_vm0, %v12636_v22 }
 0x763   : > { %4014 = vmatprep.mubr.bf16.mxu0 %v14100_v63 }
 0x764   : > { %9075 = vmatpush3.bf16.msra.mxu1 %v10295_v33  ;;  %v14123_v33 = vld [vmem:[#allocation11_spill] sm:$0xff] }
 0x765   : > { %9076 = vmatprep.subr.bf16.mxu1 %v10296_v31 }
 0x768   : > { %9077 = vmatpush3.bf16.msra.mxu1 %v10296_v31  ;;  %v14124_v31 = vld [vmem:[#allocation12_spill] sm:$0xff] }
 0x769   : > { %9838 = vmatprep.subr.msk.bf16.mxu1 %vm2937_vm0, %v14101_v30 }
 0x76a   : > { %8291 = vmatmul.mubr.msk.bf16.gmra.mrb[144].mxu0 %vm2937_vm0, %v3834_v14  ;;  %v14119_v14 = vld [vmem:[#allocation7_spill] sm:$0xff] }
 0x76b   : > { %4024 = vmatprep.mubr.bf16.mxu0 %v14100_v63 }
 0x772   : > { %8292 = vmatmul.mubr.msk.bf16.gmra.mrb[148].mxu0 %vm2937_vm0, %v3835_v20  ;;  %v14117_v20 = vld [vmem:[#allocation35_spill] sm:$0xff] }
 0x773   : > { %4034 = vmatprep.mubr.bf16.mxu0 %v14100_v63 }
 0x780   : > { %v9044_v41 = vpop.f32.mrb[124].mxu0 }
 0x781   : > { %v3815_v16 = vpop.f32.mrb[125].mxu0 }
 0x782   : > { %v9045_v32 = vpop.f32.mrb[126].mxu0 }
 0x783   : > { %v3837_v8 = vpack.c.bf16 %v9045_v32, %v9044_v41  ;;  %v3818_v36 = vpop.f32.mrb[127].mxu0 }
 0x784   : > { %v3836_v23 = vpack.c.bf16 %v3818_v36, %v3815_v16 }
 0x786   : > { %8293 = vmatmul.mubr.msk.bf16.gmra.mrb[152].mxu0 %vm2937_vm0, %v3836_v23  ;;  %9066 = vmatprep.mubr.msk.bf16.mxu1 %vm2937_vm0, %v3836_v23 }
 0x787   : > { %9067 = vmatmul.mubr.msk.bf16.gmra.mrb[148].mxu1 %vm2937_vm0, %v3837_v8  ;;  %4044 = vmatprep.mubr.bf16.mxu0 %v14100_v63 }
 0x788   : > { %9078 = vmatprep.mubr.msk.bf16.mxu1 %vm2937_vm0, %v12456_v17 }
 0x78e   : > { %8294 = vmatmul.mubr.msk.bf16.gmra.mrb[156].mxu0 %vm2937_vm0, %v3837_v8 }
 0x78f   : > { %9054 = vmatprep.mubr.msk.bf16.mxu0 %vm2937_vm0, %v3830_v13  ;;  %9079 = vmatmul.mubr.msk.bf16.vlgmr.msra.gmra.mrb[152].mxu1 %vm2937_vm0, %v12454_v19  ;;  %v14106_v13 = vld [vmem:[#allocation38_spill] sm:$0xff] }
 0x790   : > { %9095 = vmatpush3.bf16.xpose.msra.mxu1 %v4475_v43  ;;  %9082 = vmatprep.mubr.msk.bf16.mxu1 %vm2937_vm0, %v12460_v11 }
 0x791   : > { %9839 = vmatprep.subr.msk.bf16.mxu1 %vm2937_vm0, %v14102_v25 }
 0x796   : > { %9055 = vmatmul.mubr.msk.bf16.vlgmr.msra.gmra.mrb[160].mxu0 %vm2937_vm0, %v12632_v29  ;;  %v14105_v29 = vld [vmem:[#allocation37_spill] sm:$0xff] }
 0x797   : > { %4241 = vmatpush1.bf16.msra.mxu0 %v10297_v1  ;;  %9058 = vmatprep.mubr.msk.bf16.mxu0 %vm2937_vm0, %v3832_v48  ;;  %v14112_v48 = vld [vmem:[#allocation43_spill] sm:$0xff] }
 0x798   : > { %9083 = vmatmul.mubr.msk.bf16.gmra.mrb[156].mxu1 %vm2937_vm0, %v12458_v61  ;;  %4242 = vmatprep.subr.bf16.mxu0 %v10302_v28 }
 0x799   : > { %9097 = vmatpush3.bf16.xpose.msra.mxu1 %v4478_v24  ;;  %9086 = vmatprep.mubr.msk.bf16.mxu1 %vm2937_vm0, %v12464_v50 }
 0x79a   : > { %9840 = vmatprep.subr.msk.bf16.mxu1 %vm2937_vm0, %v14103_v21 }
 0x79b   : > { %4243 = vmatpush1.bf16.msra.mxu0 %v10300_v58 }
 0x79c   : > { %4244 = vmatprep.subr.bf16.mxu0 %v10305_v27 }
 0x79e   : > { %9059 = vmatmul.mubr.msk.bf16.gmra.mrb[164].mxu0 %vm2937_vm0, %v12636_v22  ;;  %v14110_v22 = vld [vmem:[#allocation41_spill] sm:$0xff] }
 0x79f   : > { %4245 = vmatpush1.bf16.msra.mxu0 %v10303_v34  ;;  %4272 = vmatprep.mubr.bf16.mxu0 %v14100_v63 }
 0x7a0   : > { %9087 = vmatmul.mubr.msk.bf16.gmra.mrb[144].mxu1 %vm2937_vm0, %v12462_v39  ;;  %4246 = vmatprep.subr.bf16.mxu0 %v10308_v54 }
 0x7a1   : > { %9099 = vmatpush3.bf16.xpose.msra.mxu1 %v4481_v4  ;;  %9090 = vmatprep.mubr.msk.bf16.mxu1 %vm2937_vm0, %v12468_v10 }
 0x7a2   : > { %9841 = vmatprep.subr.msk.bf16.mxu1 %vm2937_vm0, %v14104_v57 }
 0x7a3   : > { %4247 = vmatpush1.bf16.msra.mxu0 %v10306_v47 }
 0x7a4   : > { %9126 = vmatprep.subr.bf16.mxu0 %v14105_v29 }
 0x7a6   : > { %8315 = vmatmul.mubr.msk.bf16.vlgmr.msra.gmra.mrb[128].mxu0 %vm2937_vm0, %v12456_v17  ;;  %v14109_v17 = vld [vmem:[#allocation39_spill] sm:$0xff] }
 0x7a7   : > { %9127 = vmatpush3.bf16.msra.mxu0 %v14105_v29  ;;  %4282 = vmatprep.mubr.bf16.mxu0 %v14100_v63 }
 0x7a8   : > { %9091 = vmatmul.mubr.msk.bf16.gmra.mrb[148].mxu1 %vm2937_vm0, %v12466_v35  ;;  %9128 = vmatprep.subr.bf16.mxu0 %v14106_v13 }
 0x7a9   : > { %9101 = vmatpush3.bf16.xpose.msra.mxu1 %v4484_v44  ;;  %9110 = vmatprep.mubr.msk.bf16.mxu1 %vm2937_vm0, %v14107_v62 }
 0x7aa   : > { %9842 = vmatprep.subr.msk.bf16.mxu1 %vm2937_vm0, %v14108_v5 }
 0x7ab   : > { %9129 = vmatpush3.bf16.msra.mxu0 %v14106_v13 }
 0x7ac   : > { %9130 = vmatprep.subr.bf16.mxu0 %v14109_v17 }
 0x7ae   : > { %8316 = vmatmul.mubr.msk.bf16.gmra.mrb[132].mxu0 %vm2937_vm0, %v12454_v19  ;;  %v4490_v19 = vsel %vm2937_vm0, %v14111_v12, 0 }
 0x7af   : > { %9131 = vmatpush3.bf16.msra.mxu0 %v14109_v17  ;;  %4292 = vmatprep.mubr.bf16.mxu0 %v14100_v63 }
 0x7b0   : > { %9132 = vmatprep.subr.bf16.mxu0 %v14110_v22 }
 0x7b1   : > { %9103 = vmatpush3.bf16.xpose.msra.mxu1 %v4487_v15 }
 0x7b2   : > { %9843 = vmatprep.subr.msk.bf16.mxu1 %vm2937_vm0, %v14111_v12 }
 0x7b3   : > { %9133 = vmatpush3.bf16.msra.mxu0 %v14110_v22 }
 0x7b4   : > { %9134 = vmatprep.subr.bf16.mxu0 %v14112_v48 }
 0x7b6   : > { %8317 = vmatmul.mubr.msk.bf16.gmra.mrb[136].mxu0 %vm2937_vm0, %v12460_v11  ;;  %v4493_v11 = vsel %vm2937_vm0, %v14114_v53, 0 }
 0x7b7   : > { %9135 = vmatpush3.bf16.msra.mxu0 %v14112_v48  ;;  %4302 = vmatprep.mubr.bf16.mxu0 %v14100_v63 }
 0x7b8   : > { %9136 = vmatprep.subr.bf16.mxu0 %v14113_v18 }
 0x7b9   : > { %9105 = vmatpush3.bf16.xpose.msra.mxu1 %v4490_v19 }
 0x7ba   : > { %9844 = vmatprep.subr.msk.bf16.mxu1 %vm2937_vm0, %v14114_v53 }
 0x7bb   : > { %9137 = vmatpush3.bf16.msra.mxu0 %v14113_v18 }
 0x7bc   : > { %9138 = vmatprep.subr.bf16.mxu0 %v14115_v7 }
 0x7be   : > { %8318 = vmatmul.mubr.msk.bf16.gmra.mrb[140].mxu0 %vm2937_vm0, %v12458_v61  ;;  %v4496_v61 = vsel %vm2937_vm0, %v14117_v20, 0 }
 0x7bf   : > { %9139 = vmatpush3.bf16.msra.mxu0 %v14115_v7  ;;  %4312 = vmatprep.mubr.bf16.mxu0 %v14100_v63 }
 0x7c0   : > { %9140 = vmatprep.subr.bf16.mxu0 %v14116_v56 }
 0x7c1   : > { %9107 = vmatpush3.bf16.xpose.msra.mxu1 %v4493_v11 }
 0x7c2   : > { %9845 = vmatprep.subr.msk.bf16.mxu1 %vm2937_vm0, %v14117_v20 }
 0x7c3   : > { %9141 = vmatpush3.bf16.msra.mxu0 %v14116_v56 }
 0x7c6   : > { %8319 = vmatmul.mubr.msk.bf16.gmra.mrb[144].mxu0 %vm2937_vm0, %v12464_v50  ;;  %v14120_v50 = vld [vmem:[#allocation8_spill] sm:$0xff] }
 0x7c7   : > { %4322 = vmatprep.mubr.bf16.mxu0 %v14100_v63 }
 0x7c9   : > { %9109 = vmatpush3.bf16.xpose.msra.mxu1 %v4496_v61 }
 0x7ce   : > { %8320 = vmatmul.mubr.msk.bf16.gmra.mrb[148].mxu0 %vm2937_vm0, %v12462_v39  ;;  %v14122_v39 = vld [vmem:[#allocation10_spill] sm:$0xff] }
 0x7cf   : > { %4332 = vmatprep.mubr.bf16.mxu0 %v14100_v63 }
 0x7d0   : > { %9111 = vmatmul.mubr.msk.bf16.vlgmr.msra.gmra.mrb[160].mxu1 %vm2937_vm0, %v14118_v0 }
 0x7d1   : > { %9114 = vmatprep.mubr.msk.bf16.mxu1 %vm2937_vm0, %v14119_v14 }
 0x7d6   : > { %8321 = vmatmul.mubr.msk.bf16.gmra.mrb[152].mxu0 %vm2937_vm0, %v12468_v10 }
 0x7d7   : > { %4342 = vmatprep.mubr.bf16.mxu0 %v14100_v63 }
 0x7d8   : > { %9115 = vmatmul.mubr.msk.bf16.gmra.mrb[164].mxu1 %vm2937_vm0, %v14120_v50 }
 0x7d9   : > { %9118 = vmatprep.mubr.msk.bf16.mxu1 %vm2937_vm0, %v14121_v9 }
 0x7de   : > { %8322 = vmatmul.mubr.msk.bf16.gmra.mrb[156].mxu0 %vm2937_vm0, %v12466_v35 }
 0x7e0   : > { %9119 = vmatmul.mubr.msk.bf16.gmra.mrb[168].mxu1 %vm2937_vm0, %v14122_v39 }
 0x7e1   : > { %9122 = vmatprep.mubr.msk.bf16.mxu1 %vm2937_vm0, %v14123_v33 }
 0x7e8   : > { %9123 = vmatmul.mubr.msk.bf16.gmra.mrb[172].mxu1 %vm2937_vm0, %v14124_v31 }
 0x869   : > { %v12800_v10 = vpop.f32.mrb[160].mxu0 }
 0x86a   : > { %14125 = vst [vmem:[#allocation42_spill] sm:$0xff] %v12800_v10  ;;  %v12802_v41 = vpop.f32.mrb[161].mxu0 }
 0x86b   : > { %14126 = vst [vmem:[#allocation40_spill] sm:$0xff] %v12802_v41  ;;  %v12804_v16 = vpop.f32.mrb[162].mxu0 }
 0x86c   : > { %14127 = vst [vmem:[#allocation44_spill] sm:$0xff] %v12804_v16  ;;  %v12806_v32 = vpop.f32.mrb[163].mxu0 }
 0x86d   : > { %14128 = vst [vmem:[#allocation48_spill] sm:$0xff] %v12806_v32 }
 0x871   : > { %v12808_v8 = vpop.f32.mrb[164].mxu0 }
 0x872   : > { %14129 = vst [vmem:[#allocation46_spill] sm:$0xff] %v12808_v8  ;;  %v12810_v35 = vpop.f32.mrb[165].mxu0 }
 0x873   : > { %14130 = vst [vmem:[#allocation18_spill] sm:$0xff] %v12810_v35  ;;  %v12812_v36 = vpop.f32.mrb[166].mxu0 }
 0x874   : > { %14131 = vst [vmem:[#allocation21_spill] sm:$0xff] %v12812_v36  ;;  %v12814_v23 = vpop.f32.mrb[167].mxu0 }
 0x875   : > { %14132 = vst [vmem:[#allocation24_spill] sm:$0xff] %v12814_v23 }
 0x8a3   : > { %v9112_v43 = vpop.f32.mrb[160].mxu1 }
 0x8a4   : > { %v4532_v1 = vpop.f32.mrb[161].mxu1  ;;  %v4541_v34 = vadd.f32 %v9112_v43, %v12171_v42 }
 0x8a5   : > { %v4533_v28 = vadd.f32 %v4532_v1, %v12174_v45  ;;  %v9113_v58 = vpop.f32.mrb[162].mxu1 }
 0x8a6   : > { %v4535_v24 = vpop.f32.mrb[163].mxu1  ;;  %v4544_v54 = vadd.f32 %v9113_v58, %v12187_v6 }
 0x8a7   : > { %v4536_v27 = vadd.f32 %v4535_v24, %v12191_v51  ;;  %4595 = vmax.xlane.f32.xlu0 %v4533_v28 }
 0x8a9   : > { %4597 = vmax.xlane.f32.xlu1 %v4536_v27 }
 0x8ab   : > { %v9116_v47 = vpop.f32.mrb[164].mxu1  ;;  %4599 = vmax.xlane.f32.xlu0 %v4541_v34 }
 0x8ac   : > { %v4548_v4 = vpop.f32.mrb[165].mxu1  ;;  %v4557_v61 = vadd.f32 %v9116_v47, %v12205_v2 }
 0x8ad   : > { %v4549_v44 = vadd.f32 %v4548_v4, %v12220_v60  ;;  %v9117_v15 = vpop.f32.mrb[166].mxu1  ;;  %4601 = vmax.xlane.f32.xlu1 %v4544_v54 }
 0x8ae   : > { %v4551_v19 = vpop.f32.mrb[167].mxu1  ;;  %v4560_v1 = vadd.f32 %v9117_v15, %v12212_v52 }
 0x8af   : > { %v4552_v11 = vadd.f32 %v4551_v19, %v12227_v46  ;;  %4603 = vmax.xlane.f32.xlu0 %v4549_v44 }
 0x8b1   : > { %4605 = vmax.xlane.f32.xlu1 %v4552_v11 }
 0x8b3   : > { %v9120_v43 = vpop.f32.mrb[168].mxu1  ;;  %4607 = vmax.xlane.f32.xlu0 %v4557_v61 }
 0x8b4   : > { %v4564_v24 = vpop.f32.mrb[169].mxu1  ;;  %v12832_v19 = vadd.f32 %v9120_v43, %v12238_v26 }
 0x8b5   : > { %v12825_v58 = vadd.f32 %v4564_v24, %v12255_v59  ;;  %v9121_v23 = vpop.f32.mrb[170].mxu1  ;;  %4609 = vmax.xlane.f32.xlu1 %v4560_v1 }
 0x8b6   : > { %v4567_v4 = vpop.f32.mrb[171].mxu1  ;;  %v12836_v47 = vadd.f32 %v9121_v23, %v12247_v40 }
 0x8b7   : > { %v12828_v36 = vadd.f32 %v4567_v4, %v12262_v55  ;;  %4611 = vmax.xlane.f32.xlu0 %v12825_v58 }
 0x8b9   : > { %4613 = vmax.xlane.f32.xlu1 %v12828_v36 }
 0x8bb   : > { %4615 = vmax.xlane.f32.xlu0 %v12832_v19  ;;  %v9124_v15 = vpop.f32.mrb[172].mxu1 }
 0x8bc   : > { %v4580_v24 = vpop.f32.mrb[173].mxu1  ;;  %v12848_v43 = vadd.f32 %v9124_v15, %v12271_v38 }
 0x8bd   : > { %v12840_v35 = vadd.f32 %v4580_v24, %v12283_v49  ;;  %4617 = vmax.xlane.f32.xlu1 %v12836_v47  ;;  %v9125_v4 = vpop.f32.mrb[174].mxu1 }
 0x8be   : > { %v4583_v8 = vpop.f32.mrb[175].mxu1  ;;  %v12852_v23 = vadd.f32 %v9125_v4, %v14095_v37 }
 0x8bf   : > { %v12844_v32 = vadd.f32 %v4583_v8, %v14096_v3  ;;  %4619 = vmax.xlane.f32.xlu0 %v12840_v35 }
 0x8c1   : > { %4621 = vmax.xlane.f32.xlu1 %v12844_v32 }
 0x8c3   : > { %4623 = vmax.xlane.f32.xlu0 %v12848_v43 }
 0x8c5   : > { %4625 = vmax.xlane.f32.xlu1 %v12852_v23 }
 0x934   : > { %v4596_v24 = vpop.xlane.xlu0 %4595 }
 0x935   : > { %v4627_v16 = vsub.f32 %v4533_v28, %v4596_v24 }
 0x936   : > { %v4598_v41 = vpop.xlane.xlu1 %4597 }
 0x937   : > { %v4643_v10 = vmul.f32 1.442695, %v4627_v16  ;;  %v4628_v8 = vsub.f32 %v4536_v27, %v4598_v41 }
 0x938   : > { %v4600_v56 = vpop.xlane.xlu0 %4599 }
 0x939   : > { %10501 = vpow2.f32 %v4643_v10  ;;  %v4645_v7 = vmul.f32 1.442695, %v4628_v8  ;;  %v4629_v48 = vsub.f32 %v4541_v34, %v4600_v56 }
 0x93a   : > { %v4602_v15 = vpop.xlane.xlu1 %4601 }
 0x93b   : > { %10503 = vpow2.f32 %v4645_v7  ;;  %v4647_v22 = vmul.f32 1.442695, %v4629_v48  ;;  %v4630_v17 = vsub.f32 %v4544_v54, %v4602_v15 }
 0x93c   : > { %v4604_v49 = vpop.xlane.xlu0 %4603 }
 0x93d   : > { %10505 = vpow2.f32 %v4647_v22  ;;  %v4649_v4 = vmul.f32 1.442695, %v4630_v17  ;;  %v4631_v38 = vsub.f32 %v4549_v44, %v4604_v49 }
 0x93e   : > { %v4606_v59 = vpop.xlane.xlu1 %4605 }
 0x93f   : > { %10507 = vpow2.f32 %v4649_v4  ;;  %v4651_v26 = vmul.f32 1.442695, %v4631_v38  ;;  %v4632_v60 = vsub.f32 %v4552_v11, %v4606_v59 }
 0x940   : > { %v4608_v28 = vpop.xlane.xlu0 %4607 }
 0x941   : > { %10509 = vpow2.f32 %v4651_v26  ;;  %v4653_v16 = vmul.f32 1.442695, %v4632_v60  ;;  %v4633_v41 = vsub.f32 %v4557_v61, %v4608_v28 }
 0x942   : > { %v4610_v27 = vpop.xlane.xlu1 %4609 }
 0x943   : > { %v12856_v10 = vpop.eup %10501  ;;  %10511 = vpow2.f32 %v4653_v16  ;;  %v4655_v56 = vmul.f32 1.442695, %v4633_v41  ;;  %v4634_v7 = vsub.f32 %v4560_v1, %v4610_v27 }
 0x944   : > { %v4612_v48 = vpop.xlane.xlu0 %4611  ;;  %4675 = vadd.xlane.f32.xlu0 %v12856_v10 }
 0x945   : > { %v12859_v22 = vpop.eup %10503  ;;  %10513 = vpow2.f32 %v4655_v56  ;;  %v4657_v49 = vmul.f32 1.442695, %v4634_v7  ;;  %v4635_v38 = vsub.f32 %v12825_v58, %v4612_v48 }
 0x946   : > { %v4614_v59 = vpop.xlane.xlu1 %4613  ;;  %4677 = vadd.xlane.f32.xlu1 %v12859_v22 }
 0x947   : > { %v12863_v60 = vpop.eup %10505  ;;  %10515 = vpow2.f32 %v4657_v49  ;;  %v4659_v26 = vmul.f32 1.442695, %v4635_v38  ;;  %v4636_v17 = vsub.f32 %v12828_v36, %v4614_v59 }
 0x948   : > { %v4616_v34 = vpop.xlane.xlu0 %4615  ;;  %4679 = vadd.xlane.f32.xlu0 %v12863_v60 }
 0x949   : > { %v12867_v54 = vpop.eup %10507  ;;  %10517 = vpow2.f32 %v4659_v26  ;;  %v4661_v44 = vmul.f32 1.442695, %v4636_v17  ;;  %v4637_v11 = vsub.f32 %v12832_v19, %v4616_v34 }
 0x94a   : > { %v4618_v61 = vpop.xlane.xlu1 %4617  ;;  %4681 = vadd.xlane.f32.xlu1 %v12867_v54 }
 0x94b   : > { %v12871_v1 = vpop.eup %10509  ;;  %10519 = vpow2.f32 %v4661_v44  ;;  %v4663_v58 = vmul.f32 1.442695, %v4637_v11  ;;  %v4638_v24 = vsub.f32 %v12836_v47, %v4618_v61  ;;  %v10309_v11 = vld [vmem:[%s13940_s2 + $0xc8] ss:$12 sps:$4 sm:$0xff]   ;;  %v10310_v61 = vld [vmem:[%s13940_s2 + $0xe0] ss:$12 sps:$4 sm:$0xff]  }
 0x94c   : > { %4683 = vadd.xlane.f32.xlu0 %v12871_v1  ;;  %v4620_v36 = vpop.xlane.xlu0 %4619  ;;  %9158 = vmatprep.subr.bf16.mxu1 %v10309_v11 }
 0x94d   : > { %v12875_v8 = vpop.eup %10511  ;;  %10521 = vpow2.f32 %v4663_v58  ;;  %v4665_v15 = vmul.f32 1.442695, %v4638_v24  ;;  %v4639_v4 = vsub.f32 %v12840_v35, %v4620_v36  ;;  %9159 = vmatpush3.bf16.msra.mxu1 %v10309_v11  ;;  %v10311_v58 = vld [vmem:[%s13940_s2 + $0xf8] ss:$12 sps:$4 sm:$0xff]   ;;  %v10312_v24 = vld [vmem:[%s13940_s2 + $0x110] ss:$12 sps:$4 sm:$0xff]  }
 0x94e   : > { %4685 = vadd.xlane.f32.xlu1 %v12875_v8  ;;  %v4622_v19 = vpop.xlane.xlu1 %4621  ;;  %9160 = vmatprep.subr.bf16.mxu1 %v10310_v61 }
 0x94f   : > { %v12879_v28 = vpop.eup %10513  ;;  %10523 = vpow2.f32 %v4665_v15  ;;  %v4667_v16 = vmul.f32 1.442695, %v4639_v4  ;;  %v4640_v41 = vsub.f32 %v12844_v32, %v4622_v19 }
 0x950   : > { %4687 = vadd.xlane.f32.xlu0 %v12879_v28  ;;  %v4624_v47 = vpop.xlane.xlu0 %4623 }
 0x951   : > { %v12883_v27 = vpop.eup %10515  ;;  %10525 = vpow2.f32 %v4667_v16  ;;  %v4669_v56 = vmul.f32 1.442695, %v4640_v41  ;;  %v4641_v7 = vsub.f32 %v12848_v43, %v4624_v47  ;;  %9161 = vmatpush3.bf16.msra.mxu1 %v10310_v61  ;;  %v10318_v41 = vld [vmem:[%s13940_s2 + $0xdc] ss:$12 sps:$4 sm:$0xff]  }
 0x952   : > { %4689 = vadd.xlane.f32.xlu1 %v12883_v27  ;;  %v4626_v35 = vpop.xlane.xlu1 %4625  ;;  %9162 = vmatprep.subr.bf16.mxu1 %v10311_v58 }
 0x953   : > { %v12887_v48 = vpop.eup %10517  ;;  %10527 = vpow2.f32 %v4669_v56  ;;  %v4671_v49 = vmul.f32 1.442695, %v4641_v7  ;;  %v4642_v38 = vsub.f32 %v12852_v23, %v4626_v35  ;;  %v10316_v35 = vld [vmem:[%s13940_s2 + $0xd8] ss:$12 sps:$4 sm:$0xff]  }
 0x954   : > { %4691 = vadd.xlane.f32.xlu0 %v12887_v48 }
 0x955   : > { %v12891_v32 = vpop.eup %10519  ;;  %10529 = vpow2.f32 %v4671_v49  ;;  %v4673_v59 = vmul.f32 1.442695, %v4642_v38  ;;  %9163 = vmatpush3.bf16.msra.mxu1 %v10311_v58 }
 0x956   : > { %4693 = vadd.xlane.f32.xlu1 %v12891_v32  ;;  %9164 = vmatprep.subr.bf16.mxu1 %v10312_v24 }
 0x957   : > { %v12894_v26 = vpop.eup %10521  ;;  %10531 = vpow2.f32 %v4673_v59  ;;  %v10321_v59 = vld [vmem:[%s13940_s2 + $0xf4] ss:$12 sps:$4 sm:$0xff]  }
 0x958   : > { %4695 = vadd.xlane.f32.xlu0 %v12894_v26 }
 0x959   : > { %v12897_v43 = vpop.eup %10523  ;;  %9165 = vmatpush3.bf16.msra.mxu1 %v10312_v24  ;;  %v10319_v24 = vld [vmem:[%s13940_s2 + $0xf0] ss:$12 sps:$4 sm:$0xff]  }
 0x95a   : > { %4697 = vadd.xlane.f32.xlu1 %v12897_v43 }
 0x95b   : > { %v12900_v17 = vpop.eup %10525 }
 0x95c   : > { %4699 = vadd.xlane.f32.xlu0 %v12900_v17 }
 0x95d   : > { %v12903_v23 = vpop.eup %10527 }
 0x95e   : > { %4701 = vadd.xlane.f32.xlu1 %v12903_v23 }
 0x95f   : > { %v12906_v34 = vpop.eup %10529 }
 0x960   : > { %4703 = vadd.xlane.f32.xlu0 %v12906_v34 }
 0x961   : > { %v12909_v44 = vpop.eup %10531 }
 0x962   : > { %4705 = vadd.xlane.f32.xlu1 %v12909_v44 }
 0x973   : > { %5248 = vrot.lane.b32.xlu1 %v14102_v25, %s10862_s11 }
 0x976   : > { %5246 = vrot.lane.b32.xlu0 %v14101_v30, %s10862_s11  ;;  %v10315_v30 = vld [vmem:[%s13940_s2 + $0xc4] ss:$12 sps:$4 sm:$0xff]  }
 0x977   : > { %5250 = vrot.lane.b32.xlu1 %v14103_v21, %s10862_s11  ;;  %4956 = vmatprep.subr.bf16.mxu0 %v10315_v30 }
 0x97a   : > { %5254 = vrot.lane.b32.xlu0 %v14108_v5, %s10862_s11 }
 0x97b   : > { %5252 = vrot.lane.b32.xlu1 %v14104_v57, %s10862_s11 }
 0x97e   : > { %5258 = vrot.lane.b32.xlu0 %v14114_v53, %s10862_s11 }
 0x97f   : > { %5256 = vrot.lane.b32.xlu1 %v14111_v12, %s10862_s11 }
 0x982   : > { %5222 = vrot.lane.b32.xlu0 %v14107_v62, %s10862_s11 }
 0x983   : > { %5260 = vrot.lane.b32.xlu1 %v14117_v20, %s10862_s11 }
 0x986   : > { %5226 = vrot.lane.b32.xlu0 %v14119_v14, %s10862_s11 }
 0x987   : > { %5224 = vrot.lane.b32.xlu1 %v14118_v0, %s10862_s11 }
 0x98a   : > { %5230 = vrot.lane.b32.xlu0 %v14121_v9, %s10862_s11 }
 0x98b   : > { %5228 = vrot.lane.b32.xlu1 %v14120_v50, %s10862_s11 }
 0x98e   : > { %5234 = vrot.lane.b32.xlu0 %v14123_v33, %s10862_s11 }
 0x98f   : > { %5232 = vrot.lane.b32.xlu1 %v14122_v39, %s10862_s11 }
 0x993   : > { %5236 = vrot.lane.b32.xlu1 %v14124_v31, %s10862_s11 }
 0x997   : > { %5569 = vrot.lane.b32.xlu1 %v14106_v13, %s10862_s11 }
 0x9d1   : > { %v4676_v25 = vpop.xlane.xlu0 %4675 }
 0x9d2   : > { %10533 = vrcp.f32 %v4676_v25 }
 0x9d3   : > { %v4678_v21 = vpop.xlane.xlu1 %4677 }
 0x9d4   : > { %10535 = vrcp.f32 %v4678_v21 }
 0x9d5   : > { %v4680_v57 = vpop.xlane.xlu0 %4679 }
 0x9d6   : > { %10537 = vrcp.f32 %v4680_v57 }
 0x9d7   : > { %v4682_v62 = vpop.xlane.xlu1 %4681 }
 0x9d8   : > { %10539 = vrcp.f32 %v4682_v62 }
 0x9d9   : > { %v4684_v5 = vpop.xlane.xlu0 %4683 }
 0x9da   : > { %10541 = vrcp.f32 %v4684_v5 }
 0x9db   : > { %v4686_v12 = vpop.xlane.xlu1 %4685 }
 0x9dc   : > { %v10534_v53 = vpop.eup %10533  ;;  %10543 = vrcp.f32 %v4686_v12 }
 0x9dd   : > { %v4688_v20 = vpop.xlane.xlu0 %4687  ;;  %v4723_v14 = vmul.f32 %v10534_v53, %v12856_v10  ;;  %v10313_v10 = vld [vmem:[%s13940_s2 + $0xc0] ss:$12 sps:$4 sm:$0xff]  }
 0x9de   : > { %v10536_v13 = vpop.eup %10535  ;;  %10545 = vrcp.f32 %v4688_v20 }
 0x9df   : > { %v4690_v0 = vpop.xlane.xlu1 %4689  ;;  %v4724_v50 = vmul.f32 %v10536_v13, %v12859_v22 }
 0x9e0   : > { %v10538_v9 = vpop.eup %10537  ;;  %10547 = vrcp.f32 %v4690_v0 }
 0x9e1   : > { %v4692_v39 = vpop.xlane.xlu0 %4691  ;;  %v4739_v33 = vpack.c.bf16 %v4724_v50, %v4723_v14  ;;  %v4725_v36 = vmul.f32 %v10538_v9, %v12863_v60 }
 0x9e2   : > { %v10540_v31 = vpop.eup %10539  ;;  %10549 = vrcp.f32 %v4692_v39 }
 0x9e3   : > { %v4726_v15 = vmul.f32 %v10540_v31, %v12867_v54  ;;  %v4694_v4 = vpop.xlane.xlu1 %4693  ;;  %9142 = vmatprep.mubr.bf16.mxu0 %v4739_v33 }
 0x9e4   : > { %v10542_v19 = vpop.eup %10541  ;;  %10551 = vrcp.f32 %v4694_v4 }
 0x9e5   : > { %v4696_v16 = vpop.xlane.xlu0 %4695  ;;  %v4740_v22 = vpack.c.bf16 %v4726_v15, %v4725_v36  ;;  %v4727_v60 = vmul.f32 %v10542_v19, %v12871_v1 }
 0x9e6   : > { %v10544_v47 = vpop.eup %10543  ;;  %10553 = vrcp.f32 %v4696_v16 }
 0x9e7   : > { %v4698_v56 = vpop.xlane.xlu1 %4697  ;;  %9143 = vmatmul.mubr.bf16.vlgmr.msra.gmra.mrb[168].mxu0 %v4740_v22  ;;  %v4728_v54 = vmul.f32 %v10544_v47, %v12875_v8 }
 0x9e8   : > { %v10546_v7 = vpop.eup %10545  ;;  %10555 = vrcp.f32 %v4698_v56  ;;  %4957 = vmatpush1.bf16.msra.mxu0 %v10313_v10 }
 0x9e9   : > { %v4700_v49 = vpop.xlane.xlu0 %4699  ;;  %v4741_v38 = vpack.c.bf16 %v4728_v54, %v4727_v60  ;;  %4958 = vmatprep.subr.bf16.mxu0 %v10318_v41  ;;  %v4729_v1 = vmul.f32 %v10546_v7, %v12879_v28 }
 0x9ea   : > { %v10548_v11 = vpop.eup %10547  ;;  %10557 = vrcp.f32 %v4700_v49 }
 0x9eb   : > { %v4702_v61 = vpop.xlane.xlu1 %4701  ;;  %9146 = vmatprep.mubr.bf16.mxu0 %v4741_v38  ;;  %v4730_v8 = vmul.f32 %v10548_v11, %v12883_v27 }
 0x9ec   : > { %v10550_v58 = vpop.eup %10549  ;;  %10559 = vrcp.f32 %v4702_v61  ;;  %4959 = vmatpush1.bf16.msra.mxu0 %v10316_v35 }
 0x9ed   : > { %v4704_v30 = vpop.xlane.xlu0 %4703  ;;  %v4742_v25 = vpack.c.bf16 %v4730_v8, %v4729_v1  ;;  %4960 = vmatprep.subr.bf16.mxu0 %v10321_v59  ;;  %v4731_v62 = vmul.f32 %v10550_v58, %v12887_v48 }
 0x9ee   : > { %v10552_v21 = vpop.eup %10551  ;;  %10561 = vrcp.f32 %v4704_v30 }
 0x9ef   : > { %v4706_v57 = vpop.xlane.xlu1 %4705  ;;  %9147 = vmatmul.mubr.bf16.gmra.mrb[172].mxu0 %v4742_v25  ;;  %v4732_v28 = vmul.f32 %v10552_v21, %v12891_v32 }
 0x9f0   : > { %v10554_v5 = vpop.eup %10553  ;;  %10563 = vrcp.f32 %v4706_v57  ;;  %4961 = vmatpush1.bf16.msra.mxu0 %v10319_v24 }
 0x9f1   : > { %v5247_v27 = vpop.permute.xlu0 %5246  ;;  %v4743_v12 = vpack.c.bf16 %v4732_v28, %v4731_v62  ;;  %v4733_v20 = vmul.f32 %v10554_v5, %v12894_v26  ;;  %v10324_v26 = vld [vmem:[%s13940_s2 + $0x10c] ss:$12 sps:$4 sm:$0xff]  }
 0x9f2   : > { %v10556_v53 = vpop.eup %10555  ;;  %9846 = vmatprep.subr.msk.bf16.mxu1 %vm2937_vm0, %v5247_v27  ;;  %4962 = vmatprep.subr.bf16.mxu0 %v10324_v26  ;;  %v5287_v10 = vsel %vm2937_vm0, %v5247_v27, 0  ;;  %v14133_v26 = vld [vmem:[#allocation19_spill] sm:$0xff] }
 0x9f3   : > { %9150 = vmatprep.mubr.bf16.mxu0 %v4743_v12  ;;  %v4734_v13 = vmul.f32 %v10556_v53, %v12897_v43  ;;  %v10322_v43 = vld [vmem:[%s13940_s2 + $0x108] ss:$12 sps:$4 sm:$0xff]   ;;  %v5249_v16 = vpop.permute.xlu1 %5248 }
 0x9f4   : > { %v10558_v0 = vpop.eup %10557  ;;  %4963 = vmatpush1.bf16.msra.mxu0 %v10322_v43  ;;  %v5290_v7 = vsel %vm2937_vm0, %v5249_v16, 0 }
 0x9f5   : > { %v4744_v14 = vpack.c.bf16 %v4734_v13, %v4733_v20  ;;  %v4735_v48 = vmul.f32 %v10558_v0, %v12900_v17  ;;  %v5255_v11 = vpop.permute.xlu0 %5254 }
 0x9f6   : > { %v10560_v50 = vpop.eup %10559  ;;  %v5299_v53 = vsel %vm2937_vm0, %v5255_v11, 0 }
 0x9f7   : > { %9151 = vmatmul.mubr.bf16.gmra.mrb[176].mxu0 %v4744_v14  ;;  %v4736_v32 = vmul.f32 %v10560_v50, %v12903_v23  ;;  %v5251_v35 = vpop.permute.xlu1 %5250  ;;  %v10325_v50 = vld [vmem:[%s13940_s2 + $0x128] ss:$12 sps:$4 sm:$0xff]  }
 0x9f8   : > { %v10562_v9 = vpop.eup %10561  ;;  %v5293_v58 = vsel %vm2937_vm0, %v5251_v35, 0 }
 0x9f9   : > { %v4745_v39 = vpack.c.bf16 %v4736_v32, %v4735_v48  ;;  %v4737_v31 = vmul.f32 %v10562_v9, %v12906_v34  ;;  %v5259_v25 = vpop.permute.xlu0 %5258  ;;  %v10326_v32 = vld [vmem:[%s13940_s2 + $0x140] ss:$12 sps:$4 sm:$0xff]  }
 0x9fa   : > { %v10564_v33 = vpop.eup %10563  ;;  %v5305_v0 = vsel %vm2937_vm0, %v5259_v25, 0 }
 0x9fb   : > { %9154 = vmatprep.mubr.bf16.mxu0 %v4745_v39  ;;  %v4738_v36 = vmul.f32 %v10564_v33, %v12909_v44  ;;  %v5253_v24 = vpop.permute.xlu1 %5252  ;;  %v10327_v33 = vld [vmem:[%s13940_s2 + $0x158] ss:$12 sps:$4 sm:$0xff]  }
 0x9fc   : > { %v5296_v12 = vsel %vm2937_vm0, %v5253_v24, 0 }
 0x9fd   : > { %v4746_v15 = vpack.c.bf16 %v4738_v36, %v4737_v31  ;;  %v5223_v27 = vpop.permute.xlu0 %5222  ;;  %v10328_v31 = vld [vmem:[%s13940_s2 + $0x170] ss:$12 sps:$4 sm:$0xff]  }
 0x9ff   : > { %9155 = vmatmul.mubr.bf16.gmra.mrb[180].mxu0 %v4746_v15  ;;  %v5257_v20 = vpop.permute.xlu1 %5256 }
 0xa00   : > { %4988 = vmatprep.mubr.bf16.mxu0 %v14100_v63  ;;  %v5302_v13 = vsel %vm2937_vm0, %v5257_v20, 0 }
 0xa01   : > { %v5227_v39 = vpop.permute.xlu0 %5226 }
 0xa03   : > { %v5261_v14 = vpop.permute.xlu1 %5260 }
 0xa04   : > { %v5308_v48 = vsel %vm2937_vm0, %v5261_v14, 0 }
 0xa05   : > { %v5231_v15 = vpop.permute.xlu0 %5230 }
 0xa07   : > { %v5225_v9 = vpop.permute.xlu1 %5224 }
 0xa0b   : > { %v5229_v36 = vpop.permute.xlu1 %5228 }
 0xa0f   : > { %v5233_v43 = vpop.permute.xlu1 %5232 }
 0xaba   : > { %v9144_v17 = vpop.f32.mrb[168].mxu0 }
 0xabb   : > { %v4781_v23 = vpop.f32.mrb[169].mxu0 }
 0xabc   : > { %v9145_v4 = vpop.f32.mrb[170].mxu0 }
 0xabd   : > { %v4845_v34 = vpack.c.bf16 %v9145_v4, %v9144_v17  ;;  %v4784_v19 = vpop.f32.mrb[171].mxu0  ;;  %v5235_v17 = vpop.permute.xlu0 %5234 }
 0xabe   : > { %v4844_v44 = vpack.c.bf16 %v4784_v19, %v4781_v23  ;;  %v5237_v23 = vpop.permute.xlu1 %5236 }
 0xac0   : > { %8351 = vmatmul.mubr.msk.bf16.vlgmr.msra.gmra.mrb[128].mxu0 %vm2937_vm0, %v4844_v44  ;;  %9166 = vmatprep.mubr.msk.bf16.mxu1 %vm2937_vm0, %v4844_v44 }
 0xac1   : > { %9167 = vmatmul.mubr.msk.bf16.vlgmr.msra.gmra.mrb[152].mxu1 %vm2937_vm0, %v4845_v34  ;;  %4998 = vmatprep.mubr.bf16.mxu0 %v14100_v63 }
 0xac2   : > { %9183 = vmatpush3.bf16.xpose.msra.mxu1 %v5287_v10  ;;  %v9148_v22 = vpop.f32.mrb[172].mxu0 }
 0xac3   : > { %9847 = vmatprep.subr.msk.bf16.mxu1 %vm2937_vm0, %v5249_v16  ;;  %v4797_v41 = vpop.f32.mrb[173].mxu0 }
 0xac4   : > { %v9149_v47 = vpop.f32.mrb[174].mxu0 }
 0xac5   : > { %v4847_v56 = vpack.c.bf16 %v9149_v47, %v9148_v22  ;;  %v4800_v60 = vpop.f32.mrb[175].mxu0 }
 0xac6   : > { %v4846_v54 = vpack.c.bf16 %v4800_v60, %v4797_v41 }
 0xac8   : > { %8352 = vmatmul.mubr.msk.bf16.gmra.mrb[132].mxu0 %vm2937_vm0, %v4845_v34  ;;  %9170 = vmatprep.mubr.msk.bf16.mxu1 %vm2937_vm0, %v4846_v54 }
 0xac9   : > { %9171 = vmatmul.mubr.msk.bf16.gmra.mrb[156].mxu1 %vm2937_vm0, %v4847_v56  ;;  %5008 = vmatprep.mubr.bf16.mxu0 %v14100_v63 }
 0xaca   : > { %9185 = vmatpush3.bf16.xpose.msra.mxu1 %v5290_v7  ;;  %v9152_v49 = vpop.f32.mrb[176].mxu0 }
 0xacb   : > { %9848 = vmatprep.subr.msk.bf16.mxu1 %vm2937_vm0, %v5251_v35  ;;  %v4813_v38 = vpop.f32.mrb[177].mxu0 }
 0xacc   : > { %v9153_v59 = vpop.f32.mrb[178].mxu0 }
 0xacd   : > { %v4849_v61 = vpack.c.bf16 %v9153_v59, %v9152_v49  ;;  %v4816_v1 = vpop.f32.mrb[179].mxu0 }
 0xace   : > { %v4848_v8 = vpack.c.bf16 %v4816_v1, %v4813_v38 }
 0xad0   : > { %8353 = vmatmul.mubr.msk.bf16.gmra.mrb[136].mxu0 %vm2937_vm0, %v4846_v54  ;;  %9174 = vmatprep.mubr.msk.bf16.mxu1 %vm2937_vm0, %v4848_v8 }
 0xad1   : > { %9175 = vmatmul.mubr.msk.bf16.gmra.mrb[144].mxu1 %vm2937_vm0, %v4849_v61  ;;  %5018 = vmatprep.mubr.bf16.mxu0 %v14100_v63 }
 0xad2   : > { %9187 = vmatpush3.bf16.xpose.msra.mxu1 %v5293_v58  ;;  %v9156_v30 = vpop.f32.mrb[180].mxu0 }
 0xad3   : > { %9849 = vmatprep.subr.msk.bf16.mxu1 %vm2937_vm0, %v5253_v24  ;;  %v4829_v21 = vpop.f32.mrb[181].mxu0 }
 0xad4   : > { %v9157_v57 = vpop.f32.mrb[182].mxu0 }
 0xad5   : > { %v4851_v62 = vpack.c.bf16 %v9157_v57, %v9156_v30  ;;  %v4832_v28 = vpop.f32.mrb[183].mxu0 }
 0xad6   : > { %v4850_v5 = vpack.c.bf16 %v4832_v28, %v4829_v21 }
 0xad8   : > { %8354 = vmatmul.mubr.msk.bf16.gmra.mrb[140].mxu0 %vm2937_vm0, %v4847_v56  ;;  %9178 = vmatprep.mubr.msk.bf16.mxu1 %vm2937_vm0, %v4850_v5 }
 0xad9   : > { %9179 = vmatmul.mubr.msk.bf16.gmra.mrb[148].mxu1 %vm2937_vm0, %v4851_v62  ;;  %5028 = vmatprep.mubr.bf16.mxu0 %v14100_v63 }
 0xada   : > { %9189 = vmatpush3.bf16.xpose.msra.mxu1 %v5296_v12  ;;  %9198 = vmatprep.mubr.msk.bf16.mxu1 %vm2937_vm0, %v5223_v27  ;;  %v14136_v12 = vld [vmem:[#allocation61_spill] sm:$0xff] }
 0xadb   : > { %9850 = vmatprep.subr.msk.bf16.mxu1 %vm2937_vm0, %v5255_v11 }
 0xae0   : > { %8355 = vmatmul.mubr.msk.bf16.gmra.mrb[144].mxu0 %vm2937_vm0, %v4848_v8 }
 0xae1   : > { %5038 = vmatprep.mubr.bf16.mxu0 %v14100_v63 }
 0xae2   : > { %9191 = vmatpush3.bf16.xpose.msra.mxu1 %v5299_v53  ;;  %v14137_v53 = vld [vmem:[#allocation63_spill] sm:$0xff] }
 0xae3   : > { %9851 = vmatprep.subr.msk.bf16.mxu1 %vm2937_vm0, %v5257_v20  ;;  %v14138_v20 = vld [vmem:[#allocation64_spill] sm:$0xff] }
 0xae8   : > { %8356 = vmatmul.mubr.msk.bf16.gmra.mrb[148].mxu0 %vm2937_vm0, %v4849_v61 }
 0xae9   : > { %5048 = vmatprep.mubr.bf16.mxu0 %v14100_v63 }
 0xaea   : > { %9193 = vmatpush3.bf16.xpose.msra.mxu1 %v5302_v13 }
 0xaeb   : > { %9852 = vmatprep.subr.msk.bf16.mxu1 %vm2937_vm0, %v5259_v25 }
 0xaf0   : > { %8357 = vmatmul.mubr.msk.bf16.gmra.mrb[152].mxu0 %vm2937_vm0, %v4850_v5  ;;  %v14135_v5 = vld [vmem:[#allocation60_spill] sm:$0xff] }
 0xaf1   : > { %5058 = vmatprep.mubr.bf16.mxu0 %v14100_v63 }
 0xaf2   : > { %9195 = vmatpush3.bf16.xpose.msra.mxu1 %v5305_v0  ;;  %v14139_v0 = vld [vmem:[#allocation39_spill] sm:$0xff] }
 0xaf3   : > { %9853 = vmatprep.subr.msk.bf16.mxu1 %vm2937_vm0, %v5261_v14  ;;  %v14140_v14 = vld [vmem:[#allocation41_spill] sm:$0xff] }
 0xaf8   : > { %8358 = vmatmul.mubr.msk.bf16.gmra.mrb[156].mxu0 %vm2937_vm0, %v4851_v62  ;;  %v14134_v62 = vld [vmem:[#allocation59_spill] sm:$0xff] }
 0xafa   : > { %9197 = vmatpush3.bf16.xpose.msra.mxu1 %v5308_v48  ;;  %v14142_v48 = vld [vmem:[#allocation47_spill] sm:$0xff] }
 0xafb   : > { %9246 = vmatprep.subr.bf16.mxu1 %v10325_v50 }
 0xb01   : > { %9199 = vmatmul.mubr.msk.bf16.vlgmr.msra.gmra.mrb[176].mxu1 %vm2937_vm0, %v5225_v9 }
 0xb02   : > { %9202 = vmatprep.mubr.msk.bf16.mxu1 %vm2937_vm0, %v5227_v39  ;;  %9247 = vmatpush3.bf16.msra.mxu1 %v10325_v50  ;;  %v14141_v50 = vld [vmem:[#allocation43_spill] sm:$0xff]  ;;  %v5570_v39 = vpop.permute.xlu1 %5569 }
 0xb03   : > { %9248 = vmatprep.subr.bf16.mxu1 %v10326_v32 }
 0xb06   : > { %9249 = vmatpush3.bf16.msra.mxu1 %v10326_v32 }
 0xb07   : > { %9250 = vmatprep.subr.bf16.mxu1 %v10327_v33 }
 0xb09   : > { %9203 = vmatmul.mubr.msk.bf16.gmra.mrb[180].mxu1 %vm2937_vm0, %v5229_v36 }
 0xb0a   : > { %9206 = vmatprep.mubr.msk.bf16.mxu1 %vm2937_vm0, %v5231_v15  ;;  %9251 = vmatpush3.bf16.msra.mxu1 %v10327_v33 }
 0xb0b   : > { %9252 = vmatprep.subr.bf16.mxu1 %v10328_v31 }
 0xb0e   : > { %9253 = vmatpush3.bf16.msra.mxu1 %v10328_v31 }
 0xb0f   : > { %9854 = vmatprep.subr.msk.bf16.mxu1 %vm2937_vm0, %v14133_v26 }
 0xb11   : > { %9207 = vmatmul.mubr.msk.bf16.gmra.mrb[184].mxu1 %vm2937_vm0, %v5233_v43 }
 0xb12   : > { %9210 = vmatprep.mubr.msk.bf16.mxu1 %vm2937_vm0, %v5235_v17 }
 0xb19   : > { %9211 = vmatmul.mubr.msk.bf16.gmra.mrb[188].mxu1 %vm2937_vm0, %v5237_v23 }
 0xbd4   : > { %v9200_v4 = vpop.f32.mrb[176].mxu1 }
 0xbd5   : > { %v5353_v34 = vadd.f32 %v9200_v4, %v12171_v42  ;;  %v5344_v19 = vpop.f32.mrb[177].mxu1 }
 0xbd6   : > { %v9201_v44 = vpop.f32.mrb[178].mxu1  ;;  %v5345_v22 = vadd.f32 %v5344_v19, %v12174_v45 }
 0xbd7   : > { %5411 = vmax.xlane.f32.xlu0 %v5353_v34  ;;  %v5347_v10 = vpop.f32.mrb[179].mxu1  ;;  %v5356_v47 = vadd.f32 %v9201_v44, %v12187_v6 }
 0xbd8   : > { %v13062_v16 = vadd.f32 %v5347_v10, %v12191_v51 }
 0xbda   : > { %5409 = vmax.xlane.f32.xlu1 %v13062_v16 }
 0xbdb   : > { %5407 = vmax.xlane.f32.xlu0 %v5345_v22 }
 0xbdc   : > { %v9204_v41 = vpop.f32.mrb[180].mxu1 }
 0xbdd   : > { %v5360_v56 = vpop.f32.mrb[181].mxu1  ;;  %v13096_v57 = vadd.f32 %v9204_v41, %v12205_v2 }
 0xbde   : > { %v9205_v60 = vpop.f32.mrb[182].mxu1  ;;  %v5361_v28 = vadd.f32 %v5360_v56, %v14134_v62  ;;  %v14143_v56 = vld [vmem:[#allocation49_spill] sm:$0xff] }
 0xbdf   : > { %v13068_v54 = vadd.f32 %v9205_v60, %v12212_v52  ;;  %5413 = vmax.xlane.f32.xlu0 %v5356_v47  ;;  %v5363_v7 = vpop.f32.mrb[183].mxu1 }
 0xbe0   : > { %v13072_v35 = vadd.f32 %v5363_v7, %v12227_v46 }
 0xbe1   : > { %5421 = vmax.xlane.f32.xlu1 %v13068_v54 }
 0xbe4   : > { %v9208_v49 = vpop.f32.mrb[184].mxu1 }
 0xbe5   : > { %5417 = vmax.xlane.f32.xlu1 %v13072_v35  ;;  %v5376_v38 = vpop.f32.mrb[185].mxu1  ;;  %v13101_v27 = vadd.f32 %v9208_v49, %v14135_v5 }
 0xbe6   : > { %v9209_v59 = vpop.f32.mrb[186].mxu1 }
 0xbe7   : > { %v13076_v11 = vadd.f32 %v9209_v59, %v12247_v40  ;;  %v5379_v61 = vpop.f32.mrb[187].mxu1 }
 0xbe8   : > { %v13080_v1 = vadd.f32 %v5379_v61, %v12262_v55 }
 0xbe9   : > { %5429 = vmax.xlane.f32.xlu1 %v13076_v11 }
 0xbec   : > { %v9212_v8 = vpop.f32.mrb[188].mxu1 }
 0xbed   : > { %5425 = vmax.xlane.f32.xlu1 %v13080_v1  ;;  %v5392_v58 = vpop.f32.mrb[189].mxu1 }
 0xbee   : > { %v9213_v24 = vpop.f32.mrb[190].mxu1  ;;  %v13113_v13 = vadd.f32 %v5392_v58, %v14138_v20 }
 0xbef   : > { %v13084_v30 = vadd.f32 %v9213_v24, %v14095_v37  ;;  %v5395_v25 = vpop.f32.mrb[191].mxu1 }
 0xbf0   : > { %v13088_v21 = vadd.f32 %v5395_v25, %v14096_v3 }
 0xbf1   : > { %5437 = vmax.xlane.f32.xlu1 %v13084_v30 }
 0xbf5   : > { %5567 = vrot.lane.b32.xlu0 %v14105_v29, %s10862_s11  ;;  %5433 = vmax.xlane.f32.xlu1 %v13088_v21  ;;  %v13105_v29 = vadd.f32 %v5376_v38, %v14136_v12 }
 0xc06   : > { %5577 = vrot.lane.b32.xlu1 %v14113_v18, %s10862_s11  ;;  %v13109_v18 = vadd.f32 %v9212_v8, %v14137_v53 }
 0xc14   : > { %5419 = vmax.xlane.f32.xlu0 %v13096_v57 }
 0xc18   : > { %5415 = vmax.xlane.f32.xlu0 %v5361_v28 }
 0xc1c   : > { %5427 = vmax.xlane.f32.xlu0 %v13101_v27 }
 0xc20   : > { %5423 = vmax.xlane.f32.xlu0 %v13105_v29 }
 0xc24   : > { %5435 = vmax.xlane.f32.xlu0 %v13109_v18 }
 0xc28   : > { %5431 = vmax.xlane.f32.xlu0 %v13113_v13 }
 0xc3e   : > { %5571 = vrot.lane.b32.xlu0 %v14139_v0, %s10862_s11 }
 0xc42   : > { %5573 = vrot.lane.b32.xlu0 %v14140_v14, %s10862_s11 }
 0xc46   : > { %5575 = vrot.lane.b32.xlu0 %v14141_v50, %s10862_s11 }
 0xc4a   : > { %5579 = vrot.lane.b32.xlu0 %v14142_v48, %s10862_s11 }
 0xc64   : > { %v5412_v32 = vpop.xlane.xlu0 %5411 }
 0xc65   : > { %v5441_v9 = vsub.f32 %v5353_v34, %v5412_v32 }
 0xc67   : > { %v5459_v33 = vmul.f32 1.442695, %v5441_v9  ;;  %v5410_v15 = vpop.xlane.xlu1 %5409 }
 0xc68   : > { %v5408_v31 = vpop.xlane.xlu0 %5407  ;;  %v5440_v23 = vsub.f32 %v13062_v16, %v5410_v15 }
 0xc69   : > { %10565 = vpow2.f32 %v5459_v33  ;;  %v5439_v36 = vsub.f32 %v5345_v22, %v5408_v31 }
 0xc6a   : > { %v5457_v10 = vmul.f32 1.442695, %v5440_v23 }
 0xc6b   : > { %v5455_v43 = vmul.f32 1.442695, %v5439_v36 }
 0xc6c   : > { %v5414_v17 = vpop.xlane.xlu0 %5413 }
 0xc6d   : > { %10567 = vpow2.f32 %v5455_v43  ;;  %v5442_v4 = vsub.f32 %v5356_v47, %v5414_v17 }
 0xc6e   : > { %v5422_v47 = vpop.xlane.xlu1 %5421 }
 0xc6f   : > { %v5461_v19 = vmul.f32 1.442695, %v5442_v4  ;;  %v5446_v50 = vsub.f32 %v13068_v54, %v5422_v47 }
 0xc70   : > { %v5568_v44 = vpop.permute.xlu0 %5567 }
 0xc71   : > { %10569 = vpow2.f32 %v5461_v19  ;;  %9214 = vmatprep.subr.bf16.mxu0 %v5568_v44 }
 0xc72   : > { %9215 = vmatpush3.bf16.msra.mxu0 %v5568_v44  ;;  %10571 = vpow2.f32 %v5457_v10  ;;  %v5418_v60 = vpop.xlane.xlu1 %5417 }
 0xc73   : > { %v13125_v41 = vpop.eup %10565  ;;  %9216 = vmatprep.subr.bf16.mxu0 %v5570_v39  ;;  %v5444_v38 = vsub.f32 %v13072_v35, %v5418_v60  ;;  %v5469_v35 = vmul.f32 1.442695, %v5446_v50 }
 0xc74   : > { %5491 = vadd.xlane.f32.xlu1 %v13125_v41 }
 0xc75   : > { %v5465_v8 = vmul.f32 1.442695, %v5444_v38 }
 0xc76   : > { %9217 = vmatpush3.bf16.msra.mxu0 %v5570_v39  ;;  %v5430_v7 = vpop.xlane.xlu1 %5429 }
 0xc77   : > { %v13128_v34 = vpop.eup %10567  ;;  %10573 = vpow2.f32 %v5465_v8  ;;  %v5450_v9 = vsub.f32 %v13076_v11, %v5430_v7 }
 0xc78   : > { %5487 = vadd.xlane.f32.xlu1 %v13128_v34 }
 0xc79   : > { %v5477_v36 = vmul.f32 1.442695, %v5450_v9 }
 0xc7a   : > { %v5426_v49 = vpop.xlane.xlu1 %5425 }
 0xc7b   : > { %v13131_v16 = vpop.eup %10569  ;;  %v5448_v58 = vsub.f32 %v13080_v1, %v5426_v49 }
 0xc7c   : > { %5493 = vadd.xlane.f32.xlu1 %v13131_v16  ;;  %v13134_v22 = vpop.eup %10571 }
 0xc7d   : > { %v5473_v48 = vmul.f32 1.442695, %v5448_v58 }
 0xc7e   : > { %v5438_v61 = vpop.xlane.xlu1 %5437 }
 0xc7f   : > { %v5454_v54 = vsub.f32 %v13084_v30, %v5438_v61 }
 0xc80   : > { %5489 = vadd.xlane.f32.xlu1 %v13134_v22 }
 0xc81   : > { %v13148_v17 = vpop.eup %10573  ;;  %v5485_v4 = vmul.f32 1.442695, %v5454_v54 }
 0xc82   : > { %v5434_v39 = vpop.xlane.xlu1 %5433 }
 0xc83   : > { %v5452_v31 = vsub.f32 %v13088_v21, %v5434_v39 }
 0xc86   : > { %v5578_v61 = vpop.permute.xlu1 %5577 }
 0xc91   : > { %5581 = vrot.lane.b32.xlu1 %v14143_v56, %s10862_s11 }
 0xca1   : > { %v5420_v59 = vpop.xlane.xlu0 %5419 }
 0xca2   : > { %v5445_v25 = vsub.f32 %v13096_v57, %v5420_v59 }
 0xca4   : > { %v5467_v33 = vmul.f32 1.442695, %v5445_v25 }
 0xca5   : > { %v5416_v24 = vpop.xlane.xlu0 %5415 }
 0xca6   : > { %v5443_v0 = vsub.f32 %v5361_v28, %v5416_v24  ;;  %v5481_v28 = vmul.f32 1.442695, %v5452_v31 }
 0xca8   : > { %v5463_v14 = vmul.f32 1.442695, %v5443_v0 }
 0xca9   : > { %v5428_v32 = vpop.xlane.xlu0 %5427 }
 0xcaa   : > { %10575 = vpow2.f32 %v5463_v14  ;;  %v5449_v11 = vsub.f32 %v13101_v27, %v5428_v32  ;;  %v10331_v32 = vld [vmem:[%s13940_s2 + $0x124] ss:$12 sps:$4 sm:$0xff]  }
 0xcab   : > { %10577 = vpow2.f32 %v5473_v48 }
 0xcac   : > { %10579 = vpow2.f32 %v5467_v33 }
 0xcad   : > { %v5424_v1 = vpop.xlane.xlu0 %5423  ;;  %10581 = vpow2.f32 %v5469_v35 }
 0xcae   : > { %v5447_v57 = vsub.f32 %v13105_v29, %v5424_v1  ;;  %10583 = vpow2.f32 %v5477_v36  ;;  %v5475_v29 = vmul.f32 1.442695, %v5449_v11 }
 0xcaf   : > { %10585 = vpow2.f32 %v5481_v28 }
 0xcb0   : > { %v5471_v43 = vmul.f32 1.442695, %v5447_v57 }
 0xcb1   : > { %v5436_v15 = vpop.xlane.xlu0 %5435 }
 0xcb2   : > { %10587 = vpow2.f32 %v5471_v43  ;;  %v5453_v10 = vsub.f32 %v13109_v18, %v5436_v15  ;;  %v10329_v15 = vld [vmem:[%s13940_s2 + $0x120] ss:$12 sps:$4 sm:$0xff]   ;;  %v10334_v43 = vld [vmem:[%s13940_s2 + $0x13c] ss:$12 sps:$4 sm:$0xff]  }
 0xcb3   : > { %10589 = vpow2.f32 %v5485_v4  ;;  %v10338_v4 = vld [vmem:[%s13940_s2 + $0x168] ss:$12 sps:$4 sm:$0xff]  }
 0xcb4   : > { %v13150_v23 = vpop.eup %10575  ;;  %10591 = vpow2.f32 %v5475_v29  ;;  %v5483_v7 = vmul.f32 1.442695, %v5453_v10 }
 0xcb5   : > { %5497 = vadd.xlane.f32.xlu1 %v13148_v17  ;;  %5495 = vadd.xlane.f32.xlu0 %v13150_v23  ;;  %v5432_v21 = vpop.xlane.xlu0 %5431  ;;  %v13155_v19 = vpop.eup %10577 }
 0xcb6   : > { %v5451_v30 = vsub.f32 %v13113_v13, %v5432_v21  ;;  %v13157_v44 = vpop.eup %10579  ;;  %v14144_v21 = vld [vmem:[#allocation51_spill] sm:$0xff] }
 0xcb7   : > { %v13162_v56 = vpop.eup %10581 }
 0xcb8   : > { %v5479_v47 = vmul.f32 1.442695, %v5451_v30  ;;  %v13164_v60 = vpop.eup %10583 }
 0xcb9   : > { %5505 = vadd.xlane.f32.xlu1 %v13155_v19  ;;  %5499 = vadd.xlane.f32.xlu0 %v13157_v44  ;;  %v5572_v27 = vpop.permute.xlu0 %5571  ;;  %v13168_v49 = vpop.eup %10585 }
 0xcba   : > { %9218 = vmatprep.subr.bf16.mxu0 %v5572_v27  ;;  %10593 = vpow2.f32 %v5479_v47 }
 0xcbb   : > { %9219 = vmatpush3.bf16.msra.mxu0 %v5572_v27  ;;  %10595 = vpow2.f32 %v5483_v7 }
 0xcbc   : > { %v13170_v38 = vpop.eup %10587 }
 0xcbd   : > { %5509 = vadd.xlane.f32.xlu1 %v13164_v60  ;;  %5501 = vadd.xlane.f32.xlu0 %v13162_v56  ;;  %v5574_v13 = vpop.permute.xlu0 %5573  ;;  %v13174_v59 = vpop.eup %10589 }
 0xcbe   : > { %9220 = vmatprep.subr.bf16.mxu0 %v5574_v13  ;;  %v13176_v8 = vpop.eup %10591 }
 0xcbf   : > { %9221 = vmatpush3.bf16.msra.mxu0 %v5574_v13 }
 0xcc1   : > { %5513 = vadd.xlane.f32.xlu1 %v13168_v49  ;;  %5503 = vadd.xlane.f32.xlu0 %v13170_v38  ;;  %v5576_v18 = vpop.permute.xlu0 %5575 }
 0xcc2   : > { %9222 = vmatprep.subr.bf16.mxu0 %v5576_v18 }
 0xcc3   : > { %9223 = vmatpush3.bf16.msra.mxu0 %v5576_v18 }
 0xcc4   : > { %9224 = vmatprep.subr.bf16.mxu0 %v5578_v61  ;;  %v13180_v24 = vpop.eup %10593 }
 0xcc5   : > { %5517 = vadd.xlane.f32.xlu1 %v13174_v59  ;;  %5507 = vadd.xlane.f32.xlu0 %v13176_v8  ;;  %v5580_v58 = vpop.permute.xlu0 %5579  ;;  %v13183_v25 = vpop.eup %10595 }
 0xcc7   : > { %9225 = vmatpush3.bf16.msra.mxu0 %v5578_v61 }
 0xcc8   : > { %9226 = vmatprep.subr.bf16.mxu0 %v5580_v58 }
 0xcc9   : > { %5511 = vadd.xlane.f32.xlu0 %v13180_v24 }
 0xccb   : > { %9227 = vmatpush3.bf16.msra.mxu0 %v5580_v58 }
 0xccd   : > { %5515 = vadd.xlane.f32.xlu0 %v13183_v25 }
 0xd01   : > { %v5492_v0 = vpop.xlane.xlu1 %5491 }
 0xd05   : > { %v5488_v14 = vpop.xlane.xlu1 %5487 }
 0xd09   : > { %v5494_v50 = vpop.xlane.xlu1 %5493 }
 0xd0a   : > { %10597 = vrcp.f32 %v5494_v50 }
 0xd0b   : > { %10599 = vrcp.f32 %v5488_v14 }
 0xd0c   : > { %10601 = vrcp.f32 %v5492_v0 }
 0xd0d   : > { %v5490_v48 = vpop.xlane.xlu1 %5489 }
 0xd0e   : > { %10603 = vrcp.f32 %v5490_v48 }
 0xd11   : > { %v5582_v9 = vpop.permute.xlu1 %5581 }
 0xd12   : > { %9228 = vmatprep.subr.bf16.mxu0 %v5582_v9 }
 0xd13   : > { %9229 = vmatpush3.bf16.msra.mxu0 %v5582_v9 }
 0xd14   : > { %5800 = vmatprep.subr.bf16.mxu0 %v10331_v32  ;;  %v10598_v39 = vpop.eup %10597 }
 0xd15   : > { %v10600_v33 = vpop.eup %10599  ;;  %v5538_v1 = vmul.f32 %v10598_v39, %v13131_v16  ;;  %v10335_v16 = vld [vmem:[%s13940_s2 + $0x150] ss:$12 sps:$4 sm:$0xff]  }
 0xd16   : > { %v10602_v35 = vpop.eup %10601  ;;  %v5535_v36 = vmul.f32 %v10600_v33, %v13128_v34  ;;  %v10332_v34 = vld [vmem:[%s13940_s2 + $0x138] ss:$12 sps:$4 sm:$0xff]  }
 0xd17   : > { %v5537_v54 = vmul.f32 %v10602_v35, %v13125_v41  ;;  %v10337_v41 = vld [vmem:[%s13940_s2 + $0x154] ss:$12 sps:$4 sm:$0xff]  }
 0xd18   : > { %v10604_v31 = vpop.eup %10603 }
 0xd19   : > { %v5536_v57 = vmul.f32 %v10604_v31, %v13134_v22  ;;  %v5552_v11 = vpack.c.bf16 %v5538_v1, %v5537_v54  ;;  %v10340_v22 = vld [vmem:[%s13940_s2 + $0x16c] ss:$12 sps:$4 sm:$0xff]  }
 0xd1b   : > { %v5551_v28 = vpack.c.bf16 %v5536_v57, %v5535_v36 }
 0xd1d   : > { %9230 = vmatprep.mubr.bf16.mxu0 %v5551_v28 }
 0xd1e   : > { %9231 = vmatmul.mubr.bf16.vlgmr.msra.gmra.mrb[184].mxu0 %v5552_v11 }
 0xd1f   : > { %5801 = vmatpush1.bf16.msra.mxu0 %v10329_v15 }
 0xd20   : > { %5802 = vmatprep.subr.bf16.mxu0 %v10334_v43 }
 0xd23   : > { %5803 = vmatpush1.bf16.msra.mxu0 %v10332_v34 }
 0xd24   : > { %5804 = vmatprep.subr.bf16.mxu0 %v10337_v41 }
 0xd27   : > { %5805 = vmatpush1.bf16.msra.mxu0 %v10335_v16 }
 0xd28   : > { %5806 = vmatprep.subr.bf16.mxu0 %v10340_v22 }
 0xd2b   : > { %5807 = vmatpush1.bf16.msra.mxu0 %v10338_v4 }
 0xd2c   : > { %9302 = vmatprep.subr.bf16.mxu0 %v14144_v21 }
 0xd42   : > { %v5498_v29 = vpop.xlane.xlu1 %5497  ;;  %v5496_v30 = vpop.xlane.xlu0 %5495 }
 0xd43   : > { %10605 = vrcp.f32 %v5498_v29 }
 0xd44   : > { %10607 = vrcp.f32 %v5496_v30 }
 0xd46   : > { %v5506_v27 = vpop.xlane.xlu1 %5505  ;;  %v5500_v10 = vpop.xlane.xlu0 %5499 }
 0xd47   : > { %10609 = vrcp.f32 %v5500_v10 }
 0xd4a   : > { %v5510_v47 = vpop.xlane.xlu1 %5509  ;;  %v5502_v13 = vpop.xlane.xlu0 %5501 }
 0xd4b   : > { %10611 = vrcp.f32 %v5502_v13 }
 0xd4c   : > { %10613 = vrcp.f32 %v5506_v27 }
 0xd4d   : > { %v10606_v7 = vpop.eup %10605 }
 0xd4e   : > { %v10608_v18 = vpop.eup %10607  ;;  %v5504_v61 = vpop.xlane.xlu0 %5503  ;;  %v5540_v58 = vmul.f32 %v10606_v7, %v13148_v17  ;;  %v14147_v7 = vld [vmem:[#allocation53_spill] sm:$0xff] }
 0xd4f   : > { %v5539_v0 = vmul.f32 %v10608_v18, %v13150_v23  ;;  %v5514_v14 = vpop.xlane.xlu1 %5513  ;;  %10615 = vrcp.f32 %v5504_v61  ;;  %v14148_v61 = vld [vmem:[#allocation52_spill] sm:$0xff] }
 0xd50   : > { %10617 = vrcp.f32 %v5510_v47 }
 0xd51   : > { %v5553_v50 = vpack.c.bf16 %v5540_v58, %v5539_v0  ;;  %v10610_v32 = vpop.eup %10609  ;;  %v14149_v58 = vld [vmem:[#allocation25_spill] sm:$0xff]  ;;  %v14150_v0 = vld [vmem:[#allocation55_spill] sm:$0xff] }
 0xd52   : > { %v5508_v48 = vpop.xlane.xlu0 %5507  ;;  %v5541_v35 = vmul.f32 %v10610_v32, %v13157_v44  ;;  %v14153_v32 = vld [vmem:[#allocation57_spill] sm:$0xff] }
 0xd53   : > { %9234 = vmatprep.mubr.bf16.mxu0 %v5553_v50  ;;  %10619 = vrcp.f32 %v5508_v48  ;;  %v5518_v39 = vpop.xlane.xlu1 %5517  ;;  %v14151_v50 = vld [vmem:[#allocation54_spill] sm:$0xff]  ;;  %v14152_v48 = vld [vmem:[#allocation28_spill] sm:$0xff] }
 0xd54   : > { %10621 = vrcp.f32 %v5514_v14  ;;  %v6089_v14 = vsel %vm2937_vm0, %v14149_v58, 0 }
 0xd55   : > { %v10612_v9 = vpop.eup %10611 }
 0xd56   : > { %v5512_v33 = vpop.xlane.xlu0 %5511  ;;  %v5542_v31 = vmul.f32 %v10612_v9, %v13162_v56  ;;  %v10614_v17 = vpop.eup %10613  ;;  %v6092_v9 = vsel %vm2937_vm0, %v14152_v48, 0 }
 0xd57   : > { %10623 = vrcp.f32 %v5512_v33  ;;  %v5544_v54 = vmul.f32 %v10614_v17, %v13155_v19  ;;  %v14155_v33 = vld [vmem:[#allocation30_spill] sm:$0xff] }
 0xd58   : > { %10625 = vrcp.f32 %v5518_v39  ;;  %v5554_v23 = vpack.c.bf16 %v5542_v31, %v5541_v35  ;;  %v14154_v39 = vld [vmem:[#allocation56_spill] sm:$0xff]  ;;  %v6095_v35 = vsel %vm2937_vm0, %v14155_v33, 0 }
 0xd59   : > { %v10616_v1 = vpop.eup %10615  ;;  %v14156_v31 = vld [vmem:[#allocation32_spill] sm:$0xff] }
 0xd5a   : > { %v5516_v36 = vpop.xlane.xlu0 %5515  ;;  %9235 = vmatmul.mubr.bf16.gmra.mrb[188].mxu0 %v5554_v23  ;;  %v5543_v57 = vmul.f32 %v10616_v1, %v13170_v38  ;;  %v10618_v28 = vpop.eup %10617  ;;  %v6098_v17 = vsel %vm2937_vm0, %v14156_v31, 0  ;;  %v14157_v23 = vld [vmem:[#allocation34_spill] sm:$0xff] }
 0xd5b   : > { %10627 = vrcp.f32 %v5516_v36  ;;  %v5546_v56 = vmul.f32 %v10618_v28, %v13164_v60  ;;  %v6101_v1 = vsel %vm2937_vm0, %v14157_v23, 0  ;;  %v14158_v36 = vld [vmem:[#allocation36_spill] sm:$0xff] }
 0xd5c   : > { %v5555_v15 = vpack.c.bf16 %v5544_v54, %v5543_v57 }
 0xd5d   : > { %v10620_v11 = vpop.eup %10619 }
 0xd5e   : > { %v10622_v43 = vpop.eup %10621  ;;  %9238 = vmatprep.mubr.bf16.mxu0 %v5555_v15  ;;  %v5545_v44 = vmul.f32 %v10620_v11, %v13176_v8  ;;  %v6104_v15 = vsel %vm2937_vm0, %v14158_v36, 0 }
 0xd5f   : > { %v5548_v22 = vmul.f32 %v10622_v43, %v13168_v49  ;;  %v6083_v49 = vsel %vm2937_vm0, %v14133_v26, 0 }
 0xd60   : > { %v5556_v41 = vpack.c.bf16 %v5546_v56, %v5545_v44 }
 0xd61   : > { %v10624_v34 = vpop.eup %10623 }
 0xd62   : > { %v5547_v16 = vmul.f32 %v10624_v34, %v13180_v24  ;;  %v10626_v4 = vpop.eup %10625  ;;  %9239 = vmatmul.mubr.bf16.gmra.mrb[192].mxu0 %v5556_v41 }
 0xd63   : > { %v5550_v30 = vmul.f32 %v10626_v4, %v13174_v59  ;;  %v14145_v59 = vld [vmem:[#allocation50_spill] sm:$0xff] }
 0xd64   : > { %v5557_v38 = vpack.c.bf16 %v5548_v22, %v5547_v16 }
 0xd65   : > { %v10628_v29 = vpop.eup %10627 }
 0xd66   : > { %9242 = vmatprep.mubr.bf16.mxu0 %v5557_v38  ;;  %v5549_v19 = vmul.f32 %v10628_v29, %v13183_v25  ;;  %v14146_v25 = vld [vmem:[#allocation22_spill] sm:$0xff] }
 0xd67   : > { %v6086_v18 = vsel %vm2937_vm0, %v14146_v25, 0 }
 0xd68   : > { %v5558_v27 = vpack.c.bf16 %v5550_v30, %v5549_v19 }
 0xd6a   : > { %9243 = vmatmul.mubr.bf16.gmra.mrb[196].mxu0 %v5558_v27 }
 0xd6b   : > { %5832 = vmatprep.mubr.bf16.mxu0 %v14100_v63 }
 0xdf1   : > { %v9232_v60 = vpop.f32.mrb[184].mxu0 }
 0xdf2   : > { %v5625_v8 = vpop.f32.mrb[185].mxu0 }
 0xdf3   : > { %v9233_v10 = vpop.f32.mrb[186].mxu0 }
 0xdf4   : > { %v5689_v47 = vpack.c.bf16 %v9233_v10, %v9232_v60  ;;  %v5628_v24 = vpop.f32.mrb[187].mxu0  ;;  %v14160_v10 = vld [vmem:[#allocation14_spill] sm:$0xff] }
 0xdf5   : > { %v5688_v13 = vpack.c.bf16 %v5628_v24, %v5625_v8  ;;  %v14159_v8 = vld [vmem:[#allocation13_spill] sm:$0xff]  ;;  %v14162_v24 = vld [vmem:[#allocation16_spill] sm:$0xff] }
 0xdf7   : > { %8387 = vmatmul.mubr.msk.bf16.vlgmr.msra.gmra.mrb[128].mxu0 %vm2937_vm0, %v5688_v13  ;;  %9254 = vmatprep.mubr.msk.bf16.mxu1 %vm2937_vm0, %v5688_v13  ;;  %v14163_v13 = vld [vmem:[#allocation17_spill] sm:$0xff] }
 0xdf8   : > { %9303 = vmatpush3.bf16.msra.mxu0 %v14144_v21  ;;  %9255 = vmatmul.mubr.msk.bf16.vlgmr.msra.gmra.mrb[152].mxu1 %vm2937_vm0, %v5689_v47 }
 0xdf9   : > { %9271 = vmatpush3.bf16.xpose.msra.mxu1 %v6083_v49  ;;  %9304 = vmatprep.subr.bf16.mxu0 %v14145_v59  ;;  %v14164_v49 = vld [vmem:[#allocation20_spill] sm:$0xff] }
 0xdfa   : > { %9855 = vmatprep.subr.msk.bf16.mxu1 %vm2937_vm0, %v14146_v25  ;;  %5842 = vmatprep.mubr.bf16.mxu0 %v14100_v63 }
 0xdfc   : > { %9305 = vmatpush3.bf16.msra.mxu0 %v14145_v59 }
 0xdfd   : > { %9306 = vmatprep.subr.bf16.mxu0 %v14147_v7 }
 0xdff   : > { %8388 = vmatmul.mubr.msk.bf16.gmra.mrb[132].mxu0 %vm2937_vm0, %v5689_v47  ;;  %v14161_v47 = vld [vmem:[#allocation15_spill] sm:$0xff] }
 0xe00   : > { %9307 = vmatpush3.bf16.msra.mxu0 %v14147_v7  ;;  %5852 = vmatprep.mubr.bf16.mxu0 %v14100_v63 }
 0xe01   : > { %9273 = vmatpush3.bf16.xpose.msra.mxu1 %v6086_v18  ;;  %9308 = vmatprep.subr.bf16.mxu0 %v14148_v61  ;;  %v14165_v18 = vld [vmem:[#allocation23_spill] sm:$0xff] }
 0xe02   : > { %9856 = vmatprep.subr.msk.bf16.mxu1 %vm2937_vm0, %v14149_v58 }
 0xe04   : > { %9309 = vmatpush3.bf16.msra.mxu0 %v14148_v61 }
 0xe05   : > { %9310 = vmatprep.subr.bf16.mxu0 %v14150_v0 }
 0xe08   : > { %9311 = vmatpush3.bf16.msra.mxu0 %v14150_v0 }
 0xe09   : > { %9275 = vmatpush3.bf16.xpose.msra.mxu1 %v6089_v14  ;;  %9312 = vmatprep.subr.bf16.mxu0 %v14151_v50  ;;  %v14166_v14 = vld [vmem:[#allocation26_spill] sm:$0xff] }
 0xe0a   : > { %9857 = vmatprep.subr.msk.bf16.mxu1 %vm2937_vm0, %v14152_v48 }
 0xe0c   : > { %9313 = vmatpush3.bf16.msra.mxu0 %v14151_v50 }
 0xe0d   : > { %9314 = vmatprep.subr.bf16.mxu0 %v14153_v32 }
 0xe10   : > { %9315 = vmatpush3.bf16.msra.mxu0 %v14153_v32 }
 0xe11   : > { %9277 = vmatpush3.bf16.xpose.msra.mxu1 %v6092_v9  ;;  %9316 = vmatprep.subr.bf16.mxu0 %v14154_v39 }
 0xe12   : > { %9858 = vmatprep.subr.msk.bf16.mxu1 %vm2937_vm0, %v14155_v33 }
 0xe14   : > { %9317 = vmatpush3.bf16.msra.mxu0 %v14154_v39 }
 0xe19   : > { %9279 = vmatpush3.bf16.xpose.msra.mxu1 %v6095_v35 }
 0xe1a   : > { %9859 = vmatprep.subr.msk.bf16.mxu1 %vm2937_vm0, %v14156_v31 }
 0xe21   : > { %9281 = vmatpush3.bf16.xpose.msra.mxu1 %v6098_v17 }
 0xe22   : > { %9860 = vmatprep.subr.msk.bf16.mxu1 %vm2937_vm0, %v14157_v23 }
 0xe29   : > { %9283 = vmatpush3.bf16.xpose.msra.mxu1 %v6101_v1 }
 0xe2a   : > { %9861 = vmatprep.subr.msk.bf16.mxu1 %vm2937_vm0, %v14158_v36 }
 0xe2d   : > { %v9236_v57 = vpop.f32.mrb[188].mxu0 }
 0xe2e   : > { %v5641_v54 = vpop.f32.mrb[189].mxu0 }
 0xe2f   : > { %v9237_v28 = vpop.f32.mrb[190].mxu0 }
 0xe30   : > { %v5691_v11 = vpack.c.bf16 %v9237_v28, %v9236_v57  ;;  %v5644_v43 = vpop.f32.mrb[191].mxu0 }
 0xe31   : > { %9285 = vmatpush3.bf16.xpose.msra.mxu1 %v6104_v15  ;;  %v5690_v44 = vpack.c.bf16 %v5644_v43, %v5641_v54 }
 0xe33   : > { %8389 = vmatmul.mubr.msk.bf16.gmra.mrb[136].mxu0 %vm2937_vm0, %v5690_v44  ;;  %9258 = vmatprep.mubr.msk.bf16.mxu1 %vm2937_vm0, %v5690_v44 }
 0xe34   : > { %9259 = vmatmul.mubr.msk.bf16.gmra.mrb[156].mxu1 %vm2937_vm0, %v5691_v11  ;;  %5862 = vmatprep.mubr.bf16.mxu0 %v14100_v63 }
 0xe35   : > { %v9240_v56 = vpop.f32.mrb[192].mxu0 }
 0xe36   : > { %v5657_v34 = vpop.f32.mrb[193].mxu0 }
 0xe37   : > { %v9241_v41 = vpop.f32.mrb[194].mxu0 }
 0xe38   : > { %v5693_v16 = vpack.c.bf16 %v9241_v41, %v9240_v56  ;;  %v5660_v22 = vpop.f32.mrb[195].mxu0 }
 0xe39   : > { %v5692_v4 = vpack.c.bf16 %v5660_v22, %v5657_v34 }
 0xe3b   : > { %8390 = vmatmul.mubr.msk.bf16.gmra.mrb[140].mxu0 %vm2937_vm0, %v5691_v11  ;;  %9262 = vmatprep.mubr.msk.bf16.mxu1 %vm2937_vm0, %v5692_v4 }
 0xe3c   : > { %9263 = vmatmul.mubr.msk.bf16.gmra.mrb[144].mxu1 %vm2937_vm0, %v5693_v16  ;;  %5872 = vmatprep.mubr.bf16.mxu0 %v14100_v63 }
 0xe3d   : > { %v9244_v38 = vpop.f32.mrb[196].mxu0 }
 0xe3e   : > { %v5673_v29 = vpop.f32.mrb[197].mxu0 }
 0xe3f   : > { %v9245_v19 = vpop.f32.mrb[198].mxu0 }
 0xe40   : > { %v5695_v30 = vpack.c.bf16 %v9245_v19, %v9244_v38  ;;  %v5676_v27 = vpop.f32.mrb[199].mxu0 }
 0xe41   : > { %v5694_v60 = vpack.c.bf16 %v5676_v27, %v5673_v29 }
 0xe43   : > { %8391 = vmatmul.mubr.msk.bf16.gmra.mrb[144].mxu0 %vm2937_vm0, %v5692_v4  ;;  %9266 = vmatprep.mubr.msk.bf16.mxu1 %vm2937_vm0, %v5694_v60 }
 0xe44   : > { %9267 = vmatmul.mubr.msk.bf16.gmra.mrb[148].mxu1 %vm2937_vm0, %v5695_v30  ;;  %5882 = vmatprep.mubr.bf16.mxu0 %v14100_v63 }
 0xe45   : > { %9286 = vmatprep.mubr.msk.bf16.mxu1 %vm2937_vm0, %v14159_v8 }
 0xe4b   : > { %8392 = vmatmul.mubr.msk.bf16.gmra.mrb[148].mxu0 %vm2937_vm0, %v5693_v16 }
 0xe4c   : > { %9287 = vmatmul.mubr.msk.bf16.vlgmr.msra.gmra.mrb[192].mxu1 %vm2937_vm0, %v14160_v10  ;;  %5892 = vmatprep.mubr.bf16.mxu0 %v14100_v63 }
 0xe4d   : > { %9290 = vmatprep.mubr.msk.bf16.mxu1 %vm2937_vm0, %v14161_v47 }
 0xe53   : > { %8393 = vmatmul.mubr.msk.bf16.gmra.mrb[152].mxu0 %vm2937_vm0, %v5694_v60 }
 0xe54   : > { %9291 = vmatmul.mubr.msk.bf16.gmra.mrb[196].mxu1 %vm2937_vm0, %v14162_v24  ;;  %5902 = vmatprep.mubr.bf16.mxu0 %v14100_v63 }
 0xe55   : > { %9294 = vmatprep.mubr.msk.bf16.mxu1 %vm2937_vm0, %v14163_v13 }
 0xe5b   : > { %8394 = vmatmul.mubr.msk.bf16.gmra.mrb[156].mxu0 %vm2937_vm0, %v5695_v30 }
 0xe5c   : > { %9295 = vmatmul.mubr.msk.bf16.gmra.mrb[200].mxu1 %vm2937_vm0, %v14164_v49 }
 0xe5d   : > { %9298 = vmatprep.mubr.msk.bf16.mxu1 %vm2937_vm0, %v14165_v18 }
 0xe64   : > { %9299 = vmatmul.mubr.msk.bf16.gmra.mrb[204].mxu1 %vm2937_vm0, %v14166_v14 }
 0xf1f   : > { %v9288_v9 = vpop.f32.mrb[192].mxu1 }
 0xf20   : > { %v6140_v35 = vpop.f32.mrb[193].mxu1  ;;  %v6149_v28 = vadd.f32 %v9288_v9, %v12171_v42 }
 0xf21   : > { %v6141_v17 = vadd.f32 %v6140_v35, %v12174_v45  ;;  %v9289_v1 = vpop.f32.mrb[194].mxu1 }
 0xf22   : > { %v6143_v57 = vpop.f32.mrb[195].mxu1  ;;  %v6152_v15 = vadd.f32 %v9289_v1, %v12187_v6 }
 0xf23   : > { %v6144_v54 = vadd.f32 %v6143_v57, %v12191_v51  ;;  %6203 = vmax.xlane.f32.xlu0 %v6141_v17 }
 0xf25   : > { %6205 = vmax.xlane.f32.xlu1 %v6144_v54 }
 0xf27   : > { %v9292_v11 = vpop.f32.mrb[196].mxu1  ;;  %6207 = vmax.xlane.f32.xlu0 %v6149_v28 }
 0xf28   : > { %v6156_v43 = vpop.f32.mrb[197].mxu1  ;;  %v6165_v16 = vadd.f32 %v9292_v11, %v12205_v2 }
 0xf29   : > { %v6157_v44 = vadd.f32 %v6156_v43, %v14134_v62  ;;  %v9293_v56 = vpop.f32.mrb[198].mxu1  ;;  %6209 = vmax.xlane.f32.xlu1 %v6152_v15 }
 0xf2a   : > { %v6159_v34 = vpop.f32.mrb[199].mxu1  ;;  %v6168_v22 = vadd.f32 %v9293_v56, %v12212_v52 }
 0xf2b   : > { %v6160_v41 = vadd.f32 %v6159_v34, %v12227_v46  ;;  %6211 = vmax.xlane.f32.xlu0 %v6157_v44 }
 0xf2d   : > { %6213 = vmax.xlane.f32.xlu1 %v6160_v41 }
 0xf2f   : > { %v9296_v4 = vpop.f32.mrb[200].mxu1  ;;  %6215 = vmax.xlane.f32.xlu0 %v6165_v16 }
 0xf30   : > { %v6172_v38 = vpop.f32.mrb[201].mxu1  ;;  %v13328_v60 = vadd.f32 %v9296_v4, %v14135_v5 }
 0xf31   : > { %v13321_v29 = vadd.f32 %v6172_v38, %v14136_v12  ;;  %v9297_v19 = vpop.f32.mrb[202].mxu1  ;;  %6217 = vmax.xlane.f32.xlu1 %v6168_v22 }
 0xf32   : > { %v6175_v30 = vpop.f32.mrb[203].mxu1  ;;  %v13332_v9 = vadd.f32 %v9297_v19, %v12247_v40 }
 0xf33   : > { %v13324_v27 = vadd.f32 %v6175_v30, %v12262_v55  ;;  %6219 = vmax.xlane.f32.xlu0 %v13321_v29 }
 0xf35   : > { %6221 = vmax.xlane.f32.xlu1 %v13324_v27 }
 0xf37   : > { %v9300_v35 = vpop.f32.mrb[204].mxu1  ;;  %6223 = vmax.xlane.f32.xlu0 %v13328_v60 }
 0xf38   : > { %v6188_v1 = vpop.f32.mrb[205].mxu1  ;;  %v13344_v34 = vadd.f32 %v9300_v35, %v14137_v53 }
 0xf39   : > { %v13336_v57 = vadd.f32 %v6188_v1, %v14138_v20  ;;  %v9301_v11 = vpop.f32.mrb[206].mxu1  ;;  %6225 = vmax.xlane.f32.xlu1 %v13332_v9 }
 0xf3a   : > { %v6191_v43 = vpop.f32.mrb[207].mxu1  ;;  %v13348_v4 = vadd.f32 %v9301_v11, %v14095_v37 }
 0xf3b   : > { %v13340_v56 = vadd.f32 %v6191_v43, %v14096_v3  ;;  %6227 = vmax.xlane.f32.xlu0 %v13336_v57 }
 0xf3d   : > { %6229 = vmax.xlane.f32.xlu1 %v13340_v56 }
 0xf3f   : > { %6231 = vmax.xlane.f32.xlu0 %v13344_v34 }
 0xf41   : > { %6233 = vmax.xlane.f32.xlu1 %v13348_v4 }
 0xfb0   : > { %v6204_v38 = vpop.xlane.xlu0 %6203 }
 0xfb1   : > { %v6235_v19 = vsub.f32 %v6141_v17, %v6204_v38 }
 0xfb2   : > { %v6206_v30 = vpop.xlane.xlu1 %6205 }
 0xfb3   : > { %v6251_v1 = vmul.f32 1.442695, %v6235_v19  ;;  %v6236_v43 = vsub.f32 %v6144_v54, %v6206_v30 }
 0xfb4   : > { %v6208_v32 = vpop.xlane.xlu0 %6207 }
 0xfb5   : > { %10629 = vpow2.f32 %v6251_v1  ;;  %v6253_v39 = vmul.f32 1.442695, %v6236_v43  ;;  %v6237_v3 = vsub.f32 %v6149_v28, %v6208_v32 }
 0xfb6   : > { %v6210_v35 = vpop.xlane.xlu1 %6209 }
 0xfb7   : > { %10631 = vpow2.f32 %v6253_v39  ;;  %v6255_v0 = vmul.f32 1.442695, %v6237_v3  ;;  %v6238_v50 = vsub.f32 %v6152_v15, %v6210_v35 }
 0xfb8   : > { %v6212_v20 = vpop.xlane.xlu0 %6211 }
 0xfb9   : > { %10633 = vpow2.f32 %v6255_v0  ;;  %v6257_v11 = vmul.f32 1.442695, %v6238_v50  ;;  %v6239_v37 = vsub.f32 %v6157_v44, %v6212_v20 }
 0xfba   : > { %v6214_v53 = vpop.xlane.xlu1 %6213 }
 0xfbb   : > { %10635 = vpow2.f32 %v6257_v11  ;;  %v6259_v12 = vmul.f32 1.442695, %v6239_v37  ;;  %v6240_v55 = vsub.f32 %v6160_v41, %v6214_v53 }
 0xfbc   : > { %v6216_v17 = vpop.xlane.xlu0 %6215 }
 0xfbd   : > { %10637 = vpow2.f32 %v6259_v12  ;;  %v6261_v38 = vmul.f32 1.442695, %v6240_v55  ;;  %v6241_v54 = vsub.f32 %v6165_v16, %v6216_v17 }
 0xfbe   : > { %v6218_v19 = vpop.xlane.xlu1 %6217 }
 0xfbf   : > { %v13352_v30 = vpop.eup %10629  ;;  %10639 = vpow2.f32 %v6261_v38  ;;  %v6263_v32 = vmul.f32 1.442695, %v6241_v54  ;;  %v6242_v39 = vsub.f32 %v6168_v22, %v6218_v19 }
 0xfc0   : > { %6283 = vadd.xlane.f32.xlu0 %v13352_v30  ;;  %v6220_v3 = vpop.xlane.xlu0 %6219 }
 0xfc1   : > { %v13355_v0 = vpop.eup %10631  ;;  %10641 = vpow2.f32 %v6263_v32  ;;  %v6265_v20 = vmul.f32 1.442695, %v6242_v39  ;;  %v6243_v37 = vsub.f32 %v13321_v29, %v6220_v3 }
 0xfc2   : > { %6285 = vadd.xlane.f32.xlu1 %v13355_v0  ;;  %v6222_v12 = vpop.xlane.xlu1 %6221 }
 0xfc3   : > { %v13359_v55 = vpop.eup %10633  ;;  %10643 = vpow2.f32 %v6265_v20  ;;  %v6267_v53 = vmul.f32 1.442695, %v6243_v37  ;;  %v6244_v50 = vsub.f32 %v13324_v27, %v6222_v12 }
 0xfc4   : > { %6287 = vadd.xlane.f32.xlu0 %v13359_v55  ;;  %v6224_v28 = vpop.xlane.xlu0 %6223 }
 0xfc5   : > { %v13363_v15 = vpop.eup %10635  ;;  %10645 = vpow2.f32 %v6267_v53  ;;  %v6269_v44 = vmul.f32 1.442695, %v6244_v50  ;;  %v6245_v41 = vsub.f32 %v13328_v60, %v6224_v28 }
 0xfc6   : > { %6289 = vadd.xlane.f32.xlu1 %v13363_v15  ;;  %v6226_v16 = vpop.xlane.xlu1 %6225 }
 0xfc7   : > { %v13367_v22 = vpop.eup %10637  ;;  %10647 = vpow2.f32 %v6269_v44  ;;  %v6271_v29 = vmul.f32 1.442695, %v6245_v41  ;;  %v6246_v1 = vsub.f32 %v13332_v9, %v6226_v16  ;;  %v10341_v41 = vld [vmem:[%s13940_s2 + $0x188] ss:$12 sps:$4 sm:$0xff]   ;;  %v10342_v16 = vld [vmem:[%s13940_s2 + $0x1a0] ss:$12 sps:$4 sm:$0xff]  }
 0xfc8   : > { %6291 = vadd.xlane.f32.xlu0 %v13367_v22  ;;  %v6228_v27 = vpop.xlane.xlu0 %6227  ;;  %9334 = vmatprep.subr.bf16.mxu1 %v10341_v41 }
 0xfc9   : > { %v13371_v43 = vpop.eup %10639  ;;  %10649 = vpow2.f32 %v6271_v29  ;;  %v6273_v35 = vmul.f32 1.442695, %v6246_v1  ;;  %v6247_v11 = vsub.f32 %v13336_v57, %v6228_v27  ;;  %9335 = vmatpush3.bf16.msra.mxu1 %v10341_v41  ;;  %v10343_v29 = vld [vmem:[%s13940_s2 + $0x1b8] ss:$12 sps:$4 sm:$0xff]   ;;  %v10344_v1 = vld [vmem:[%s13940_s2 + $0x1d0] ss:$12 sps:$4 sm:$0xff]  }
 0xfca   : > { %6293 = vadd.xlane.f32.xlu1 %v13371_v43  ;;  %v6230_v60 = vpop.xlane.xlu1 %6229  ;;  %9336 = vmatprep.subr.bf16.mxu1 %v10342_v16  ;;  %v10347_v27 = vld [vmem:[%s13940_s2 + $0x184] ss:$12 sps:$4 sm:$0xff]  }
 0xfcb   : > { %v13375_v17 = vpop.eup %10641  ;;  %10651 = vpow2.f32 %v6273_v35  ;;  %v6275_v38 = vmul.f32 1.442695, %v6247_v11  ;;  %v6248_v54 = vsub.f32 %v13340_v56, %v6230_v60  ;;  %6564 = vmatprep.subr.bf16.mxu0 %v10347_v27  ;;  %v10350_v11 = vld [vmem:[%s13940_s2 + $0x19c] ss:$12 sps:$4 sm:$0xff]  }
 0xfcc   : > { %6295 = vadd.xlane.f32.xlu0 %v13375_v17  ;;  %v6232_v9 = vpop.xlane.xlu0 %6231  ;;  %v10351_v41 = vld [vmem:[%s13940_s2 + $0x1b0] ss:$12 sps:$4 sm:$0xff]  }
 0xfcd   : > { %v13379_v19 = vpop.eup %10643  ;;  %10653 = vpow2.f32 %v6275_v38  ;;  %v6277_v32 = vmul.f32 1.442695, %v6248_v54  ;;  %v6249_v39 = vsub.f32 %v13344_v34, %v6232_v9  ;;  %9337 = vmatpush3.bf16.msra.mxu1 %v10342_v16  ;;  %v10348_v9 = vld [vmem:[%s13940_s2 + $0x198] ss:$12 sps:$4 sm:$0xff]  }
 0xfce   : > { %6297 = vadd.xlane.f32.xlu1 %v13379_v19  ;;  %v6234_v57 = vpop.xlane.xlu1 %6233  ;;  %9338 = vmatprep.subr.bf16.mxu1 %v10343_v29 }
 0xfcf   : > { %v13383_v3 = vpop.eup %10645  ;;  %10655 = vpow2.f32 %v6277_v32  ;;  %v6279_v20 = vmul.f32 1.442695, %v6249_v39  ;;  %v6250_v37 = vsub.f32 %v13348_v4, %v6234_v57  ;;  %v10353_v57 = vld [vmem:[%s13940_s2 + $0x1b4] ss:$12 sps:$4 sm:$0xff]  }
 0xfd0   : > { %6299 = vadd.xlane.f32.xlu0 %v13383_v3 }
 0xfd1   : > { %v13387_v56 = vpop.eup %10647  ;;  %10657 = vpow2.f32 %v6279_v20  ;;  %v6281_v12 = vmul.f32 1.442695, %v6250_v37  ;;  %9339 = vmatpush3.bf16.msra.mxu1 %v10343_v29 }
 0xfd2   : > { %6301 = vadd.xlane.f32.xlu1 %v13387_v56  ;;  %9340 = vmatprep.subr.bf16.mxu1 %v10344_v1 }
 0xfd3   : > { %v13390_v53 = vpop.eup %10649  ;;  %10659 = vpow2.f32 %v6281_v12 }
 0xfd4   : > { %6303 = vadd.xlane.f32.xlu0 %v13390_v53 }
 0xfd5   : > { %v13393_v34 = vpop.eup %10651  ;;  %9341 = vmatpush3.bf16.msra.mxu1 %v10344_v1  ;;  %v10356_v1 = vld [vmem:[%s13940_s2 + $0x1cc] ss:$12 sps:$4 sm:$0xff]  }
 0xfd6   : > { %6305 = vadd.xlane.f32.xlu1 %v13393_v34 }
 0xfd7   : > { %v13396_v50 = vpop.eup %10653 }
 0xfd8   : > { %6307 = vadd.xlane.f32.xlu0 %v13396_v50 }
 0xfd9   : > { %v13399_v4 = vpop.eup %10655 }
 0xfda   : > { %6309 = vadd.xlane.f32.xlu1 %v13399_v4 }
 0xfdb   : > { %v13402_v28 = vpop.eup %10657 }
 0xfdc   : > { %6311 = vadd.xlane.f32.xlu0 %v13402_v28 }
 0xfdd   : > { %v13405_v44 = vpop.eup %10659 }
 0xfde   : > { %6313 = vadd.xlane.f32.xlu1 %v13405_v44 }
 0xfef   : > { %6856 = vrot.lane.b32.xlu1 %v14146_v25, %s10862_s11 }
 0xff2   : > { %6854 = vrot.lane.b32.xlu0 %v14133_v26, %s10862_s11 }
 0xff3   : > { %6858 = vrot.lane.b32.xlu1 %v14149_v58, %s10862_s11 }
 0xff6   : > { %6862 = vrot.lane.b32.xlu0 %v14155_v33, %s10862_s11 }
 0xff7   : > { %6860 = vrot.lane.b32.xlu1 %v14152_v48, %s10862_s11 }
 0xffa   : > { %6866 = vrot.lane.b32.xlu0 %v14157_v23, %s10862_s11 }
 0xffb   : > { %6864 = vrot.lane.b32.xlu1 %v14156_v31, %s10862_s11 }
 0xffe   : > { %6830 = vrot.lane.b32.xlu0 %v14159_v8, %s10862_s11 }
 0xfff   : > { %6868 = vrot.lane.b32.xlu1 %v14158_v36, %s10862_s11 }
0x1002   : > { %6834 = vrot.lane.b32.xlu0 %v14161_v47, %s10862_s11 }
0x1003   : > { %6832 = vrot.lane.b32.xlu1 %v14160_v10, %s10862_s11 }
0x1006   : > { %6838 = vrot.lane.b32.xlu0 %v14163_v13, %s10862_s11 }
0x1007   : > { %6836 = vrot.lane.b32.xlu1 %v14162_v24, %s10862_s11 }
0x100a   : > { %6842 = vrot.lane.b32.xlu0 %v14165_v18, %s10862_s11 }
0x100b   : > { %6840 = vrot.lane.b32.xlu1 %v14164_v49, %s10862_s11 }
0x100e   : > { %7175 = vrot.lane.b32.xlu0 %v14144_v21, %s10862_s11 }
0x100f   : > { %6844 = vrot.lane.b32.xlu1 %v14166_v14, %s10862_s11 }
0x1012   : > { %7179 = vrot.lane.b32.xlu0 %v14147_v7, %s10862_s11 }
0x1013   : > { %7177 = vrot.lane.b32.xlu1 %v14145_v59, %s10862_s11 }
0x1016   : > { %7181 = vrot.lane.b32.xlu0 %v14148_v61, %s10862_s11 }
0x104d   : > { %v6284_v26 = vpop.xlane.xlu0 %6283 }
0x104e   : > { %10661 = vrcp.f32 %v6284_v26 }
0x104f   : > { %v6286_v25 = vpop.xlane.xlu1 %6285 }
0x1050   : > { %10663 = vrcp.f32 %v6286_v25 }
0x1051   : > { %v6288_v58 = vpop.xlane.xlu0 %6287 }
0x1052   : > { %10665 = vrcp.f32 %v6288_v58  ;;  %v10354_v58 = vld [vmem:[%s13940_s2 + $0x1c8] ss:$12 sps:$4 sm:$0xff]  }
0x1053   : > { %v6290_v48 = vpop.xlane.xlu1 %6289 }
0x1054   : > { %10667 = vrcp.f32 %v6290_v48 }
0x1055   : > { %v6292_v21 = vpop.xlane.xlu0 %6291 }
0x1056   : > { %10669 = vrcp.f32 %v6292_v21 }
0x1057   : > { %v6294_v33 = vpop.xlane.xlu1 %6293 }
0x1058   : > { %v10662_v31 = vpop.eup %10661  ;;  %10671 = vrcp.f32 %v6294_v33 }
0x1059   : > { %v6296_v7 = vpop.xlane.xlu0 %6295  ;;  %v6331_v36 = vmul.f32 %v10662_v31, %v13352_v30  ;;  %v10345_v30 = vld [vmem:[%s13940_s2 + $0x180] ss:$12 sps:$4 sm:$0xff]  }
0x105a   : > { %v10664_v23 = vpop.eup %10663  ;;  %10673 = vrcp.f32 %v6296_v7 }
0x105b   : > { %v6298_v59 = vpop.xlane.xlu1 %6297  ;;  %v6332_v61 = vmul.f32 %v10664_v23, %v13355_v0 }
0x105c   : > { %v10666_v8 = vpop.eup %10665  ;;  %10675 = vrcp.f32 %v6298_v59 }
0x105d   : > { %v6300_v10 = vpop.xlane.xlu0 %6299  ;;  %v6347_v47 = vpack.c.bf16 %v6332_v61, %v6331_v36  ;;  %v6333_v13 = vmul.f32 %v10666_v8, %v13359_v55 }
0x105e   : > { %v10668_v24 = vpop.eup %10667  ;;  %10677 = vrcp.f32 %v6300_v10 }
0x105f   : > { %v6334_v49 = vmul.f32 %v10668_v24, %v13363_v15  ;;  %v6302_v18 = vpop.xlane.xlu1 %6301  ;;  %9318 = vmatprep.mubr.bf16.mxu0 %v6347_v47 }
0x1060   : > { %v10670_v14 = vpop.eup %10669  ;;  %10679 = vrcp.f32 %v6302_v18 }
0x1061   : > { %v6304_v35 = vpop.xlane.xlu0 %6303  ;;  %v6348_v0 = vpack.c.bf16 %v6334_v49, %v6333_v13  ;;  %v6335_v55 = vmul.f32 %v10670_v14, %v13367_v22 }
0x1062   : > { %v10672_v60 = vpop.eup %10671  ;;  %10681 = vrcp.f32 %v6304_v35 }
0x1063   : > { %v6306_v38 = vpop.xlane.xlu1 %6305  ;;  %9319 = vmatmul.mubr.bf16.vlgmr.msra.gmra.mrb[200].mxu0 %v6348_v0  ;;  %v6336_v15 = vmul.f32 %v10672_v60, %v13371_v43 }
0x1064   : > { %v10674_v54 = vpop.eup %10673  ;;  %10683 = vrcp.f32 %v6306_v38  ;;  %6565 = vmatpush1.bf16.msra.mxu0 %v10345_v30 }
0x1065   : > { %v6308_v32 = vpop.xlane.xlu0 %6307  ;;  %v6349_v39 = vpack.c.bf16 %v6336_v15, %v6335_v55  ;;  %6566 = vmatprep.subr.bf16.mxu0 %v10350_v11  ;;  %v6337_v22 = vmul.f32 %v10674_v54, %v13375_v17 }
0x1066   : > { %v10676_v20 = vpop.eup %10675  ;;  %10685 = vrcp.f32 %v6308_v32 }
0x1067   : > { %v6310_v37 = vpop.xlane.xlu1 %6309  ;;  %9322 = vmatprep.mubr.bf16.mxu0 %v6349_v39  ;;  %v6338_v43 = vmul.f32 %v10676_v20, %v13379_v19 }
0x1068   : > { %v10678_v12 = vpop.eup %10677  ;;  %10687 = vrcp.f32 %v6310_v37  ;;  %6567 = vmatpush1.bf16.msra.mxu0 %v10348_v9 }
0x1069   : > { %v6312_v16 = vpop.xlane.xlu0 %6311  ;;  %v6350_v29 = vpack.c.bf16 %v6338_v43, %v6337_v22  ;;  %6568 = vmatprep.subr.bf16.mxu0 %v10353_v57  ;;  %v6339_v17 = vmul.f32 %v10678_v12, %v13383_v3 }
0x106a   : > { %v10680_v27 = vpop.eup %10679  ;;  %10689 = vrcp.f32 %v6312_v16 }
0x106b   : > { %v6314_v26 = vpop.xlane.xlu1 %6313  ;;  %9323 = vmatmul.mubr.bf16.gmra.mrb[204].mxu0 %v6350_v29  ;;  %v6340_v19 = vmul.f32 %v10680_v27, %v13387_v56 }
0x106c   : > { %v10682_v25 = vpop.eup %10681  ;;  %10691 = vrcp.f32 %v6314_v26  ;;  %6569 = vmatpush1.bf16.msra.mxu0 %v10351_v41 }
0x106d   : > { %v6855_v48 = vpop.permute.xlu0 %6854  ;;  %v6351_v21 = vpack.c.bf16 %v6340_v19, %v6339_v17  ;;  %6570 = vmatprep.subr.bf16.mxu0 %v10356_v1  ;;  %v6341_v31 = vmul.f32 %v10682_v25, %v13390_v53 }
0x106e   : > { %v10684_v33 = vpop.eup %10683  ;;  %9862 = vmatprep.subr.msk.bf16.mxu1 %vm2937_vm0, %v6855_v48  ;;  %v6895_v20 = vsel %vm2937_vm0, %v6855_v48, 0 }
0x106f   : > { %9326 = vmatprep.mubr.bf16.mxu0 %v6351_v21  ;;  %v6342_v3 = vmul.f32 %v10684_v33, %v13393_v34  ;;  %v6857_v30 = vpop.permute.xlu1 %6856 }
0x1070   : > { %v10686_v7 = vpop.eup %10685  ;;  %6571 = vmatpush1.bf16.msra.mxu0 %v10354_v58  ;;  %v6898_v27 = vsel %vm2937_vm0, %v6857_v30, 0 }
0x1071   : > { %v13497_v56 = vpop.permute.xlu0 %6862  ;;  %v6352_v23 = vpack.c.bf16 %v6342_v3, %v6341_v31  ;;  %v6343_v36 = vmul.f32 %v10686_v7, %v13396_v50 }
0x1072   : > { %v10688_v59 = vpop.eup %10687 }
0x1073   : > { %9327 = vmatmul.mubr.bf16.gmra.mrb[208].mxu0 %v6352_v23  ;;  %v6344_v61 = vmul.f32 %v10688_v59, %v13399_v4  ;;  %v6859_v35 = vpop.permute.xlu1 %6858 }
0x1074   : > { %v10690_v8 = vpop.eup %10689  ;;  %v6901_v33 = vsel %vm2937_vm0, %v6859_v35, 0 }
0x1075   : > { %v13501_v10 = vpop.permute.xlu0 %6866  ;;  %v6353_v47 = vpack.c.bf16 %v6344_v61, %v6343_v36  ;;  %v6345_v53 = vmul.f32 %v10690_v8, %v13402_v28  ;;  %v6907_v8 = vsel %vm2937_vm0, %v13497_v56, 0 }
0x1076   : > { %v10692_v24 = vpop.eup %10691 }
0x1077   : > { %9330 = vmatprep.mubr.bf16.mxu0 %v6353_v47  ;;  %v6346_v34 = vmul.f32 %v10692_v24, %v13405_v44  ;;  %v13514_v0 = vpop.permute.xlu1 %6860 }
0x1078   : > { %v6904_v61 = vsel %vm2937_vm0, %v13514_v0, 0 }
0x1079   : > { %v13505_v13 = vpop.permute.xlu0 %6830  ;;  %v6354_v49 = vpack.c.bf16 %v6346_v34, %v6345_v53 }
0x107b   : > { %9331 = vmatmul.mubr.bf16.gmra.mrb[212].mxu0 %v6354_v49  ;;  %v13516_v28 = vpop.permute.xlu1 %6864 }
0x107c   : > { %6596 = vmatprep.mubr.bf16.mxu0 %v14100_v63  ;;  %v6910_v47 = vsel %vm2937_vm0, %v13516_v28, 0 }
0x107d   : > { %v13508_v18 = vpop.permute.xlu0 %6834 }
0x107f   : > { %v13518_v44 = vpop.permute.xlu1 %6868 }
0x1080   : > { %v6916_v24 = vsel %vm2937_vm0, %v13518_v44, 0 }
0x1081   : > { %v13510_v50 = vpop.permute.xlu0 %6838 }
0x1083   : > { %v13520_v11 = vpop.permute.xlu1 %6832 }
0x1085   : > { %v13512_v4 = vpop.permute.xlu0 %6842 }
0x1087   : > { %v13522_v60 = vpop.permute.xlu1 %6836 }
0x1089   : > { %v7176_v14 = vpop.permute.xlu0 %7175 }
0x108a   : > { %9390 = vmatprep.subr.bf16.mxu0 %v7176_v14 }
0x108b   : > { %v13524_v38 = vpop.permute.xlu1 %6840 }
0x108d   : > { %v7180_v43 = vpop.permute.xlu0 %7179 }
0x108f   : > { %v13526_v15 = vpop.permute.xlu1 %6844 }
0x1091   : > { %v7182_v26 = vpop.permute.xlu0 %7181 }
0x1093   : > { %v7178_v37 = vpop.permute.xlu1 %7177 }
0x1136   : > { %v9320_v55 = vpop.f32.mrb[200].mxu0 }
0x1137   : > { %v6389_v54 = vpop.f32.mrb[201].mxu0 }
0x1138   : > { %v9321_v9 = vpop.f32.mrb[202].mxu0 }
0x1139   : > { %v6453_v32 = vpack.c.bf16 %v9321_v9, %v9320_v55  ;;  %v6392_v39 = vpop.f32.mrb[203].mxu0  ;;  %v14168_v55 = vld [vmem:[#allocation61_spill] sm:$0xff] }
0x113a   : > { %v6452_v57 = vpack.c.bf16 %v6392_v39, %v6389_v54  ;;  %v14170_v39 = vld [vmem:[#allocation64_spill] sm:$0xff] }
0x113c   : > { %8423 = vmatmul.mubr.msk.bf16.vlgmr.msra.gmra.mrb[128].mxu0 %vm2937_vm0, %v6452_v57  ;;  %9342 = vmatprep.mubr.msk.bf16.mxu1 %vm2937_vm0, %v6452_v57 }
0x113d   : > { %9391 = vmatpush3.bf16.msra.mxu0 %v7176_v14  ;;  %9343 = vmatmul.mubr.msk.bf16.vlgmr.msra.gmra.mrb[152].mxu1 %vm2937_vm0, %v6453_v32 }
0x113e   : > { %9359 = vmatpush3.bf16.xpose.msra.mxu1 %v6895_v20  ;;  %9392 = vmatprep.subr.bf16.mxu0 %v7178_v37  ;;  %v9324_v22 = vpop.f32.mrb[204].mxu0  ;;  %v14171_v20 = vld [vmem:[#allocation54_spill] sm:$0xff] }
0x113f   : > { %9863 = vmatprep.subr.msk.bf16.mxu1 %vm2937_vm0, %v6857_v30  ;;  %v6405_v12 = vpop.f32.mrb[205].mxu0  ;;  %6606 = vmatprep.mubr.bf16.mxu0 %v14100_v63 }
0x1140   : > { %v9325_v41 = vpop.f32.mrb[206].mxu0 }
0x1141   : > { %v6455_v16 = vpack.c.bf16 %v9325_v41, %v9324_v22  ;;  %9393 = vmatpush3.bf16.msra.mxu0 %v7178_v37  ;;  %v6408_v29 = vpop.f32.mrb[207].mxu0  ;;  %v14172_v37 = vld [vmem:[#allocation55_spill] sm:$0xff]  ;;  %v14173_v22 = vld [vmem:[#allocation65_spill] sm:$0xff] }
0x1142   : > { %v6454_v1 = vpack.c.bf16 %v6408_v29, %v6405_v12  ;;  %9394 = vmatprep.subr.bf16.mxu0 %v7180_v43  ;;  %v14174_v12 = vld [vmem:[#allocation66_spill] sm:$0xff] }
0x1144   : > { %8424 = vmatmul.mubr.msk.bf16.gmra.mrb[132].mxu0 %vm2937_vm0, %v6453_v32  ;;  %9346 = vmatprep.mubr.msk.bf16.mxu1 %vm2937_vm0, %v6454_v1 }
0x1145   : > { %9395 = vmatpush3.bf16.msra.mxu0 %v7180_v43  ;;  %9347 = vmatmul.mubr.msk.bf16.gmra.mrb[156].mxu1 %vm2937_vm0, %v6455_v16 }
0x1146   : > { %9361 = vmatpush3.bf16.xpose.msra.mxu1 %v6898_v27  ;;  %9396 = vmatprep.subr.bf16.mxu0 %v7182_v26  ;;  %v9328_v17 = vpop.f32.mrb[208].mxu0 }
0x1147   : > { %9864 = vmatprep.subr.msk.bf16.mxu1 %vm2937_vm0, %v6859_v35  ;;  %v6421_v19 = vpop.f32.mrb[209].mxu0  ;;  %6616 = vmatprep.mubr.bf16.mxu0 %v14100_v63 }
0x1148   : > { %v9329_v25 = vpop.f32.mrb[210].mxu0 }
0x1149   : > { %v6457_v58 = vpack.c.bf16 %v9329_v25, %v9328_v17  ;;  %9397 = vmatpush3.bf16.msra.mxu0 %v7182_v26  ;;  %v6424_v48 = vpop.f32.mrb[211].mxu0 }
0x114a   : > { %v6456_v21 = vpack.c.bf16 %v6424_v48, %v6421_v19 }
0x114c   : > { %8425 = vmatmul.mubr.msk.bf16.gmra.mrb[136].mxu0 %vm2937_vm0, %v6454_v1  ;;  %9350 = vmatprep.mubr.msk.bf16.mxu1 %vm2937_vm0, %v6456_v21 }
0x114d   : > { %9351 = vmatmul.mubr.msk.bf16.gmra.mrb[144].mxu1 %vm2937_vm0, %v6457_v58  ;;  %6626 = vmatprep.mubr.bf16.mxu0 %v14100_v63 }
0x114e   : > { %9363 = vmatpush3.bf16.xpose.msra.mxu1 %v6901_v33  ;;  %v9332_v31 = vpop.f32.mrb[212].mxu0 }
0x114f   : > { %9865 = vmatprep.subr.msk.bf16.mxu1 %vm2937_vm0, %v13514_v0  ;;  %v6437_v3 = vpop.f32.mrb[213].mxu0 }
0x1150   : > { %v9333_v7 = vpop.f32.mrb[214].mxu0 }
0x1151   : > { %v6459_v23 = vpack.c.bf16 %v9333_v7, %v9332_v31  ;;  %v6440_v59 = vpop.f32.mrb[215].mxu0 }
0x1152   : > { %v6458_v36 = vpack.c.bf16 %v6440_v59, %v6437_v3 }
0x1154   : > { %8426 = vmatmul.mubr.msk.bf16.gmra.mrb[140].mxu0 %vm2937_vm0, %v6455_v16  ;;  %9354 = vmatprep.mubr.msk.bf16.mxu1 %vm2937_vm0, %v6458_v36 }
0x1155   : > { %9355 = vmatmul.mubr.msk.bf16.gmra.mrb[148].mxu1 %vm2937_vm0, %v6459_v23  ;;  %6636 = vmatprep.mubr.bf16.mxu0 %v14100_v63 }
0x1156   : > { %9365 = vmatpush3.bf16.xpose.msra.mxu1 %v6904_v61  ;;  %9374 = vmatprep.mubr.msk.bf16.mxu1 %vm2937_vm0, %v13505_v13 }
0x1157   : > { %9866 = vmatprep.subr.msk.bf16.mxu1 %vm2937_vm0, %v13497_v56  ;;  %v6913_v56 = vsel %vm2937_vm0, %v13501_v10, 0 }
0x115c   : > { %8427 = vmatmul.mubr.msk.bf16.gmra.mrb[144].mxu0 %vm2937_vm0, %v6456_v21 }
0x115d   : > { %6646 = vmatprep.mubr.bf16.mxu0 %v14100_v63 }
0x115e   : > { %9367 = vmatpush3.bf16.xpose.msra.mxu1 %v6907_v8 }
0x115f   : > { %9867 = vmatprep.subr.msk.bf16.mxu1 %vm2937_vm0, %v13516_v28 }
0x1164   : > { %8428 = vmatmul.mubr.msk.bf16.gmra.mrb[148].mxu0 %vm2937_vm0, %v6457_v58 }
0x1165   : > { %6656 = vmatprep.mubr.bf16.mxu0 %v14100_v63 }
0x1166   : > { %9369 = vmatpush3.bf16.xpose.msra.mxu1 %v6910_v47 }
0x1167   : > { %9868 = vmatprep.subr.msk.bf16.mxu1 %vm2937_vm0, %v13501_v10 }
0x116c   : > { %8429 = vmatmul.mubr.msk.bf16.gmra.mrb[152].mxu0 %vm2937_vm0, %v6458_v36 }
0x116d   : > { %6666 = vmatprep.mubr.bf16.mxu0 %v14100_v63 }
0x116e   : > { %9371 = vmatpush3.bf16.xpose.msra.mxu1 %v6913_v56 }
0x116f   : > { %9869 = vmatprep.subr.msk.bf16.mxu1 %vm2937_vm0, %v13518_v44 }
0x1174   : > { %8430 = vmatmul.mubr.msk.bf16.gmra.mrb[156].mxu0 %vm2937_vm0, %v6459_v23 }
0x1176   : > { %9373 = vmatpush3.bf16.xpose.msra.mxu1 %v6916_v24 }
0x117d   : > { %9375 = vmatmul.mubr.msk.bf16.vlgmr.msra.gmra.mrb[208].mxu1 %vm2937_vm0, %v13520_v11 }
0x117e   : > { %9378 = vmatprep.mubr.msk.bf16.mxu1 %vm2937_vm0, %v13508_v18 }
0x1185   : > { %9379 = vmatmul.mubr.msk.bf16.gmra.mrb[212].mxu1 %vm2937_vm0, %v13522_v60 }
0x1186   : > { %9382 = vmatprep.mubr.msk.bf16.mxu1 %vm2937_vm0, %v13510_v50 }
0x118d   : > { %9383 = vmatmul.mubr.msk.bf16.gmra.mrb[216].mxu1 %vm2937_vm0, %v13524_v38 }
0x118e   : > { %9386 = vmatprep.mubr.msk.bf16.mxu1 %vm2937_vm0, %v13512_v4 }
0x1195   : > { %9387 = vmatmul.mubr.msk.bf16.gmra.mrb[220].mxu1 %vm2937_vm0, %v13526_v15 }
0x1250   : > { %v9376_v10 = vpop.f32.mrb[208].mxu1 }
0x1251   : > { %v6961_v53 = vadd.f32 %v9376_v10, %v12171_v42  ;;  %v6952_v34 = vpop.f32.mrb[209].mxu1 }
0x1252   : > { %v9377_v13 = vpop.f32.mrb[210].mxu1  ;;  %v6953_v50 = vadd.f32 %v6952_v34, %v12174_v45 }
0x1253   : > { %7019 = vmax.xlane.f32.xlu0 %v6961_v53  ;;  %v6955_v49 = vpop.f32.mrb[211].mxu1  ;;  %v6964_v30 = vadd.f32 %v9377_v13, %v12187_v6 }
0x1254   : > { %v6956_v18 = vadd.f32 %v6955_v49, %v12191_v51 }
0x1256   : > { %7017 = vmax.xlane.f32.xlu1 %v6956_v18 }
0x1257   : > { %7015 = vmax.xlane.f32.xlu0 %v6953_v50 }
0x1258   : > { %v9380_v14 = vpop.f32.mrb[212].mxu1 }
0x1259   : > { %v6968_v4 = vpop.f32.mrb[213].mxu1  ;;  %v6977_v42 = vadd.f32 %v9380_v14, %v12205_v2  ;;  %v14167_v2 = vld [vmem:[#allocation62_spill] sm:$0xff] }
0x125a   : > { %v9381_v35 = vpop.f32.mrb[214].mxu1  ;;  %v6969_v45 = vadd.f32 %v6968_v4, %v14134_v62 }
0x125b   : > { %v6980_v0 = vadd.f32 %v9381_v35, %v12212_v52  ;;  %v6971_v28 = vpop.f32.mrb[215].mxu1  ;;  %7021 = vmax.xlane.f32.xlu0 %v6964_v30 }
0x125c   : > { %v13599_v44 = vadd.f32 %v6971_v28, %v12227_v46 }
0x125d   : > { %7029 = vmax.xlane.f32.xlu1 %v6980_v0 }
0x125f   : > { %7027 = vmax.xlane.f32.xlu0 %v6977_v42 }
0x1260   : > { %v9384_v51 = vpop.f32.mrb[216].mxu1 }
0x1261   : > { %v6984_v11 = vpop.f32.mrb[217].mxu1  ;;  %7025 = vmax.xlane.f32.xlu1 %v13599_v44  ;;  %v13607_v38 = vadd.f32 %v9384_v51, %v14135_v5  ;;  %v14169_v5 = vld [vmem:[#allocation63_spill] sm:$0xff] }
0x1262   : > { %v9385_v6 = vpop.f32.mrb[218].mxu1  ;;  %v13615_v15 = vadd.f32 %v6984_v11, %v14168_v55  ;;  %v14175_v11 = vld [vmem:[#allocation56_spill] sm:$0xff] }
0x1263   : > { %v13604_v60 = vadd.f32 %v9385_v6, %v12247_v40  ;;  %v6987_v52 = vpop.f32.mrb[219].mxu1  ;;  %7023 = vmax.xlane.f32.xlu0 %v6969_v45  ;;  %v14176_v6 = vld [vmem:[#allocation57_spill] sm:$0xff] }
0x1264   : > { %v13611_v46 = vadd.f32 %v6987_v52, %v14167_v2 }
0x1265   : > { %7037 = vmax.xlane.f32.xlu1 %v13604_v60 }
0x1267   : > { %7035 = vmax.xlane.f32.xlu0 %v13607_v38 }
0x1268   : > { %v9388_v62 = vpop.f32.mrb[220].mxu1 }
0x1269   : > { %v7000_v54 = vpop.f32.mrb[221].mxu1  ;;  %7033 = vmax.xlane.f32.xlu1 %v13611_v46  ;;  %v13620_v32 = vadd.f32 %v9388_v62, %v14169_v5 }
0x126a   : > { %v9389_v40 = vpop.f32.mrb[222].mxu1  ;;  %v13624_v57 = vadd.f32 %v7000_v54, %v14170_v39 }
0x126b   : > { %v7003_v9 = vpop.f32.mrb[223].mxu1  ;;  %7031 = vmax.xlane.f32.xlu0 %v13615_v15  ;;  %v13632_v43 = vadd.f32 %v9389_v40, %v14173_v22 }
0x126c   : > { %v13636_v41 = vadd.f32 %v7003_v9, %v14174_v12 }
0x126f   : > { %7043 = vmax.xlane.f32.xlu0 %v13620_v32 }
0x1273   : > { %7039 = vmax.xlane.f32.xlu0 %v13624_v57 }
0x127a   : > { %7185 = vrot.lane.b32.xlu1 %v14171_v20, %s10862_s11 }
0x1289   : > { %7183 = vrot.lane.b32.xlu0 %v14172_v37, %s10862_s11 }
0x129e   : > { %7045 = vmax.xlane.f32.xlu1 %v13632_v43 }
0x12a2   : > { %7041 = vmax.xlane.f32.xlu1 %v13636_v41 }
0x12e0   : > { %v7020_v16 = vpop.xlane.xlu0 %7019 }
0x12e1   : > { %v7049_v29 = vsub.f32 %v6961_v53, %v7020_v16 }
0x12e3   : > { %v7067_v1 = vmul.f32 1.442695, %v7049_v29  ;;  %v7018_v26 = vpop.xlane.xlu1 %7017 }
0x12e4   : > { %v7016_v27 = vpop.xlane.xlu0 %7015  ;;  %v7048_v25 = vsub.f32 %v6956_v18, %v7018_v26 }
0x12e5   : > { %10693 = vpow2.f32 %v7067_v1  ;;  %v7047_v17 = vsub.f32 %v6953_v50, %v7016_v27 }
0x12e6   : > { %v7065_v31 = vmul.f32 1.442695, %v7048_v25  ;;  %v10368_v25 = vld [vmem:[%s13940_s2 + $0x218] ss:$12 sps:$4 sm:$0xff]  }
0x12e7   : > { %v7063_v19 = vmul.f32 1.442695, %v7047_v17  ;;  %v10360_v17 = vld [vmem:[%s13940_s2 + $0x1e8] ss:$12 sps:$4 sm:$0xff]  }
0x12e8   : > { %v7022_v58 = vpop.xlane.xlu0 %7021  ;;  %9422 = vmatprep.subr.bf16.mxu1 %v10360_v17 }
0x12e9   : > { %10695 = vpow2.f32 %v7063_v19  ;;  %v7050_v48 = vsub.f32 %v6964_v30, %v7022_v58  ;;  %v10364_v19 = vld [vmem:[%s13940_s2 + $0x200] ss:$12 sps:$4 sm:$0xff]   ;;  %9423 = vmatpush3.bf16.msra.mxu1 %v10360_v17 }
0x12ea   : > { %v7030_v21 = vpop.xlane.xlu1 %7029  ;;  %9424 = vmatprep.subr.bf16.mxu1 %v10364_v19 }
0x12eb   : > { %v7069_v33 = vmul.f32 1.442695, %v7050_v48  ;;  %v7054_v3 = vsub.f32 %v6980_v0, %v7030_v21 }
0x12ec   : > { %v7028_v7 = vpop.xlane.xlu0 %7027 }
0x12ed   : > { %10697 = vpow2.f32 %v7069_v33  ;;  %v7053_v23 = vsub.f32 %v6977_v42, %v7028_v7  ;;  %v7077_v8 = vmul.f32 1.442695, %v7054_v3  ;;  %9425 = vmatpush3.bf16.msra.mxu1 %v10364_v19 }
0x12ee   : > { %v7026_v59 = vpop.xlane.xlu1 %7025  ;;  %10699 = vpow2.f32 %v7065_v31  ;;  %9426 = vmatprep.subr.bf16.mxu1 %v10368_v25 }
0x12ef   : > { %v13639_v36 = vpop.eup %10693  ;;  %v7075_v61 = vmul.f32 1.442695, %v7053_v23  ;;  %v7052_v56 = vsub.f32 %v13599_v44, %v7026_v59 }
0x12f0   : > { %7099 = vadd.xlane.f32.xlu1 %v13639_v36  ;;  %v7024_v47 = vpop.xlane.xlu0 %7023 }
0x12f1   : > { %10701 = vpow2.f32 %v7075_v61  ;;  %v7051_v24 = vsub.f32 %v6969_v45, %v7024_v47  ;;  %v7073_v13 = vmul.f32 1.442695, %v7052_v56  ;;  %9427 = vmatpush3.bf16.msra.mxu1 %v10368_v25 }
0x12f2   : > { %10703 = vpow2.f32 %v7077_v8  ;;  %v7038_v14 = vpop.xlane.xlu1 %7037 }
0x12f3   : > { %v13643_v10 = vpop.eup %10695  ;;  %v7071_v53 = vmul.f32 1.442695, %v7051_v24  ;;  %v7058_v2 = vsub.f32 %v13604_v60, %v7038_v14  ;;  %v10359_v14 = vld [vmem:[%s13940_s2 + $0x1e4] ss:$12 sps:$4 sm:$0xff]  }
0x12f4   : > { %7095 = vadd.xlane.f32.xlu1 %v13643_v10  ;;  %v7036_v34 = vpop.xlane.xlu0 %7035 }
0x12f5   : > { %10705 = vpow2.f32 %v7071_v53  ;;  %v7085_v54 = vmul.f32 1.442695, %v7058_v2  ;;  %v7057_v40 = vsub.f32 %v13607_v38, %v7036_v34 }
0x12f6   : > { %10707 = vpow2.f32 %v7073_v13  ;;  %v7034_v28 = vpop.xlane.xlu1 %7033 }
0x12f7   : > { %v13646_v49 = vpop.eup %10697  ;;  %v7056_v62 = vsub.f32 %v13611_v46, %v7034_v28  ;;  %v7083_v39 = vmul.f32 1.442695, %v7057_v40 }
0x12f8   : > { %7101 = vadd.xlane.f32.xlu1 %v13646_v49  ;;  %v7032_v18 = vpop.xlane.xlu0 %7031  ;;  %v13649_v50 = vpop.eup %10699 }
0x12f9   : > { %v7055_v52 = vsub.f32 %v13615_v15, %v7032_v18  ;;  %v7081_v9 = vmul.f32 1.442695, %v7056_v62  ;;  %v10367_v62 = vld [vmem:[%s13940_s2 + $0x214] ss:$12 sps:$4 sm:$0xff]  }
0x12fa   : > { %v7186_v45 = vpop.permute.xlu1 %7185 }
0x12fb   : > { %v13651_v30 = vpop.eup %10701  ;;  %v7079_v55 = vmul.f32 1.442695, %v7055_v52  ;;  %v10361_v52 = vld [vmem:[%s13940_s2 + $0x1f8] ss:$12 sps:$4 sm:$0xff]  }
0x12fc   : > { %7097 = vadd.xlane.f32.xlu1 %v13649_v50  ;;  %7107 = vadd.xlane.f32.xlu0 %v13651_v30  ;;  %v7044_v4 = vpop.xlane.xlu0 %7043  ;;  %v13655_v35 = vpop.eup %10703 }
0x12fd   : > { %10709 = vpow2.f32 %v7079_v55  ;;  %v7061_v60 = vsub.f32 %v13620_v32, %v7044_v4 }
0x12fe   : > { %10711 = vpow2.f32 %v7085_v54 }
0x12ff   : > { %v13657_v0 = vpop.eup %10705  ;;  %10713 = vpow2.f32 %v7081_v9  ;;  %v7091_v29 = vmul.f32 1.442695, %v7061_v60 }
0x1300   : > { %7109 = vadd.xlane.f32.xlu0 %v13655_v35  ;;  %7103 = vadd.xlane.f32.xlu1 %v13657_v0  ;;  %v7040_v42 = vpop.xlane.xlu0 %7039  ;;  %v13661_v44 = vpop.eup %10707  ;;  %10715 = vpow2.f32 %v7083_v39 }
0x1301   : > { %v7059_v20 = vsub.f32 %v13624_v57, %v7040_v42 }
0x1303   : > { %v7087_v46 = vmul.f32 1.442695, %v7059_v20 }
0x1304   : > { %7105 = vadd.xlane.f32.xlu0 %v13661_v44  ;;  %v7184_v51 = vpop.permute.xlu0 %7183 }
0x1305   : > { %9398 = vmatprep.subr.bf16.mxu0 %v7184_v51 }
0x1306   : > { %9399 = vmatpush3.bf16.msra.mxu0 %v7184_v51 }
0x1307   : > { %9400 = vmatprep.subr.bf16.mxu0 %v7186_v45  ;;  %v13676_v16 = vpop.eup %10709 }
0x1308   : > { %v13679_v1 = vpop.eup %10711 }
0x1309   : > { %v13681_v57 = vpop.eup %10713 }
0x130a   : > { %9401 = vmatpush3.bf16.msra.mxu0 %v7186_v45  ;;  %v13685_v32 = vpop.eup %10715 }
0x1311   : > { %7189 = vrot.lane.b32.xlu1 %v14175_v11, %s10862_s11 }
0x131a   : > { %7187 = vrot.lane.b32.xlu0 %v14176_v6, %s10862_s11 }
0x132b   : > { %v7046_v5 = vpop.xlane.xlu1 %7045 }
0x132c   : > { %v7062_v22 = vsub.f32 %v13632_v43, %v7046_v5 }
0x132e   : > { %v7093_v38 = vmul.f32 1.442695, %v7062_v22 }
0x132f   : > { %v7042_v37 = vpop.xlane.xlu1 %7041 }
0x1330   : > { %v7060_v15 = vsub.f32 %v13636_v41, %v7042_v37 }
0x1332   : > { %v7089_v12 = vmul.f32 1.442695, %v7060_v15 }
0x1334   : > { %10717 = vpow2.f32 %v7089_v12 }
0x1335   : > { %7111 = vadd.xlane.f32.xlu1 %v13676_v16  ;;  %10719 = vpow2.f32 %v7087_v46 }
0x1336   : > { %10721 = vpow2.f32 %v7093_v38 }
0x1337   : > { %10723 = vpow2.f32 %v7091_v29 }
0x1339   : > { %7113 = vadd.xlane.f32.xlu0 %v13681_v57  ;;  %7117 = vadd.xlane.f32.xlu1 %v13679_v1 }
0x133d   : > { %7115 = vadd.xlane.f32.xlu0 %v13685_v32 }
0x133e   : > { %v13688_v43 = vpop.eup %10717 }
0x133f   : > { %7121 = vadd.xlane.f32.xlu1 %v13688_v43  ;;  %v13691_v41 = vpop.eup %10719 }
0x1340   : > { %v13694_v27 = vpop.eup %10721 }
0x1341   : > { %7119 = vadd.xlane.f32.xlu0 %v13691_v41  ;;  %v13697_v26 = vpop.eup %10723 }
0x1343   : > { %7125 = vadd.xlane.f32.xlu1 %v13694_v27 }
0x1345   : > { %7123 = vadd.xlane.f32.xlu0 %v13697_v26 }
0x137d   : > { %v7100_v58 = vpop.xlane.xlu1 %7099 }
0x1381   : > { %v7096_v48 = vpop.xlane.xlu1 %7095 }
0x1382   : > { %10725 = vrcp.f32 %v7096_v48 }
0x1385   : > { %v7102_v21 = vpop.xlane.xlu1 %7101 }
0x1389   : > { %v7098_v33 = vpop.xlane.xlu1 %7097  ;;  %v7108_v31 = vpop.xlane.xlu0 %7107 }
0x138a   : > { %10727 = vrcp.f32 %v7098_v33 }
0x138b   : > { %10729 = vrcp.f32 %v7102_v21 }
0x138c   : > { %10731 = vrcp.f32 %v7100_v58  ;;  %v10726_v59 = vpop.eup %10725 }
0x138d   : > { %v7104_v3 = vpop.xlane.xlu1 %7103  ;;  %v7110_v7 = vpop.xlane.xlu0 %7109  ;;  %v7143_v56 = vmul.f32 %v10726_v59, %v13643_v10  ;;  %v10357_v10 = vld [vmem:[%s13940_s2 + $0x1e0] ss:$12 sps:$4 sm:$0xff]  }
0x138e   : > { %10733 = vrcp.f32 %v7104_v3 }
0x1391   : > { %v7106_v23 = vpop.xlane.xlu0 %7105  ;;  %v7190_v34 = vpop.permute.xlu1 %7189 }
0x1392   : > { %10735 = vrcp.f32 %v7106_v23 }
0x1393   : > { %10737 = vrcp.f32 %v7110_v7 }
0x1394   : > { %v10728_v61 = vpop.eup %10727  ;;  %10739 = vrcp.f32 %v7108_v31 }
0x1395   : > { %v10730_v8 = vpop.eup %10729  ;;  %v7188_v47 = vpop.permute.xlu0 %7187  ;;  %v7144_v24 = vmul.f32 %v10728_v61, %v13649_v50 }
0x1396   : > { %9402 = vmatprep.subr.bf16.mxu0 %v7188_v47  ;;  %v10732_v53 = vpop.eup %10731  ;;  %v7146_v18 = vmul.f32 %v10730_v8, %v13646_v49  ;;  %v10363_v49 = vld [vmem:[%s13940_s2 + $0x1fc] ss:$12 sps:$4 sm:$0xff]  }
0x1397   : > { %9403 = vmatpush3.bf16.msra.mxu0 %v7188_v47  ;;  %v7159_v13 = vpack.c.bf16 %v7144_v24, %v7143_v56  ;;  %v7145_v28 = vmul.f32 %v10732_v53, %v13639_v36 }
0x1398   : > { %9404 = vmatprep.subr.bf16.mxu0 %v7190_v34  ;;  %v10734_v4 = vpop.eup %10733 }
0x1399   : > { %9406 = vmatprep.mubr.bf16.mxu0 %v7159_v13  ;;  %v7160_v42 = vpack.c.bf16 %v7146_v18, %v7145_v28  ;;  %v7147_v45 = vmul.f32 %v10734_v4, %v13657_v0 }
0x139b   : > { %9405 = vmatpush3.bf16.msra.mxu0 %v7190_v34 }
0x139c   : > { %v10736_v50 = vpop.eup %10735  ;;  %7408 = vmatprep.subr.bf16.mxu0 %v10359_v14 }
0x139d   : > { %v10738_v51 = vpop.eup %10737  ;;  %v7148_v11 = vmul.f32 %v10736_v50, %v13661_v44  ;;  %v10365_v44 = vld [vmem:[%s13940_s2 + $0x210] ss:$12 sps:$4 sm:$0xff]  }
0x139e   : > { %9407 = vmatmul.mubr.bf16.vlgmr.msra.gmra.mrb[216].mxu0 %v7160_v42  ;;  %v10740_v6 = vpop.eup %10739  ;;  %v7150_v2 = vmul.f32 %v10738_v51, %v13655_v35 }
0x139f   : > { %v7161_v36 = vpack.c.bf16 %v7148_v11, %v7147_v45  ;;  %7409 = vmatpush1.bf16.msra.mxu0 %v10357_v10  ;;  %v7149_v0 = vmul.f32 %v10740_v6, %v13651_v30  ;;  %v14177_v6 = vld [vmem:[#allocation58_spill] sm:$0xff] }
0x13a0   : > { %7410 = vmatprep.subr.bf16.mxu0 %v10363_v49 }
0x13a1   : > { %9410 = vmatprep.mubr.bf16.mxu0 %v7161_v36  ;;  %v7162_v55 = vpack.c.bf16 %v7150_v2, %v7149_v0  ;;  %v7670_v36 = vsub.s32 0, %v14177_v6  ;;  %v7674_v2 = vsub.s32 1, %v14177_v6 }
0x13a3   : > { %7411 = vmatpush1.bf16.msra.mxu0 %v10361_v52  ;;  %v7666_v52 = vld [vmem:[%s13941_s3] sm:$0x7] }
0x13a4   : > { %7412 = vmatprep.subr.bf16.mxu0 %v10367_v62  ;;  %v7678_v62 = vsub.s32 2, %v14177_v6  ;;  %v13783_v0 = vrot.slane %v7666_v52, %v7670_v36 }
0x13a6   : > { %9411 = vmatmul.mubr.bf16.gmra.mrb[220].mxu0 %v7162_v55  ;;  %v13789_v55 = vrot.slane %v7666_v52, %v7678_v62 }
0x13a7   : > { %7413 = vmatpush1.bf16.msra.mxu0 %v10365_v44  ;;  %v13785_v44 = vrot.slane %v7666_v52, %v7674_v2 }
0x13c2   : > { %v7112_v54 = vpop.xlane.xlu1 %7111 }
0x13c3   : > { %10741 = vrcp.f32 %v7112_v54 }
0x13c6   : > { %v7118_v35 = vpop.xlane.xlu1 %7117  ;;  %v7114_v40 = vpop.xlane.xlu0 %7113 }
0x13c7   : > { %10743 = vrcp.f32 %v7114_v40 }
0x13c8   : > { %10745 = vrcp.f32 %v7118_v35 }
0x13ca   : > { %v7116_v9 = vpop.xlane.xlu0 %7115 }
0x13cb   : > { %10747 = vrcp.f32 %v7116_v9 }
0x13cc   : > { %v7122_v5 = vpop.xlane.xlu1 %7121 }
0x13cd   : > { %10749 = vrcp.f32 %v7122_v5  ;;  %v10742_v39 = vpop.eup %10741  ;;  %v14178_v5 = vld [vmem:[#allocation42_spill] sm:$0xff] }
0x13ce   : > { %v7120_v30 = vpop.xlane.xlu0 %7119  ;;  %v7151_v60 = vmul.f32 %v10742_v39, %v13676_v16 }
0x13cf   : > { %10751 = vrcp.f32 %v7120_v30 }
0x13d0   : > { %v7126_v20 = vpop.xlane.xlu1 %7125 }
0x13d1   : > { %10753 = vrcp.f32 %v7126_v20  ;;  %v10744_v37 = vpop.eup %10743 }
0x13d2   : > { %v7124_v22 = vpop.xlane.xlu0 %7123  ;;  %v10746_v15 = vpop.eup %10745  ;;  %v7152_v46 = vmul.f32 %v10744_v37, %v13681_v57 }
0x13d3   : > { %10755 = vrcp.f32 %v7124_v22  ;;  %v7154_v17 = vmul.f32 %v10746_v15, %v13679_v1  ;;  %v10371_v1 = vld [vmem:[%s13940_s2 + $0x22c] ss:$12 sps:$4 sm:$0xff]  }
0x13d4   : > { %v7163_v38 = vpack.c.bf16 %v7152_v46, %v7151_v60  ;;  %7414 = vmatprep.subr.bf16.mxu0 %v10371_v1  ;;  %v14179_v22 = vld [vmem:[#allocation40_spill] sm:$0xff] }
0x13d5   : > { %v10748_v12 = vpop.eup %10747 }
0x13d6   : > { %v7153_v29 = vmul.f32 %v10748_v12, %v13685_v32  ;;  %9414 = vmatprep.mubr.bf16.mxu0 %v7163_v38 }
0x13d7   : > { %v10750_v19 = vpop.eup %10749 }
0x13d8   : > { %v7164_v25 = vpack.c.bf16 %v7154_v17, %v7153_v29  ;;  %v7156_v21 = vmul.f32 %v10750_v19, %v13688_v43  ;;  %v10369_v43 = vld [vmem:[%s13940_s2 + $0x228] ss:$12 sps:$4 sm:$0xff]   ;;  %v14180_v17 = vld [vmem:[#allocation44_spill] sm:$0xff] }
0x13d9   : > { %v10752_v58 = vpop.eup %10751  ;;  %7415 = vmatpush1.bf16.msra.mxu0 %v10369_v43 }
0x13da   : > { %9415 = vmatmul.mubr.bf16.gmra.mrb[224].mxu0 %v7164_v25  ;;  %v7155_v48 = vmul.f32 %v10752_v58, %v13691_v41  ;;  %v10372_v41 = vld [vmem:[%s13940_s2 + $0x230] ss:$12 sps:$4 sm:$0xff]  }
0x13db   : > { %v10754_v33 = vpop.eup %10753  ;;  %9428 = vmatprep.subr.bf16.mxu1 %v10372_v41 }
0x13dc   : > { %v7165_v31 = vpack.c.bf16 %v7156_v21, %v7155_v48  ;;  %v7158_v3 = vmul.f32 %v10754_v33, %v13694_v27  ;;  %9429 = vmatpush3.bf16.msra.mxu1 %v10372_v41  ;;  %v14181_v48 = vld [vmem:[#allocation48_spill] sm:$0xff] }
0x13dd   : > { %v10756_v16 = vpop.eup %10755 }
0x13de   : > { %9418 = vmatprep.mubr.bf16.mxu0 %v7165_v31  ;;  %v7157_v57 = vmul.f32 %v10756_v16, %v13697_v26 }
0x13e0   : > { %v7166_v32 = vpack.c.bf16 %v7158_v3, %v7157_v57 }
0x13e2   : > { %9419 = vmatmul.mubr.bf16.gmra.mrb[228].mxu0 %v7166_v32 }
0x13e3   : > { %7440 = vmatprep.mubr.bf16.mxu0 %v14100_v63 }
0x1471   : > { %v9408_v27 = vpop.f32.mrb[216].mxu0 }
0x1472   : > { %v7233_v26 = vpop.f32.mrb[217].mxu0 }
0x1473   : > { %v9409_v7 = vpop.f32.mrb[218].mxu0 }
0x1474   : > { %v7297_v23 = vpack.c.bf16 %v9409_v7, %v9408_v27  ;;  %v7236_v59 = vpop.f32.mrb[219].mxu0 }
0x1475   : > { %v7296_v61 = vpack.c.bf16 %v7236_v59, %v7233_v26 }
0x1477   : > { %8459 = vmatmul.mubr.msk.bf16.vlgmr.msra.gmra.mrb[128].mxu0 %vm2937_vm0, %v7296_v61  ;;  %9430 = vmatprep.mubr.msk.bf16.mxu1 %vm2937_vm0, %v7296_v61 }
0x1478   : > { %9431 = vmatmul.mubr.msk.bf16.vlgmr.msra.gmra.mrb[152].mxu1 %vm2937_vm0, %v7297_v23  ;;  %7450 = vmatprep.mubr.bf16.mxu0 %v14100_v63 }
0x1479   : > { %v9412_v8 = vpop.f32.mrb[220].mxu0 }
0x147a   : > { %v7249_v47 = vpop.f32.mrb[221].mxu0 }
0x147b   : > { %v9413_v56 = vpop.f32.mrb[222].mxu0 }
0x147c   : > { %v7299_v24 = vpack.c.bf16 %v9413_v56, %v9412_v8  ;;  %v7252_v53 = vpop.f32.mrb[223].mxu0  ;;  %v14183_v56 = vld [vmem:[#allocation18_spill] sm:$0xff] }
0x147d   : > { %v7298_v34 = vpack.c.bf16 %v7252_v53, %v7249_v47 }
0x147f   : > { %8460 = vmatmul.mubr.msk.bf16.gmra.mrb[132].mxu0 %vm2937_vm0, %v7297_v23  ;;  %9434 = vmatprep.mubr.msk.bf16.mxu1 %vm2937_vm0, %v7298_v34  ;;  %v14182_v23 = vld [vmem:[#allocation46_spill] sm:$0xff] }
0x1480   : > { %9435 = vmatmul.mubr.msk.bf16.gmra.mrb[156].mxu1 %vm2937_vm0, %v7299_v24  ;;  %7460 = vmatprep.mubr.bf16.mxu0 %v14100_v63 }
0x1487   : > { %8461 = vmatmul.mubr.msk.bf16.gmra.mrb[136].mxu0 %vm2937_vm0, %v7298_v34 }
0x1488   : > { %7470 = vmatprep.mubr.bf16.mxu0 %v14100_v63 }
0x148f   : > { %8462 = vmatmul.mubr.msk.bf16.gmra.mrb[140].mxu0 %vm2937_vm0, %v7299_v24 }
0x1490   : > { %7480 = vmatprep.mubr.bf16.mxu0 %v14100_v63 }
0x14ad   : > { %v9416_v13 = vpop.f32.mrb[224].mxu0 }
0x14ae   : > { %v7265_v18 = vpop.f32.mrb[225].mxu0 }
0x14af   : > { %v9417_v14 = vpop.f32.mrb[226].mxu0 }
0x14b0   : > { %v7301_v4 = vpack.c.bf16 %v9417_v14, %v9416_v13  ;;  %v7268_v28 = vpop.f32.mrb[227].mxu0 }
0x14b1   : > { %v7300_v10 = vpack.c.bf16 %v7268_v28, %v7265_v18 }
0x14b3   : > { %8463 = vmatmul.mubr.msk.bf16.gmra.mrb[144].mxu0 %vm2937_vm0, %v7300_v10  ;;  %9438 = vmatprep.mubr.msk.bf16.mxu1 %vm2937_vm0, %v7300_v10 }
0x14b4   : > { %9439 = vmatmul.mubr.msk.bf16.gmra.mrb[144].mxu1 %vm2937_vm0, %v7301_v4  ;;  %7490 = vmatprep.mubr.bf16.mxu0 %v14100_v63 }
0x14b5   : > { %v9420_v50 = vpop.f32.mrb[228].mxu0 }
0x14b6   : > { %v7281_v42 = vpop.f32.mrb[229].mxu0 }
0x14b7   : > { %v9421_v49 = vpop.f32.mrb[230].mxu0 }
0x14b8   : > { %v7303_v51 = vpack.c.bf16 %v9421_v49, %v9420_v50  ;;  %v7284_v45 = vpop.f32.mrb[231].mxu0 }
0x14b9   : > { %v7302_v11 = vpack.c.bf16 %v7284_v45, %v7281_v42  ;;  %v14185_v42 = vld [vmem:[#allocation24_spill] sm:$0xff] }
0x14bb   : > { %8464 = vmatmul.mubr.msk.bf16.gmra.mrb[148].mxu0 %vm2937_vm0, %v7301_v4  ;;  %9442 = vmatprep.mubr.msk.bf16.mxu1 %vm2937_vm0, %v7302_v11  ;;  %v14184_v4 = vld [vmem:[#allocation21_spill] sm:$0xff] }
0x14bc   : > { %9443 = vmatmul.mubr.msk.bf16.gmra.mrb[148].mxu1 %vm2937_vm0, %v7303_v51  ;;  %7500 = vmatprep.mubr.bf16.mxu0 %v14100_v63 }
0x14c3   : > { %8465 = vmatmul.mubr.msk.bf16.gmra.mrb[152].mxu0 %vm2937_vm0, %v7302_v11 }
0x14c4   : > { %7510 = vmatprep.mubr.bf16.mxu0 %v14100_v63 }
0x14cb   : > { %8466 = vmatmul.mubr.msk.bf16.gmra.mrb[156].mxu0 %vm2937_vm0, %v7303_v51 }
0x154a   : > { %v7442_v63 = vpop.f32.mrb[128].mxu0 }
0x154b   : > { %v7683_v54 = vadd.f32 %v13783_v0, %v7442_v63  ;;  %v7444_v35 = vpop.f32.mrb[129].mxu0  ;;  %v9432_v40 = vpop.f32.mrb[152].mxu1 }
0x154c   : > { %v7684_v9 = vadd.f32 %v13785_v44, %v7444_v35  ;;  %v9486_v30 = vadd.f32 %v9432_v40, %v14178_v5  ;;  %v7446_v39 = vpop.f32.mrb[130].mxu0  ;;  %v7555_v20 = vpop.f32.mrb[153].mxu1 }
0x154d   : > { %v7686_v37 = vadd.f32 %v13783_v0, %v7446_v39  ;;  %v9487_v15 = vadd.f32 %v7555_v20, %v14179_v22  ;;  %v7448_v60 = vpop.f32.mrb[131].mxu0  ;;  %v9433_v46 = vpop.f32.mrb[154].mxu1 }
0x154e   : > { %v8510_v12 = vpack.c.bf16 %v7684_v9, %v7683_v54  ;;  %v7691_v38 = vadd.f32 %v9486_v30, %v13789_v55  ;;  %v7687_v29 = vadd.f32 %v13785_v44, %v7448_v60  ;;  %v9488_v19 = vadd.f32 %v9433_v46, %v14180_v17  ;;  %v7558_v25 = vpop.f32.mrb[155].mxu1 }
0x154f   : > { %v7685_v58 = vadd.f32 %v9487_v15, %v13789_v55  ;;  %v9489_v21 = vadd.f32 %v7558_v25, %v14181_v48 }
0x1550   : > { %7891 = vst [vmem:[%s13801_s13] sm:$0xff] %v8510_v12  ;;  %v8515_v33 = vpack.c.bf16 %v7691_v38, %v7691_v38  ;;  %v8512_v31 = vpack.c.bf16 %v7687_v29, %v7686_v37  ;;  %v7694_v16 = vadd.f32 %v9488_v19, %v13789_v55 }
0x1551   : > { %v8511_v57 = vpack.c.bf16 %v7685_v58, %v7685_v58  ;;  %v7688_v3 = vadd.f32 %v9489_v21, %v13789_v55 }
0x1552   : > { %7896 = vst [vmem:[%s13801_s13 + $0x20] sm:$0xf] %v8515_v33  ;;  %7893 = vst [vmem:[%s13801_s13 + $0xc] sm:$0xff] %v8512_v31  ;;  %v8517_v32 = vpack.c.bf16 %v7694_v16, %v7694_v16  ;;  %v7452_v1 = vpop.f32.mrb[132].mxu0 }
0x1553   : > { %7892 = vst [vmem:[%s13801_s13 + $0x8] sm:$0xf] %v8511_v57  ;;  %v8513_v43 = vpack.c.bf16 %v7688_v3, %v7688_v3  ;;  %v7689_v41 = vadd.f32 %v13783_v0, %v7452_v1  ;;  %v7454_v27 = vpop.f32.mrb[133].mxu0  ;;  %v9436_v26 = vpop.f32.mrb[156].mxu1 }
0x1554   : > { %7898 = vst [vmem:[%s13801_s13 + $0x2c] sm:$0xf] %v8517_v32  ;;  %v7690_v7 = vadd.f32 %v13785_v44, %v7454_v27  ;;  %v9490_v59 = vadd.f32 %v9436_v26, %v14182_v23  ;;  %v7456_v61 = vpop.f32.mrb[134].mxu0  ;;  %v7571_v8 = vpop.f32.mrb[157].mxu1 }
0x1555   : > { %7894 = vst [vmem:[%s13801_s13 + $0x14] sm:$0xf] %v8513_v43  ;;  %v7692_v47 = vadd.f32 %v13783_v0, %v7456_v61  ;;  %v9491_v24 = vadd.f32 %v7571_v8, %v14183_v56  ;;  %v7458_v53 = vpop.f32.mrb[135].mxu0  ;;  %v9437_v34 = vpop.f32.mrb[158].mxu1 }
0x1556   : > { %v8514_v13 = vpack.c.bf16 %v7690_v7, %v7689_v41  ;;  %v7703_v18 = vadd.f32 %v9490_v59, %v13789_v55  ;;  %v7693_v14 = vadd.f32 %v13785_v44, %v7458_v53  ;;  %v9492_v28 = vadd.f32 %v9437_v34, %v14184_v4  ;;  %v7574_v10 = vpop.f32.mrb[159].mxu1 }
0x1557   : > { %v7697_v50 = vadd.f32 %v9491_v24, %v13789_v55  ;;  %v9493_v49 = vadd.f32 %v7574_v10, %v14185_v42 }
0x1558   : > { %7895 = vst [vmem:[%s13801_s13 + $0x18] sm:$0xff] %v8514_v13  ;;  %v8523_v51 = vpack.c.bf16 %v7703_v18, %v7703_v18  ;;  %v8516_v45 = vpack.c.bf16 %v7693_v14, %v7692_v47  ;;  %v7706_v11 = vadd.f32 %v9492_v28, %v13789_v55 }
0x1559   : > { %v8519_v6 = vpack.c.bf16 %v7697_v50, %v7697_v50  ;;  %v7700_v36 = vadd.f32 %v9493_v49, %v13789_v55 }
0x155a   : > { %7904 = vst [vmem:[%s13801_s13 + $0x50] sm:$0xf] %v8523_v51  ;;  %7897 = vst [vmem:[%s13801_s13 + $0x24] sm:$0xff] %v8516_v45  ;;  %v8525_v52 = vpack.c.bf16 %v7706_v11, %v7706_v11  ;;  %v7462_v2 = vpop.f32.mrb[136].mxu0 }
0x155b   : > { %7900 = vst [vmem:[%s13801_s13 + $0x38] sm:$0xf] %v8519_v6  ;;  %v8521_v62 = vpack.c.bf16 %v7700_v36, %v7700_v36  ;;  %v7695_v63 = vadd.f32 %v13783_v0, %v7462_v2  ;;  %v7464_v54 = vpop.f32.mrb[137].mxu0 }
0x155c   : > { %7906 = vst [vmem:[%s13801_s13 + $0x5c] sm:$0xf] %v8525_v52  ;;  %v7696_v35 = vadd.f32 %v13785_v44, %v7464_v54  ;;  %v7466_v40 = vpop.f32.mrb[138].mxu0 }
0x155d   : > { %7902 = vst [vmem:[%s13801_s13 + $0x44] sm:$0xf] %v8521_v62  ;;  %v7698_v9 = vadd.f32 %v13783_v0, %v7466_v40  ;;  %v7468_v5 = vpop.f32.mrb[139].mxu0 }
0x155e   : > { %v8518_v30 = vpack.c.bf16 %v7696_v35, %v7695_v63  ;;  %v7699_v39 = vadd.f32 %v13785_v44, %v7468_v5 }
0x1560   : > { %7899 = vst [vmem:[%s13801_s13 + $0x30] sm:$0xff] %v8518_v30  ;;  %v8520_v20 = vpack.c.bf16 %v7699_v39, %v7698_v9 }
0x1562   : > { %7901 = vst [vmem:[%s13801_s13 + $0x3c] sm:$0xff] %v8520_v20  ;;  %v7472_v37 = vpop.f32.mrb[140].mxu0 }
0x1563   : > { %v7701_v22 = vadd.f32 %v13783_v0, %v7472_v37  ;;  %v7474_v15 = vpop.f32.mrb[141].mxu0 }
0x1564   : > { %v7702_v60 = vadd.f32 %v13785_v44, %v7474_v15  ;;  %v7476_v46 = vpop.f32.mrb[142].mxu0 }
0x1565   : > { %v7704_v12 = vadd.f32 %v13783_v0, %v7476_v46  ;;  %v7478_v38 = vpop.f32.mrb[143].mxu0 }
0x1566   : > { %v8522_v29 = vpack.c.bf16 %v7702_v60, %v7701_v22  ;;  %v7705_v17 = vadd.f32 %v13785_v44, %v7478_v38 }
0x1568   : > { %7903 = vst [vmem:[%s13801_s13 + $0x48] sm:$0xff] %v8522_v29  ;;  %v8524_v19 = vpack.c.bf16 %v7705_v17, %v7704_v12 }
0x156a   : > { %7905 = vst [vmem:[%s13801_s13 + $0x54] sm:$0xff] %v8524_v19 }
0x1586   : > { %v7482_v25 = vpop.f32.mrb[144].mxu0 }
0x1587   : > { %v7707_v58 = vadd.f32 %v13783_v0, %v7482_v25  ;;  %v7484_v48 = vpop.f32.mrb[145].mxu0  ;;  %v9440_v21 = vpop.f32.mrb[144].mxu1 }
0x1588   : > { %v7708_v33 = vadd.f32 %v13785_v44, %v7484_v48  ;;  %v7715_v31 = vadd.f32 %v9440_v21, %v13789_v55  ;;  %v7486_v16 = vpop.f32.mrb[146].mxu0  ;;  %v7587_v57 = vpop.f32.mrb[145].mxu1 }
0x1589   : > { %v7710_v3 = vadd.f32 %v13783_v0, %v7486_v16  ;;  %v7709_v32 = vadd.f32 %v13789_v55, %v7587_v57  ;;  %v7488_v1 = vpop.f32.mrb[147].mxu0  ;;  %v9441_v43 = vpop.f32.mrb[146].mxu1 }
0x158a   : > { %v8526_v41 = vpack.c.bf16 %v7708_v33, %v7707_v58  ;;  %v8531_v27 = vpack.c.bf16 %v7715_v31, %v7715_v31  ;;  %v7711_v26 = vadd.f32 %v13785_v44, %v7488_v1  ;;  %v7718_v7 = vadd.f32 %v9441_v43, %v13789_v55  ;;  %v7590_v23 = vpop.f32.mrb[147].mxu1 }
0x158b   : > { %v8527_v59 = vpack.c.bf16 %v7709_v32, %v7709_v32  ;;  %v7712_v61 = vadd.f32 %v13789_v55, %v7590_v23 }
0x158c   : > { %7907 = vst [vmem:[%s13801_s13 + $0x60] sm:$0xff] %v8526_v41  ;;  %7912 = vst [vmem:[%s13801_s13 + $0x80] sm:$0xf] %v8531_v27  ;;  %v8528_v8 = vpack.c.bf16 %v7711_v26, %v7710_v3  ;;  %v8533_v47 = vpack.c.bf16 %v7718_v7, %v7718_v7 }
0x158d   : > { %7908 = vst [vmem:[%s13801_s13 + $0x68] sm:$0xf] %v8527_v59  ;;  %v8529_v56 = vpack.c.bf16 %v7712_v61, %v7712_v61 }
0x158e   : > { %7909 = vst [vmem:[%s13801_s13 + $0x6c] sm:$0xff] %v8528_v8  ;;  %7914 = vst [vmem:[%s13801_s13 + $0x8c] sm:$0xf] %v8533_v47  ;;  %v7492_v24 = vpop.f32.mrb[148].mxu0 }
0x158f   : > { %7910 = vst [vmem:[%s13801_s13 + $0x74] sm:$0xf] %v8529_v56  ;;  %v7713_v53 = vadd.f32 %v13783_v0, %v7492_v24  ;;  %v7494_v34 = vpop.f32.mrb[149].mxu0  ;;  %v9444_v13 = vpop.f32.mrb[148].mxu1 }
0x1590   : > { %v7714_v18 = vadd.f32 %v13785_v44, %v7494_v34  ;;  %v7727_v14 = vadd.f32 %v9444_v13, %v13789_v55  ;;  %v7496_v4 = vpop.f32.mrb[150].mxu0  ;;  %v7603_v28 = vpop.f32.mrb[149].mxu1 }
0x1591   : > { %v7716_v10 = vadd.f32 %v13783_v0, %v7496_v4  ;;  %v7721_v50 = vadd.f32 %v13789_v55, %v7603_v28  ;;  %v7498_v42 = vpop.f32.mrb[151].mxu0  ;;  %v9445_v49 = vpop.f32.mrb[150].mxu1 }
0x1592   : > { %v8530_v51 = vpack.c.bf16 %v7714_v18, %v7713_v53  ;;  %v8539_v45 = vpack.c.bf16 %v7727_v14, %v7727_v14  ;;  %v7717_v11 = vadd.f32 %v13785_v44, %v7498_v42  ;;  %v7730_v6 = vadd.f32 %v9445_v49, %v13789_v55  ;;  %v7606_v36 = vpop.f32.mrb[151].mxu1 }
0x1593   : > { %v8535_v52 = vpack.c.bf16 %v7721_v50, %v7721_v50  ;;  %v7724_v2 = vadd.f32 %v13789_v55, %v7606_v36 }
0x1594   : > { %7911 = vst [vmem:[%s13801_s13 + $0x78] sm:$0xff] %v8530_v51  ;;  %7920 = vst [vmem:[%s13801_s13 + $0xb0] sm:$0xf] %v8539_v45  ;;  %v8532_v62 = vpack.c.bf16 %v7717_v11, %v7716_v10  ;;  %v8541_v63 = vpack.c.bf16 %v7730_v6, %v7730_v6 }
0x1595   : > { %7916 = vst [vmem:[%s13801_s13 + $0x98] sm:$0xf] %v8535_v52  ;;  %v8537_v54 = vpack.c.bf16 %v7724_v2, %v7724_v2 }
0x1596   : > { %7913 = vst [vmem:[%s13801_s13 + $0x84] sm:$0xff] %v8532_v62  ;;  %7922 = vst [vmem:[%s13801_s13 + $0xbc] sm:$0xf] %v8541_v63  ;;  %v7502_v35 = vpop.f32.mrb[152].mxu0 }
0x1597   : > { %7918 = vst [vmem:[%s13801_s13 + $0xa4] sm:$0xf] %v8537_v54  ;;  %v7719_v40 = vadd.f32 %v13783_v0, %v7502_v35  ;;  %v7504_v9 = vpop.f32.mrb[153].mxu0 }
0x1598   : > { %v7720_v5 = vadd.f32 %v13785_v44, %v7504_v9  ;;  %v7506_v55 = vpop.f32.mrb[154].mxu0 }
0x1599   : > { %v7722_v30 = vadd.f32 %v13783_v0, %v7506_v55  ;;  %v7508_v39 = vpop.f32.mrb[155].mxu0 }
0x159a   : > { %v8534_v20 = vpack.c.bf16 %v7720_v5, %v7719_v40  ;;  %v7723_v37 = vadd.f32 %v13785_v44, %v7508_v39 }
0x159c   : > { %7915 = vst [vmem:[%s13801_s13 + $0x90] sm:$0xff] %v8534_v20  ;;  %v8536_v22 = vpack.c.bf16 %v7723_v37, %v7722_v30 }
0x159e   : > { %7917 = vst [vmem:[%s13801_s13 + $0x9c] sm:$0xff] %v8536_v22  ;;  %v7512_v15 = vpop.f32.mrb[156].mxu0 }
0x159f   : > { %v7725_v60 = vadd.f32 %v13783_v0, %v7512_v15  ;;  %v7514_v46 = vpop.f32.mrb[157].mxu0 }
0x15a0   : > { %v7726_v12 = vadd.f32 %v13785_v44, %v7514_v46  ;;  %v7516_v38 = vpop.f32.mrb[158].mxu0 }
0x15a1   : > { %v7728_v29 = vadd.f32 %v13783_v0, %v7516_v38  ;;  %v7518_v17 = vpop.f32.mrb[159].mxu0 }
0x15a2   : > { %v8538_v19 = vpack.c.bf16 %v7726_v12, %v7725_v60  ;;  %v7729_v25 = vadd.f32 %v13785_v44, %v7518_v17 }
0x15a4   : > { %7919 = vst [vmem:[%s13801_s13 + $0xa8] sm:$0xff] %v8538_v19  ;;  %v8540_v58 = vpack.c.bf16 %v7729_v25, %v7728_v29 }
0x15a6   : > { %7921 = vst [vmem:[%s13801_s13 + $0xb4] sm:$0xff] %v8540_v58 }
0x15a7   : > { %10794 = shalt.err (!%p10791_p5)
}
0x15a8   : > { %s10795_s6 = scalar_lea.hbm %s13884_s26, 3072  ;;  %s10799_s7 = scalar_lea.hbm %s13942_s4, 6144 }
0x15a9   : > { %p10796_p6 = scmp.ne.s32.totalorder %s13884_s26, %s10795_s6  ;;  %p10800_p10 = scmp.lt.u32.totalorder %s13884_s26, %s13942_s4 }
0x15aa   : > { %p10801_p11 = scmp.lt.u32.totalorder %s10799_s7, %s10795_s6  ;;  %p10803_p13 = scmp.lt.u32.totalorder %s10795_s6, %s13884_s26 }
0x15ab   : > { %p10797_p7 = pnand %p10796_p6, %p10932_p4 }
0x15ac   : > { %p10802_p12 = por %p10801_p11, %p10800_p10 }
0x15ad   : > { %p10798_p9 = pneg %p10797_p7 }
0x15ae   : > { %p10804_p0 = por %p10803_p13, %p10802_p12 }
0x15b0   : > { %p10805_p1 = pnand %p10804_p0, %p10798_p9 }
0x15b2   : > { %10808 = shalt.err (!%p10805_p1)
}
0x15b3   : > { %s10865_s13 = smov 192   ;;  %s10866_s14 = smov 12  }
0x15b4   : > { %9873 = dma.vmem_to_hbm [thread:$0]  (%p10932_p4), %s13886_s21, 3072, %s13884_s26, %s13892_s18, %s10865_s13, %s10865_s13, %s10866_s14  }
0x15b5 PF: > { %p9879_p2 = scmp.ge.s32.totalorder %s10859_s20, 2  ;;  %s7955_s24 = sand.u32 1, %s10839_s15  }
0x15b6   : > { %s7956_s11 = scalar_lea.sflag [#allocation3], %s7955_s24 }
0x15b7   : > { %p9876_p3 = pnand %p9879_p2, %p10939_p8 }
0x15b9   : > { %10834 = dma.done.wait (!%p9876_p3), %s7956_s11, 3072  }
0x15ba   : > { %10836 = vsyncadd (!%p9876_p3), %s7956_s11, 4294964224  ;;  %s17_s20 = sadd.s32 1, %s10859_s20   ;;  %s14186_s15 = smov %s10843_s16 }
0x15bb   : > { %p14_p5 = scmp.ge.s32.totalorder %s17_s20, 4   ;;  %s14187_s16 = smov %s10847_s17 }
0x15bc   : > { %s14188_s17 = smov %s10945_s28  ;;  %s14189_s18 = smov %s10855_s19 }
0x15bd   : > { %s14190_s19 = smov %s14192_s23  ;;  %16 = sbr.rel (!%p14_p5) target bundleno = 4 (0x4), region = 71 }
0x15c4   :  { %7961 = vsyncpa [#allocation3], 1 }
0x15c5   :  { %7963 = vsyncpa [#allocation3 + $0x1], 1 }

</bundles_post_ra>
